<compile_context>
chip_gen: v5e
topology: v5e:2x2
jax: 0.10.0
libtpu: 0.0.40
codegen_flags: <defaults>
</compile_context>

<pallas_src>
import jax
import jax.numpy as jnp
from jax import lax
from jax.experimental import pallas as pl
from jax.experimental.pallas import tpu as pltpu


def _zero_pad_hw(x):
    """Zero-pad a (H, W, C) value by 1 on each side of H and W, in registers."""
    H, W, C = x.shape
    zrow = jnp.zeros((1, W, C), jnp.float32)
    x = jnp.concatenate([zrow, x, zrow], axis=0)           # (H+2, W, C)
    zcol = jnp.zeros((H + 2, 1, C), jnp.float32)
    return jnp.concatenate([zcol, x, zcol], axis=1)        # (H+2, W+2, C)


def _pool_selectors(w):
    """(w//2, w) one-hot matrices picking even / odd columns.

    Used to do the 2x2 max-pool along W as two tiny MXU matmuls instead of a
    scratch round trip with stride-2 sublane loads."""
    r = lax.broadcasted_iota(jnp.int32, (w // 2, w), 0)
    c = lax.broadcasted_iota(jnp.int32, (w // 2, w), 1)
    even = (c == 2 * r).astype(jnp.float32)
    odd = (c == 2 * r + 1).astype(jnp.float32)
    return even, odd


def _conv_bn_relu_pool(xpad, wm, scale_b, bias_b, sel_e, sel_o):
    """3x3 'same' conv (input pre-padded) + folded BN + ReLU + 2x2/2 max-pool.

    xpad:    (H+2, W+2, Cin) value for one image
    wm:      (9*Cin, Cout) im2col conv weights
    scale_b: (2W, Cout) broadcast BN scale (hoisted out of the loop)
    bias_b:  (2W, Cout) broadcast BN bias (includes conv bias)
    Returns a list of H//2 pooled rows, each (W//2, Cout).
    """
    Hp, Wp, _ = xpad.shape
    H, W = Hp - 2, Wp - 2
    rows = []
    # TODO(synk): at this synthetic size (H<=16) a static unroll is fine; for
    #             the original module's huge spatial size this loop should be
    #             a fori_loop / extra grid axis with row-strip tiling to keep
    #             vreg pressure and VMEM (v7x: 64 MiB) bounded.
    for i in range(H // 2):
        taps = []
        for kh in range(3):
            for kw in range(3):
                top = xpad[2 * i + kh, kw:kw + W, :]            # (W, Cin)
                bot = xpad[2 * i + 1 + kh, kw:kw + W, :]        # (W, Cin)
                taps.append(jnp.concatenate([top, bot], axis=0))
        patch = jnp.concatenate(taps, axis=-1)                  # (2W, 9*Cin)
        acc = jnp.dot(patch, wm, preferred_element_type=jnp.float32)  # (2W, Cout)
        act = jnp.maximum(acc * scale_b + bias_b, 0.0)          # BN + ReLU
        rowmax = jnp.maximum(act[:W], act[W:])                  # pool along H
        pooled = jnp.maximum(                                   # pool along W
            jnp.dot(sel_e, rowmax, preferred_element_type=jnp.float32),
            jnp.dot(sel_o, rowmax, preferred_element_type=jnp.float32))
        rows.append(pooled)                                     # (W//2, Cout)
    return rows


def _net_fused_kernel(x_ref, w1_ref, s1_ref, b1_ref, w2_ref, s2_ref, b2_ref,
                      wfc1_ref, bfc1_ref, wfc2_ref, bfc2_ref, mask_ref, o_ref):
    """Entire Net forward for one image (one grid step)."""
    _, H, W, _ = x_ref.shape
    C1 = w1_ref.shape[1]
    C2 = w2_ref.shape[1]
    H1, W1 = H // 2, W // 2
    H2, W2 = H1 // 2, W1 // 2
    S = H2 * W2
    K1 = bfc1_ref.shape[1]

    # Hoisted parameter loads / broadcasts (kept out of the unrolled loops).
    w1m = w1_ref[...]
    w2m = w2_ref[...]
    scale1 = jnp.broadcast_to(s1_ref[...], (2 * W, C1))
    bias1 = jnp.broadcast_to(b1_ref[...], (2 * W, C1))
    scale2 = jnp.broadcast_to(s2_ref[...], (2 * W1, C2))
    bias2 = jnp.broadcast_to(b2_ref[...], (2 * W1, C2))
    se1, so1 = _pool_selectors(W)
    se2, so2 = _pool_selectors(W1)

    # conv1 block: (H, W, 1) -> (H1, W1, C1); halo padding in-register.
    xpad = _zero_pad_hw(x_ref[0])
    y1_rows = _conv_bn_relu_pool(xpad, w1m, scale1, bias1, se1, so1)
    y1 = jnp.stack(y1_rows, axis=0)                             # (H1, W1, C1)

    # conv2 block: (H1, W1, C1) -> rows of (W2, C2).
    y1pad = _zero_pad_hw(y1)
    y2_rows = _conv_bn_relu_pool(y1pad, w2m, scale2, bias2, se2, so2)
    y2 = jnp.concatenate(y2_rows, axis=0)                       # (S, C2), s = h*W2 + w

    # fcn: one (S, C2) @ (C2, S*K1) matmul.  wfc1 was reshaped at init so
    # column block s holds the weights of flat features (c, s) in PyTorch
    # CHW-flatten order -- this removes the NHWC->NCHW flatten transpose.
    p = jnp.dot(y2, wfc1_ref[...], preferred_element_type=jnp.float32)  # (S, S*K1)
    h = bfc1_ref[...]                                            # (1, K1)
    for s in range(S):
        h = h + p[s:s + 1, s * K1:(s + 1) * K1]

    # dropout(p=0.5), inverted scaling; mask values are 0.0 or 2.0.
    h = h * mask_ref[0]

    # fcn2
    o_ref[0] = (jnp.dot(h, wfc2_ref[...], preferred_element_type=jnp.float32)
                + bfc2_ref[...])


# ---------------------------------------------------------------------------
# Parameter init (deterministic, synthetic) and forward glue
# ---------------------------------------------------------------------------
def init_params(key, H, W):
    ks = jax.random.split(key, 4)
    eps = 1e-5
    C1, C2, K1, K2 = 4, 8, 10, 2
    S = (H // 4) * (W // 4)
    F = C2 * S   # scaled-down stand-in for the original 8*12*53824

    w_conv1 = 0.2 * jax.random.normal(ks[0], (3, 3, 1, C1), jnp.float32)   # HWIO
    b_conv1 = 0.01 * jnp.arange(C1, dtype=jnp.float32)
    w_conv2 = 0.2 * jax.random.normal(ks[1], (3, 3, C1, C2), jnp.float32)  # HWIO
    b_conv2 = 0.01 * jnp.arange(C2, dtype=jnp.float32)

    # BatchNorm2d eval-mode (gamma=1, beta=0, mean=0, var=1) folded together
    # with the conv bias into a per-channel scale/bias.
    def fold(gamma, beta, mean, var, conv_b):
        s = gamma / jnp.sqrt(var + eps)
        return s.reshape(1, -1), (beta + s * (conv_b - mean)).reshape(1, -1)

    scale1, bias1 = fold(jnp.ones(C1), jnp.zeros(C1), jnp.zeros(C1),
                         jnp.ones(C1), b_conv1)
    scale2, bias2 = fold(jnp.ones(C2), jnp.zeros(C2), jnp.zeros(C2),
                         jnp.ones(C2), b_conv2)

    # fcn weights: rows in PyTorch CHW-flatten order f = c*S + (h*W2 + w).
    # Reshaped once host-side to (C2, S*K1) so the kernel consumes the NHWC
    # conv output directly (no flatten transpose at runtime).
    w_fc1 = 0.05 * jax.random.normal(ks[2], (F, K1), jnp.float32)
    b_fc1 = 0.01 * jnp.arange(K1, dtype=jnp.float32).reshape(1, K1)
    w_fc2 = 0.05 * jax.random.normal(ks[3], (K1, K2), jnp.float32)
    b_fc2 = jnp.zeros((1, K2), jnp.float32)

    return dict(
        w1m=w_conv1.reshape(9, C1),            # im2col conv1 weights (9*Cin, Cout)
        w2m=w_conv2.reshape(9 * C1, C2),       # im2col conv2 weights
        scale1=scale1, bias1=bias1, scale2=scale2, bias2=bias2,
        wfc1k=w_fc1.reshape(C2, S * K1),       # row c, col s*K1 + k
        b_fc1=b_fc1, w_fc2=w_fc2, b_fc2=b_fc2,
        dropout_key=jax.random.PRNGKey(1234),
    )


def net_forward(x_nchw, p):
    """x_nchw: (N, 1, H, W) float32, same layout as the PyTorch module."""
    N, Cin, H, W = x_nchw.shape
    assert Cin == 1 and H % 4 == 0 and W % 4 == 0
    C1 = p["w1m"].shape[1]
    C2 = p["w2m"].shape[1]
    K1 = p["b_fc1"].shape[1]
    K2 = p["b_fc2"].shape[1]
    S = (H // 4) * (W // 4)

    x = x_nchw.reshape(N, H, W, 1)          # NCHW == NHWC when Cin == 1
    keep = jax.random.bernoulli(p["dropout_key"], 0.5, (N, 1, K1))
    mask = keep.astype(jnp.float32) * 2.0   # inverted dropout, p = 0.5

    def full(shape):
        return pl.BlockSpec(shape, lambda n, _s=shape: (0,) * len(_s))

    out = pl.pallas_call(
        _net_fused_kernel,
        out_shape=jax.ShapeDtypeStruct((N, 1, K2), jnp.float32),
        grid=(N,),
        in_specs=[
            pl.BlockSpec((1, H, W, 1), lambda n: (n, 0, 0, 0)),   # image
            full((9, C1)), full((1, C1)), full((1, C1)),          # conv1 / BN1
            full((9 * C1, C2)), full((1, C2)), full((1, C2)),     # conv2 / BN2
            full((C2, S * K1)), full((1, K1)),                    # fcn
            full((K1, K2)), full((1, K2)),                        # fcn2
            pl.BlockSpec((1, 1, K1), lambda n: (n, 0, 0)),        # dropout mask
        ],
        out_specs=pl.BlockSpec((1, 1, K2), lambda n: (n, 0, 0)),
        compiler_params=pltpu.CompilerParams(
            # Images are independent: shard the batch across v7x's two
            # TensorCores; on single-TC v5e/v6e this is a harmless serial loop.
            dimension_semantics=("parallel",)),
    )(x, p["w1m"], p["scale1"], p["bias1"],
      p["w2m"], p["scale2"], p["bias2"],
      p["wfc1k"], p["b_fc1"], p["w_fc2"], p["b_fc2"], mask)
    return out.reshape(N, K2)


if __name__ == "__main__":
    N, H, W = 2, 16, 16
    key = jax.random.PRNGKey(0)
    kp, kx = jax.random.split(key)
    params = init_params(kp, H, W)
    x = jax.random.normal(kx, (N, 1, H, W), jnp.float32)   # NCHW, like PyTorch
    out = net_forward(x, params)
    jax.block_until_ready(out)
    assert out.shape == (N, 2), out.shape
    assert bool(jnp.all(jnp.isfinite(out)))
    print("KERNEL_OK")
</pallas_src>

<mosaic_0001>
module attributes {stable_mosaic.version = 11 : i64} {
  func.func @_net_fused_kernel(%arg0: i32, %arg1: memref<1x16x16x1xf32, #tpu.memory_space<vmem>>, %arg2: memref<9x4xf32, #tpu.memory_space<vmem>>, %arg3: memref<1x4xf32, #tpu.memory_space<vmem>>, %arg4: memref<1x4xf32, #tpu.memory_space<vmem>>, %arg5: memref<36x8xf32, #tpu.memory_space<vmem>>, %arg6: memref<1x8xf32, #tpu.memory_space<vmem>>, %arg7: memref<1x8xf32, #tpu.memory_space<vmem>>, %arg8: memref<8x160xf32, #tpu.memory_space<vmem>>, %arg9: memref<1x10xf32, #tpu.memory_space<vmem>>, %arg10: memref<10x2xf32, #tpu.memory_space<vmem>>, %arg11: memref<1x2xf32, #tpu.memory_space<vmem>>, %arg12: memref<1x1x10xf32, #tpu.memory_space<vmem>>, %arg13: memref<1x1x2xf32, #tpu.memory_space<vmem>>) attributes {dimension_semantics = [#tpu.dimension_semantics<parallel>], iteration_bounds = array<i64: 2>, scalar_prefetch = 0 : i64, scratch_operands = 0 : i64, tpu.core_type = #tpu.core_type<tc>, window_params = [{transform_indices = @transform_0, window_bounds = array<i64: 1, 16, 16, 1>}, {pipeline_mode = #tpu.pipeline_mode<synchronous>, transform_indices = @transform_1, window_bounds = array<i64: 9, 4>}, {pipeline_mode = #tpu.pipeline_mode<synchronous>, transform_indices = @transform_2, window_bounds = array<i64: 1, 4>}, {pipeline_mode = #tpu.pipeline_mode<synchronous>, transform_indices = @transform_3, window_bounds = array<i64: 1, 4>}, {pipeline_mode = #tpu.pipeline_mode<synchronous>, transform_indices = @transform_4, window_bounds = array<i64: 36, 8>}, {pipeline_mode = #tpu.pipeline_mode<synchronous>, transform_indices = @transform_5, window_bounds = array<i64: 1, 8>}, {pipeline_mode = #tpu.pipeline_mode<synchronous>, transform_indices = @transform_6, window_bounds = array<i64: 1, 8>}, {pipeline_mode = #tpu.pipeline_mode<synchronous>, transform_indices = @transform_7, window_bounds = array<i64: 8, 160>}, {pipeline_mode = #tpu.pipeline_mode<synchronous>, transform_indices = @transform_8, window_bounds = array<i64: 1, 10>}, {pipeline_mode = #tpu.pipeline_mode<synchronous>, transform_indices = @transform_9, window_bounds = array<i64: 10, 2>}, {pipeline_mode = #tpu.pipeline_mode<synchronous>, transform_indices = @transform_10, window_bounds = array<i64: 1, 2>}, {transform_indices = @transform_11, window_bounds = array<i64: 1, 1, 10>}, {transform_indices = @transform_12, window_bounds = array<i64: 1, 1, 2>}]} {
    %c0 = arith.constant 0 : index
    %c0_0 = arith.constant 0 : index
    %0 = vector.load %arg2[%c0, %c0_0] : memref<9x4xf32, #tpu.memory_space<vmem>>, vector<9x4xf32>
    %c0_1 = arith.constant 0 : index
    %c0_2 = arith.constant 0 : index
    %1 = vector.load %arg5[%c0_1, %c0_2] : memref<36x8xf32, #tpu.memory_space<vmem>>, vector<36x8xf32>
    %c0_3 = arith.constant 0 : index
    %c0_4 = arith.constant 0 : index
    %2 = vector.load %arg3[%c0_3, %c0_4] : memref<1x4xf32, #tpu.memory_space<vmem>>, vector<1x4xf32>
    %3 = vector.shape_cast %2 : vector<1x4xf32> to vector<1x4xf32>
    %4 = vector.broadcast %3 : vector<1x4xf32> to vector<32x4xf32>
    %c0_5 = arith.constant 0 : index
    %c0_6 = arith.constant 0 : index
    %5 = vector.load %arg4[%c0_5, %c0_6] : memref<1x4xf32, #tpu.memory_space<vmem>>, vector<1x4xf32>
    %6 = vector.shape_cast %5 : vector<1x4xf32> to vector<1x4xf32>
    %7 = vector.broadcast %6 : vector<1x4xf32> to vector<32x4xf32>
    %c0_7 = arith.constant 0 : index
    %c0_8 = arith.constant 0 : index
    %8 = vector.load %arg6[%c0_7, %c0_8] : memref<1x8xf32, #tpu.memory_space<vmem>>, vector<1x8xf32>
    %9 = vector.shape_cast %8 : vector<1x8xf32> to vector<1x8xf32>
    %10 = vector.broadcast %9 : vector<1x8xf32> to vector<16x8xf32>
    %c0_9 = arith.constant 0 : index
    %c0_10 = arith.constant 0 : index
    %11 = vector.load %arg7[%c0_9, %c0_10] : memref<1x8xf32, #tpu.memory_space<vmem>>, vector<1x8xf32>
    %12 = vector.shape_cast %11 : vector<1x8xf32> to vector<1x8xf32>
    %13 = vector.broadcast %12 : vector<1x8xf32> to vector<16x8xf32>
    %14 = tpu.iota {dimensions = array<i32: 0>} : vector<8x16xi32>
    %15 = tpu.iota {dimensions = array<i32: 1>} : vector<8x16xi32>
    %c2_i32 = arith.constant 2 : i32
    %16 = vector.broadcast %c2_i32 : i32 to vector<8x16xi32>
    %17 = arith.muli %16, %14 : vector<8x16xi32>
    %18 = arith.cmpi eq, %15, %17 : vector<8x16xi32>
    %19 = arith.extui %18 : vector<8x16xi1> to vector<8x16xi32>
    %20 = arith.sitofp %19 : vector<8x16xi32> to vector<8x16xf32>
    %c2_i32_11 = arith.constant 2 : i32
    %21 = vector.broadcast %c2_i32_11 : i32 to vector<8x16xi32>
    %22 = arith.muli %21, %14 : vector<8x16xi32>
    %c1_i32 = arith.constant 1 : i32
    %23 = vector.broadcast %c1_i32 : i32 to vector<8x16xi32>
    %24 = arith.addi %22, %23 : vector<8x16xi32>
    %25 = arith.cmpi eq, %15, %24 : vector<8x16xi32>
    %26 = arith.extui %25 : vector<8x16xi1> to vector<8x16xi32>
    %27 = arith.sitofp %26 : vector<8x16xi32> to vector<8x16xf32>
    %28 = tpu.iota {dimensions = array<i32: 0>} : vector<4x8xi32>
    %29 = tpu.iota {dimensions = array<i32: 1>} : vector<4x8xi32>
    %c2_i32_12 = arith.constant 2 : i32
    %30 = vector.broadcast %c2_i32_12 : i32 to vector<4x8xi32>
    %31 = arith.muli %30, %28 : vector<4x8xi32>
    %32 = arith.cmpi eq, %29, %31 : vector<4x8xi32>
    %33 = arith.extui %32 : vector<4x8xi1> to vector<4x8xi32>
    %34 = arith.sitofp %33 : vector<4x8xi32> to vector<4x8xf32>
    %c2_i32_13 = arith.constant 2 : i32
    %35 = vector.broadcast %c2_i32_13 : i32 to vector<4x8xi32>
    %36 = arith.muli %35, %28 : vector<4x8xi32>
    %c1_i32_14 = arith.constant 1 : i32
    %37 = vector.broadcast %c1_i32_14 : i32 to vector<4x8xi32>
    %38 = arith.addi %36, %37 : vector<4x8xi32>
    %39 = arith.cmpi eq, %29, %38 : vector<4x8xi32>
    %40 = arith.extui %39 : vector<4x8xi1> to vector<4x8xi32>
    %41 = arith.sitofp %40 : vector<4x8xi32> to vector<4x8xf32>
    %c0_15 = arith.constant 0 : index
    %c0_16 = arith.constant 0 : index
    %c0_17 = arith.constant 0 : index
    %c0_18 = arith.constant 0 : index
    %42 = vector.load %arg1[%c0_15, %c0_16, %c0_17, %c0_18] : memref<1x16x16x1xf32, #tpu.memory_space<vmem>>, vector<1x16x16x1xf32>
    %43 = vector.shape_cast %42 : vector<1x16x16x1xf32> to vector<16x16x1xf32>
    %cst = arith.constant 0.000000e+00 : f32
    %44 = vector.broadcast %cst : f32 to vector<1x16x1xf32>
    %45 = tpu.concatenate %44, %43, %44 in 0 : vector<1x16x1xf32>, vector<16x16x1xf32>, vector<1x16x1xf32> -> vector<18x16x1xf32>
    %cst_19 = arith.constant 0.000000e+00 : f32
    %46 = vector.broadcast %cst_19 : f32 to vector<18x1x1xf32>
    %47 = tpu.concatenate %46, %45, %46 in 1 : vector<18x1x1xf32>, vector<18x16x1xf32>, vector<18x1x1xf32> -> vector<18x18x1xf32>
    %48 = vector.extract_strided_slice %47 {offsets = [0, 0, 0], sizes = [1, 16, 1], strides = [1, 1, 1]} : vector<18x18x1xf32> to vector<1x16x1xf32>
    %49 = vector.shape_cast %48 : vector<1x16x1xf32> to vector<16x1xf32>
    %50 = vector.extract_strided_slice %47 {offsets = [1, 0, 0], sizes = [1, 16, 1], strides = [1, 1, 1]} : vector<18x18x1xf32> to vector<1x16x1xf32>
    %51 = vector.shape_cast %50 : vector<1x16x1xf32> to vector<16x1xf32>
    %52 = tpu.concatenate %49, %51 in 0 : vector<16x1xf32>, vector<16x1xf32> -> vector<32x1xf32>
    %53 = vector.extract_strided_slice %47 {offsets = [0, 1, 0], sizes = [1, 16, 1], strides = [1, 1, 1]} : vector<18x18x1xf32> to vector<1x16x1xf32>
    %54 = vector.shape_cast %53 : vector<1x16x1xf32> to vector<16x1xf32>
    %55 = vector.extract_strided_slice %47 {offsets = [1, 1, 0], sizes = [1, 16, 1], strides = [1, 1, 1]} : vector<18x18x1xf32> to vector<1x16x1xf32>
    %56 = vector.shape_cast %55 : vector<1x16x1xf32> to vector<16x1xf32>
    %57 = tpu.concatenate %54, %56 in 0 : vector<16x1xf32>, vector<16x1xf32> -> vector<32x1xf32>
    %58 = vector.extract_strided_slice %47 {offsets = [0, 2, 0], sizes = [1, 16, 1], strides = [1, 1, 1]} : vector<18x18x1xf32> to vector<1x16x1xf32>
    %59 = vector.shape_cast %58 : vector<1x16x1xf32> to vector<16x1xf32>
    %60 = vector.extract_strided_slice %47 {offsets = [1, 2, 0], sizes = [1, 16, 1], strides = [1, 1, 1]} : vector<18x18x1xf32> to vector<1x16x1xf32>
    %61 = vector.shape_cast %60 : vector<1x16x1xf32> to vector<16x1xf32>
    %62 = tpu.concatenate %59, %61 in 0 : vector<16x1xf32>, vector<16x1xf32> -> vector<32x1xf32>
    %63 = vector.extract_strided_slice %47 {offsets = [1, 0, 0], sizes = [1, 16, 1], strides = [1, 1, 1]} : vector<18x18x1xf32> to vector<1x16x1xf32>
    %64 = vector.shape_cast %63 : vector<1x16x1xf32> to vector<16x1xf32>
    %65 = vector.extract_strided_slice %47 {offsets = [2, 0, 0], sizes = [1, 16, 1], strides = [1, 1, 1]} : vector<18x18x1xf32> to vector<1x16x1xf32>
    %66 = vector.shape_cast %65 : vector<1x16x1xf32> to vector<16x1xf32>
    %67 = tpu.concatenate %64, %66 in 0 : vector<16x1xf32>, vector<16x1xf32> -> vector<32x1xf32>
    %68 = vector.extract_strided_slice %47 {offsets = [1, 1, 0], sizes = [1, 16, 1], strides = [1, 1, 1]} : vector<18x18x1xf32> to vector<1x16x1xf32>
    %69 = vector.shape_cast %68 : vector<1x16x1xf32> to vector<16x1xf32>
    %70 = vector.extract_strided_slice %47 {offsets = [2, 1, 0], sizes = [1, 16, 1], strides = [1, 1, 1]} : vector<18x18x1xf32> to vector<1x16x1xf32>
    %71 = vector.shape_cast %70 : vector<1x16x1xf32> to vector<16x1xf32>
    %72 = tpu.concatenate %69, %71 in 0 : vector<16x1xf32>, vector<16x1xf32> -> vector<32x1xf32>
    %73 = vector.extract_strided_slice %47 {offsets = [1, 2, 0], sizes = [1, 16, 1], strides = [1, 1, 1]} : vector<18x18x1xf32> to vector<1x16x1xf32>
    %74 = vector.shape_cast %73 : vector<1x16x1xf32> to vector<16x1xf32>
    %75 = vector.extract_strided_slice %47 {offsets = [2, 2, 0], sizes = [1, 16, 1], strides = [1, 1, 1]} : vector<18x18x1xf32> to vector<1x16x1xf32>
    %76 = vector.shape_cast %75 : vector<1x16x1xf32> to vector<16x1xf32>
    %77 = tpu.concatenate %74, %76 in 0 : vector<16x1xf32>, vector<16x1xf32> -> vector<32x1xf32>
    %78 = vector.extract_strided_slice %47 {offsets = [2, 0, 0], sizes = [1, 16, 1], strides = [1, 1, 1]} : vector<18x18x1xf32> to vector<1x16x1xf32>
    %79 = vector.shape_cast %78 : vector<1x16x1xf32> to vector<16x1xf32>
    %80 = vector.extract_strided_slice %47 {offsets = [3, 0, 0], sizes = [1, 16, 1], strides = [1, 1, 1]} : vector<18x18x1xf32> to vector<1x16x1xf32>
    %81 = vector.shape_cast %80 : vector<1x16x1xf32> to vector<16x1xf32>
    %82 = tpu.concatenate %79, %81 in 0 : vector<16x1xf32>, vector<16x1xf32> -> vector<32x1xf32>
    %83 = vector.extract_strided_slice %47 {offsets = [2, 1, 0], sizes = [1, 16, 1], strides = [1, 1, 1]} : vector<18x18x1xf32> to vector<1x16x1xf32>
    %84 = vector.shape_cast %83 : vector<1x16x1xf32> to vector<16x1xf32>
    %85 = vector.extract_strided_slice %47 {offsets = [3, 1, 0], sizes = [1, 16, 1], strides = [1, 1, 1]} : vector<18x18x1xf32> to vector<1x16x1xf32>
    %86 = vector.shape_cast %85 : vector<1x16x1xf32> to vector<16x1xf32>
    %87 = tpu.concatenate %84, %86 in 0 : vector<16x1xf32>, vector<16x1xf32> -> vector<32x1xf32>
    %88 = vector.extract_strided_slice %47 {offsets = [2, 2, 0], sizes = [1, 16, 1], strides = [1, 1, 1]} : vector<18x18x1xf32> to vector<1x16x1xf32>
    %89 = vector.shape_cast %88 : vector<1x16x1xf32> to vector<16x1xf32>
    %90 = vector.extract_strided_slice %47 {offsets = [3, 2, 0], sizes = [1, 16, 1], strides = [1, 1, 1]} : vector<18x18x1xf32> to vector<1x16x1xf32>
    %91 = vector.shape_cast %90 : vector<1x16x1xf32> to vector<16x1xf32>
    %92 = tpu.concatenate %89, %91 in 0 : vector<16x1xf32>, vector<16x1xf32> -> vector<32x1xf32>
    %93 = tpu.concatenate %52, %57, %62, %67, %72, %77, %82, %87, %92 in 1 : vector<32x1xf32>, vector<32x1xf32>, vector<32x1xf32>, vector<32x1xf32>, vector<32x1xf32>, vector<32x1xf32>, vector<32x1xf32>, vector<32x1xf32>, vector<32x1xf32> -> vector<32x9xf32>
    %cst_20 = arith.constant dense<0.000000e+00> : vector<32x4xf32>
    %94 = tpu.matmul %93, %0, %cst_20 {dimension_numbers = #tpu.dot_dimension_numbers<[1], [0], [0], [1], [0, 0, 1, 1], [], []>} : vector<32x9xf32>, vector<9x4xf32>, vector<32x4xf32> -> vector<32x4xf32>
    %95 = arith.mulf %94, %4 : vector<32x4xf32>
    %96 = arith.addf %95, %7 : vector<32x4xf32>
    %cst_21 = arith.constant 0.000000e+00 : f32
    %97 = vector.broadcast %cst_21 : f32 to vector<32x4xf32>
    %98 = arith.maximumf %96, %97 : vector<32x4xf32>
    %99 = vector.extract_strided_slice %98 {offsets = [0, 0], sizes = [16, 4], strides = [1, 1]} : vector<32x4xf32> to vector<16x4xf32>
    %100 = vector.extract_strided_slice %98 {offsets = [16, 0], sizes = [16, 4], strides = [1, 1]} : vector<32x4xf32> to vector<16x4xf32>
    %101 = arith.maximumf %99, %100 : vector<16x4xf32>
    %cst_22 = arith.constant dense<0.000000e+00> : vector<8x4xf32>
    %102 = tpu.matmul %20, %101, %cst_22 {dimension_numbers = #tpu.dot_dimension_numbers<[1], [0], [0], [1], [0, 0, 1, 1], [], []>} : vector<8x16xf32>, vector<16x4xf32>, vector<8x4xf32> -> vector<8x4xf32>
    %cst_23 = arith.constant dense<0.000000e+00> : vector<8x4xf32>
    %103 = tpu.matmul %27, %101, %cst_23 {dimension_numbers = #tpu.dot_dimension_numbers<[1], [0], [0], [1], [0, 0, 1, 1], [], []>} : vector<8x16xf32>, vector<16x4xf32>, vector<8x4xf32> -> vector<8x4xf32>
    %104 = arith.maximumf %102, %103 : vector<8x4xf32>
    %105 = vector.extract_strided_slice %47 {offsets = [2, 0, 0], sizes = [1, 16, 1], strides = [1, 1, 1]} : vector<18x18x1xf32> to vector<1x16x1xf32>
    %106 = vector.shape_cast %105 : vector<1x16x1xf32> to vector<16x1xf32>
    %107 = vector.extract_strided_slice %47 {offsets = [3, 0, 0], sizes = [1, 16, 1], strides = [1, 1, 1]} : vector<18x18x1xf32> to vector<1x16x1xf32>
    %108 = vector.shape_cast %107 : vector<1x16x1xf32> to vector<16x1xf32>
    %109 = tpu.concatenate %106, %108 in 0 : vector<16x1xf32>, vector<16x1xf32> -> vector<32x1xf32>
    %110 = vector.extract_strided_slice %47 {offsets = [2, 1, 0], sizes = [1, 16, 1], strides = [1, 1, 1]} : vector<18x18x1xf32> to vector<1x16x1xf32>
    %111 = vector.shape_cast %110 : vector<1x16x1xf32> to vector<16x1xf32>
    %112 = vector.extract_strided_slice %47 {offsets = [3, 1, 0], sizes = [1, 16, 1], strides = [1, 1, 1]} : vector<18x18x1xf32> to vector<1x16x1xf32>
    %113 = vector.shape_cast %112 : vector<1x16x1xf32> to vector<16x1xf32>
    %114 = tpu.concatenate %111, %113 in 0 : vector<16x1xf32>, vector<16x1xf32> -> vector<32x1xf32>
    %115 = vector.extract_strided_slice %47 {offsets = [2, 2, 0], sizes = [1, 16, 1], strides = [1, 1, 1]} : vector<18x18x1xf32> to vector<1x16x1xf32>
    %116 = vector.shape_cast %115 : vector<1x16x1xf32> to vector<16x1xf32>
    %117 = vector.extract_strided_slice %47 {offsets = [3, 2, 0], sizes = [1, 16, 1], strides = [1, 1, 1]} : vector<18x18x1xf32> to vector<1x16x1xf32>
    %118 = vector.shape_cast %117 : vector<1x16x1xf32> to vector<16x1xf32>
    %119 = tpu.concatenate %116, %118 in 0 : vector<16x1xf32>, vector<16x1xf32> -> vector<32x1xf32>
    %120 = vector.extract_strided_slice %47 {offsets = [3, 0, 0], sizes = [1, 16, 1], strides = [1, 1, 1]} : vector<18x18x1xf32> to vector<1x16x1xf32>
    %121 = vector.shape_cast %120 : vector<1x16x1xf32> to vector<16x1xf32>
    %122 = vector.extract_strided_slice %47 {offsets = [4, 0, 0], sizes = [1, 16, 1], strides = [1, 1, 1]} : vector<18x18x1xf32> to vector<1x16x1xf32>
    %123 = vector.shape_cast %122 : vector<1x16x1xf32> to vector<16x1xf32>
    %124 = tpu.concatenate %121, %123 in 0 : vector<16x1xf32>, vector<16x1xf32> -> vector<32x1xf32>
    %125 = vector.extract_strided_slice %47 {offsets = [3, 1, 0], sizes = [1, 16, 1], strides = [1, 1, 1]} : vector<18x18x1xf32> to vector<1x16x1xf32>
    %126 = vector.shape_cast %125 : vector<1x16x1xf32> to vector<16x1xf32>
    %127 = vector.extract_strided_slice %47 {offsets = [4, 1, 0], sizes = [1, 16, 1], strides = [1, 1, 1]} : vector<18x18x1xf32> to vector<1x16x1xf32>
    %128 = vector.shape_cast %127 : vector<1x16x1xf32> to vector<16x1xf32>
    %129 = tpu.concatenate %126, %128 in 0 : vector<16x1xf32>, vector<16x1xf32> -> vector<32x1xf32>
    %130 = vector.extract_strided_slice %47 {offsets = [3, 2, 0], sizes = [1, 16, 1], strides = [1, 1, 1]} : vector<18x18x1xf32> to vector<1x16x1xf32>
    %131 = vector.shape_cast %130 : vector<1x16x1xf32> to vector<16x1xf32>
    %132 = vector.extract_strided_slice %47 {offsets = [4, 2, 0], sizes = [1, 16, 1], strides = [1, 1, 1]} : vector<18x18x1xf32> to vector<1x16x1xf32>
    %133 = vector.shape_cast %132 : vector<1x16x1xf32> to vector<16x1xf32>
    %134 = tpu.concatenate %131, %133 in 0 : vector<16x1xf32>, vector<16x1xf32> -> vector<32x1xf32>
    %135 = vector.extract_strided_slice %47 {offsets = [4, 0, 0], sizes = [1, 16, 1], strides = [1, 1, 1]} : vector<18x18x1xf32> to vector<1x16x1xf32>
    %136 = vector.shape_cast %135 : vector<1x16x1xf32> to vector<16x1xf32>
    %137 = vector.extract_strided_slice %47 {offsets = [5, 0, 0], sizes = [1, 16, 1], strides = [1, 1, 1]} : vector<18x18x1xf32> to vector<1x16x1xf32>
    %138 = vector.shape_cast %137 : vector<1x16x1xf32> to vector<16x1xf32>
    %139 = tpu.concatenate %136, %138 in 0 : vector<16x1xf32>, vector<16x1xf32> -> vector<32x1xf32>
    %140 = vector.extract_strided_slice %47 {offsets = [4, 1, 0], sizes = [1, 16, 1], strides = [1, 1, 1]} : vector<18x18x1xf32> to vector<1x16x1xf32>
    %141 = vector.shape_cast %140 : vector<1x16x1xf32> to vector<16x1xf32>
    %142 = vector.extract_strided_slice %47 {offsets = [5, 1, 0], sizes = [1, 16, 1], strides = [1, 1, 1]} : vector<18x18x1xf32> to vector<1x16x1xf32>
    %143 = vector.shape_cast %142 : vector<1x16x1xf32> to vector<16x1xf32>
    %144 = tpu.concatenate %141, %143 in 0 : vector<16x1xf32>, vector<16x1xf32> -> vector<32x1xf32>
    %145 = vector.extract_strided_slice %47 {offsets = [4, 2, 0], sizes = [1, 16, 1], strides = [1, 1, 1]} : vector<18x18x1xf32> to vector<1x16x1xf32>
    %146 = vector.shape_cast %145 : vector<1x16x1xf32> to vector<16x1xf32>
    %147 = vector.extract_strided_slice %47 {offsets = [5, 2, 0], sizes = [1, 16, 1], strides = [1, 1, 1]} : vector<18x18x1xf32> to vector<1x16x1xf32>
    %148 = vector.shape_cast %147 : vector<1x16x1xf32> to vector<16x1xf32>
    %149 = tpu.concatenate %146, %148 in 0 : vector<16x1xf32>, vector<16x1xf32> -> vector<32x1xf32>
    %150 = tpu.concatenate %109, %114, %119, %124, %129, %134, %139, %144, %149 in 1 : vector<32x1xf32>, vector<32x1xf32>, vector<32x1xf32>, vector<32x1xf32>, vector<32x1xf32>, vector<32x1xf32>, vector<32x1xf32>, vector<32x1xf32>, vector<32x1xf32> -> vector<32x9xf32>
    %cst_24 = arith.constant dense<0.000000e+00> : vector<32x4xf32>
    %151 = tpu.matmul %150, %0, %cst_24 {dimension_numbers = #tpu.dot_dimension_numbers<[1], [0], [0], [1], [0, 0, 1, 1], [], []>} : vector<32x9xf32>, vector<9x4xf32>, vector<32x4xf32> -> vector<32x4xf32>
    %152 = arith.mulf %151, %4 : vector<32x4xf32>
    %153 = arith.addf %152, %7 : vector<32x4xf32>
    %cst_25 = arith.constant 0.000000e+00 : f32
    %154 = vector.broadcast %cst_25 : f32 to vector<32x4xf32>
    %155 = arith.maximumf %153, %154 : vector<32x4xf32>
    %156 = vector.extract_strided_slice %155 {offsets = [0, 0], sizes = [16, 4], strides = [1, 1]} : vector<32x4xf32> to vector<16x4xf32>
    %157 = vector.extract_strided_slice %155 {offsets = [16, 0], sizes = [16, 4], strides = [1, 1]} : vector<32x4xf32> to vector<16x4xf32>
    %158 = arith.maximumf %156, %157 : vector<16x4xf32>
    %cst_26 = arith.constant dense<0.000000e+00> : vector<8x4xf32>
    %159 = tpu.matmul %20, %158, %cst_26 {dimension_numbers = #tpu.dot_dimension_numbers<[1], [0], [0], [1], [0, 0, 1, 1], [], []>} : vector<8x16xf32>, vector<16x4xf32>, vector<8x4xf32> -> vector<8x4xf32>
    %cst_27 = arith.constant dense<0.000000e+00> : vector<8x4xf32>
    %160 = tpu.matmul %27, %158, %cst_27 {dimension_numbers = #tpu.dot_dimension_numbers<[1], [0], [0], [1], [0, 0, 1, 1], [], []>} : vector<8x16xf32>, vector<16x4xf32>, vector<8x4xf32> -> vector<8x4xf32>
    %161 = arith.maximumf %159, %160 : vector<8x4xf32>
    %162 = vector.extract_strided_slice %47 {offsets = [4, 0, 0], sizes = [1, 16, 1], strides = [1, 1, 1]} : vector<18x18x1xf32> to vector<1x16x1xf32>
    %163 = vector.shape_cast %162 : vector<1x16x1xf32> to vector<16x1xf32>
    %164 = vector.extract_strided_slice %47 {offsets = [5, 0, 0], sizes = [1, 16, 1], strides = [1, 1, 1]} : vector<18x18x1xf32> to vector<1x16x1xf32>
    %165 = vector.shape_cast %164 : vector<1x16x1xf32> to vector<16x1xf32>
    %166 = tpu.concatenate %163, %165 in 0 : vector<16x1xf32>, vector<16x1xf32> -> vector<32x1xf32>
    %167 = vector.extract_strided_slice %47 {offsets = [4, 1, 0], sizes = [1, 16, 1], strides = [1, 1, 1]} : vector<18x18x1xf32> to vector<1x16x1xf32>
    %168 = vector.shape_cast %167 : vector<1x16x1xf32> to vector<16x1xf32>
    %169 = vector.extract_strided_slice %47 {offsets = [5, 1, 0], sizes = [1, 16, 1], strides = [1, 1, 1]} : vector<18x18x1xf32> to vector<1x16x1xf32>
    %170 = vector.shape_cast %169 : vector<1x16x1xf32> to vector<16x1xf32>
    %171 = tpu.concatenate %168, %170 in 0 : vector<16x1xf32>, vector<16x1xf32> -> vector<32x1xf32>
    %172 = vector.extract_strided_slice %47 {offsets = [4, 2, 0], sizes = [1, 16, 1], strides = [1, 1, 1]} : vector<18x18x1xf32> to vector<1x16x1xf32>
    %173 = vector.shape_cast %172 : vector<1x16x1xf32> to vector<16x1xf32>
    %174 = vector.extract_strided_slice %47 {offsets = [5, 2, 0], sizes = [1, 16, 1], strides = [1, 1, 1]} : vector<18x18x1xf32> to vector<1x16x1xf32>
    %175 = vector.shape_cast %174 : vector<1x16x1xf32> to vector<16x1xf32>
    %176 = tpu.concatenate %173, %175 in 0 : vector<16x1xf32>, vector<16x1xf32> -> vector<32x1xf32>
    %177 = vector.extract_strided_slice %47 {offsets = [5, 0, 0], sizes = [1, 16, 1], strides = [1, 1, 1]} : vector<18x18x1xf32> to vector<1x16x1xf32>
    %178 = vector.shape_cast %177 : vector<1x16x1xf32> to vector<16x1xf32>
    %179 = vector.extract_strided_slice %47 {offsets = [6, 0, 0], sizes = [1, 16, 1], strides = [1, 1, 1]} : vector<18x18x1xf32> to vector<1x16x1xf32>
    %180 = vector.shape_cast %179 : vector<1x16x1xf32> to vector<16x1xf32>
    %181 = tpu.concatenate %178, %180 in 0 : vector<16x1xf32>, vector<16x1xf32> -> vector<32x1xf32>
    %182 = vector.extract_strided_slice %47 {offsets = [5, 1, 0], sizes = [1, 16, 1], strides = [1, 1, 1]} : vector<18x18x1xf32> to vector<1x16x1xf32>
    %183 = vector.shape_cast %182 : vector<1x16x1xf32> to vector<16x1xf32>
    %184 = vector.extract_strided_slice %47 {offsets = [6, 1, 0], sizes = [1, 16, 1], strides = [1, 1, 1]} : vector<18x18x1xf32> to vector<1x16x1xf32>
    %185 = vector.shape_cast %184 : vector<1x16x1xf32> to vector<16x1xf32>
    %186 = tpu.concatenate %183, %185 in 0 : vector<16x1xf32>, vector<16x1xf32> -> vector<32x1xf32>
    %187 = vector.extract_strided_slice %47 {offsets = [5, 2, 0], sizes = [1, 16, 1], strides = [1, 1, 1]} : vector<18x18x1xf32> to vector<1x16x1xf32>
    %188 = vector.shape_cast %187 : vector<1x16x1xf32> to vector<16x1xf32>
    %189 = vector.extract_strided_slice %47 {offsets = [6, 2, 0], sizes = [1, 16, 1], strides = [1, 1, 1]} : vector<18x18x1xf32> to vector<1x16x1xf32>
    %190 = vector.shape_cast %189 : vector<1x16x1xf32> to vector<16x1xf32>
    %191 = tpu.concatenate %188, %190 in 0 : vector<16x1xf32>, vector<16x1xf32> -> vector<32x1xf32>
    %192 = vector.extract_strided_slice %47 {offsets = [6, 0, 0], sizes = [1, 16, 1], strides = [1, 1, 1]} : vector<18x18x1xf32> to vector<1x16x1xf32>
    %193 = vector.shape_cast %192 : vector<1x16x1xf32> to vector<16x1xf32>
    %194 = vector.extract_strided_slice %47 {offsets = [7, 0, 0], sizes = [1, 16, 1], strides = [1, 1, 1]} : vector<18x18x1xf32> to vector<1x16x1xf32>
    %195 = vector.shape_cast %194 : vector<1x16x1xf32> to vector<16x1xf32>
    %196 = tpu.concatenate %193, %195 in 0 : vector<16x1xf32>, vector<16x1xf32> -> vector<32x1xf32>
    %197 = vector.extract_strided_slice %47 {offsets = [6, 1, 0], sizes = [1, 16, 1], strides = [1, 1, 1]} : vector<18x18x1xf32> to vector<1x16x1xf32>
    %198 = vector.shape_cast %197 : vector<1x16x1xf32> to vector<16x1xf32>
    %199 = vector.extract_strided_slice %47 {offsets = [7, 1, 0], sizes = [1, 16, 1], strides = [1, 1, 1]} : vector<18x18x1xf32> to vector<1x16x1xf32>
    %200 = vector.shape_cast %199 : vector<1x16x1xf32> to vector<16x1xf32>
    %201 = tpu.concatenate %198, %200 in 0 : vector<16x1xf32>, vector<16x1xf32> -> vector<32x1xf32>
    %202 = vector.extract_strided_slice %47 {offsets = [6, 2, 0], sizes = [1, 16, 1], strides = [1, 1, 1]} : vector<18x18x1xf32> to vector<1x16x1xf32>
    %203 = vector.shape_cast %202 : vector<1x16x1xf32> to vector<16x1xf32>
    %204 = vector.extract_strided_slice %47 {offsets = [7, 2, 0], sizes = [1, 16, 1], strides = [1, 1, 1]} : vector<18x18x1xf32> to vector<1x16x1xf32>
    %205 = vector.shape_cast %204 : vector<1x16x1xf32> to vector<16x1xf32>
    %206 = tpu.concatenate %203, %205 in 0 : vector<16x1xf32>, vector<16x1xf32> -> vector<32x1xf32>
    %207 = tpu.concatenate %166, %171, %176, %181, %186, %191, %196, %201, %206 in 1 : vector<32x1xf32>, vector<32x1xf32>, vector<32x1xf32>, vector<32x1xf32>, vector<32x1xf32>, vector<32x1xf32>, vector<32x1xf32>, vector<32x1xf32>, vector<32x1xf32> -> vector<32x9xf32>
    %cst_28 = arith.constant dense<0.000000e+00> : vector<32x4xf32>
    %208 = tpu.matmul %207, %0, %cst_28 {dimension_numbers = #tpu.dot_dimension_numbers<[1], [0], [0], [1], [0, 0, 1, 1], [], []>} : vector<32x9xf32>, vector<9x4xf32>, vector<32x4xf32> -> vector<32x4xf32>
    %209 = arith.mulf %208, %4 : vector<32x4xf32>
    %210 = arith.addf %209, %7 : vector<32x4xf32>
    %cst_29 = arith.constant 0.000000e+00 : f32
    %211 = vector.broadcast %cst_29 : f32 to vector<32x4xf32>
    %212 = arith.maximumf %210, %211 : vector<32x4xf32>
    %213 = vector.extract_strided_slice %212 {offsets = [0, 0], sizes = [16, 4], strides = [1, 1]} : vector<32x4xf32> to vector<16x4xf32>
    %214 = vector.extract_strided_slice %212 {offsets = [16, 0], sizes = [16, 4], strides = [1, 1]} : vector<32x4xf32> to vector<16x4xf32>
    %215 = arith.maximumf %213, %214 : vector<16x4xf32>
    %cst_30 = arith.constant dense<0.000000e+00> : vector<8x4xf32>
    %216 = tpu.matmul %20, %215, %cst_30 {dimension_numbers = #tpu.dot_dimension_numbers<[1], [0], [0], [1], [0, 0, 1, 1], [], []>} : vector<8x16xf32>, vector<16x4xf32>, vector<8x4xf32> -> vector<8x4xf32>
    %cst_31 = arith.constant dense<0.000000e+00> : vector<8x4xf32>
    %217 = tpu.matmul %27, %215, %cst_31 {dimension_numbers = #tpu.dot_dimension_numbers<[1], [0], [0], [1], [0, 0, 1, 1], [], []>} : vector<8x16xf32>, vector<16x4xf32>, vector<8x4xf32> -> vector<8x4xf32>
    %218 = arith.maximumf %216, %217 : vector<8x4xf32>
    %219 = vector.extract_strided_slice %47 {offsets = [6, 0, 0], sizes = [1, 16, 1], strides = [1, 1, 1]} : vector<18x18x1xf32> to vector<1x16x1xf32>
    %220 = vector.shape_cast %219 : vector<1x16x1xf32> to vector<16x1xf32>
    %221 = vector.extract_strided_slice %47 {offsets = [7, 0, 0], sizes = [1, 16, 1], strides = [1, 1, 1]} : vector<18x18x1xf32> to vector<1x16x1xf32>
    %222 = vector.shape_cast %221 : vector<1x16x1xf32> to vector<16x1xf32>
    %223 = tpu.concatenate %220, %222 in 0 : vector<16x1xf32>, vector<16x1xf32> -> vector<32x1xf32>
    %224 = vector.extract_strided_slice %47 {offsets = [6, 1, 0], sizes = [1, 16, 1], strides = [1, 1, 1]} : vector<18x18x1xf32> to vector<1x16x1xf32>
    %225 = vector.shape_cast %224 : vector<1x16x1xf32> to vector<16x1xf32>
    %226 = vector.extract_strided_slice %47 {offsets = [7, 1, 0], sizes = [1, 16, 1], strides = [1, 1, 1]} : vector<18x18x1xf32> to vector<1x16x1xf32>
    %227 = vector.shape_cast %226 : vector<1x16x1xf32> to vector<16x1xf32>
    %228 = tpu.concatenate %225, %227 in 0 : vector<16x1xf32>, vector<16x1xf32> -> vector<32x1xf32>
    %229 = vector.extract_strided_slice %47 {offsets = [6, 2, 0], sizes = [1, 16, 1], strides = [1, 1, 1]} : vector<18x18x1xf32> to vector<1x16x1xf32>
    %230 = vector.shape_cast %229 : vector<1x16x1xf32> to vector<16x1xf32>
    %231 = vector.extract_strided_slice %47 {offsets = [7, 2, 0], sizes = [1, 16, 1], strides = [1, 1, 1]} : vector<18x18x1xf32> to vector<1x16x1xf32>
    %232 = vector.shape_cast %231 : vector<1x16x1xf32> to vector<16x1xf32>
    %233 = tpu.concatenate %230, %232 in 0 : vector<16x1xf32>, vector<16x1xf32> -> vector<32x1xf32>
    %234 = vector.extract_strided_slice %47 {offsets = [7, 0, 0], sizes = [1, 16, 1], strides = [1, 1, 1]} : vector<18x18x1xf32> to vector<1x16x1xf32>
    %235 = vector.shape_cast %234 : vector<1x16x1xf32> to vector<16x1xf32>
    %236 = vector.extract_strided_slice %47 {offsets = [8, 0, 0], sizes = [1, 16, 1], strides = [1, 1, 1]} : vector<18x18x1xf32> to vector<1x16x1xf32>
    %237 = vector.shape_cast %236 : vector<1x16x1xf32> to vector<16x1xf32>
    %238 = tpu.concatenate %235, %237 in 0 : vector<16x1xf32>, vector<16x1xf32> -> vector<32x1xf32>
    %239 = vector.extract_strided_slice %47 {offsets = [7, 1, 0], sizes = [1, 16, 1], strides = [1, 1, 1]} : vector<18x18x1xf32> to vector<1x16x1xf32>
    %240 = vector.shape_cast %239 : vector<1x16x1xf32> to vector<16x1xf32>
    %241 = vector.extract_strided_slice %47 {offsets = [8, 1, 0], sizes = [1, 16, 1], strides = [1, 1, 1]} : vector<18x18x1xf32> to vector<1x16x1xf32>
    %242 = vector.shape_cast %241 : vector<1x16x1xf32> to vector<16x1xf32>
    %243 = tpu.concatenate %240, %242 in 0 : vector<16x1xf32>, vector<16x1xf32> -> vector<32x1xf32>
    %244 = vector.extract_strided_slice %47 {offsets = [7, 2, 0], sizes = [1, 16, 1], strides = [1, 1, 1]} : vector<18x18x1xf32> to vector<1x16x1xf32>
    %245 = vector.shape_cast %244 : vector<1x16x1xf32> to vector<16x1xf32>
    %246 = vector.extract_strided_slice %47 {offsets = [8, 2, 0], sizes = [1, 16, 1], strides = [1, 1, 1]} : vector<18x18x1xf32> to vector<1x16x1xf32>
    %247 = vector.shape_cast %246 : vector<1x16x1xf32> to vector<16x1xf32>
    %248 = tpu.concatenate %245, %247 in 0 : vector<16x1xf32>, vector<16x1xf32> -> vector<32x1xf32>
    %249 = vector.extract_strided_slice %47 {offsets = [8, 0, 0], sizes = [1, 16, 1], strides = [1, 1, 1]} : vector<18x18x1xf32> to vector<1x16x1xf32>
    %250 = vector.shape_cast %249 : vector<1x16x1xf32> to vector<16x1xf32>
    %251 = vector.extract_strided_slice %47 {offsets = [9, 0, 0], sizes = [1, 16, 1], strides = [1, 1, 1]} : vector<18x18x1xf32> to vector<1x16x1xf32>
    %252 = vector.shape_cast %251 : vector<1x16x1xf32> to vector<16x1xf32>
    %253 = tpu.concatenate %250, %252 in 0 : vector<16x1xf32>, vector<16x1xf32> -> vector<32x1xf32>
    %254 = vector.extract_strided_slice %47 {offsets = [8, 1, 0], sizes = [1, 16, 1], strides = [1, 1, 1]} : vector<18x18x1xf32> to vector<1x16x1xf32>
    %255 = vector.shape_cast %254 : vector<1x16x1xf32> to vector<16x1xf32>
    %256 = vector.extract_strided_slice %47 {offsets = [9, 1, 0], sizes = [1, 16, 1], strides = [1, 1, 1]} : vector<18x18x1xf32> to vector<1x16x1xf32>
    %257 = vector.shape_cast %256 : vector<1x16x1xf32> to vector<16x1xf32>
    %258 = tpu.concatenate %255, %257 in 0 : vector<16x1xf32>, vector<16x1xf32> -> vector<32x1xf32>
    %259 = vector.extract_strided_slice %47 {offsets = [8, 2, 0], sizes = [1, 16, 1], strides = [1, 1, 1]} : vector<18x18x1xf32> to vector<1x16x1xf32>
    %260 = vector.shape_cast %259 : vector<1x16x1xf32> to vector<16x1xf32>
    %261 = vector.extract_strided_slice %47 {offsets = [9, 2, 0], sizes = [1, 16, 1], strides = [1, 1, 1]} : vector<18x18x1xf32> to vector<1x16x1xf32>
    %262 = vector.shape_cast %261 : vector<1x16x1xf32> to vector<16x1xf32>
    %263 = tpu.concatenate %260, %262 in 0 : vector<16x1xf32>, vector<16x1xf32> -> vector<32x1xf32>
    %264 = tpu.concatenate %223, %228, %233, %238, %243, %248, %253, %258, %263 in 1 : vector<32x1xf32>, vector<32x1xf32>, vector<32x1xf32>, vector<32x1xf32>, vector<32x1xf32>, vector<32x1xf32>, vector<32x1xf32>, vector<32x1xf32>, vector<32x1xf32> -> vector<32x9xf32>
    %cst_32 = arith.constant dense<0.000000e+00> : vector<32x4xf32>
    %265 = tpu.matmul %264, %0, %cst_32 {dimension_numbers = #tpu.dot_dimension_numbers<[1], [0], [0], [1], [0, 0, 1, 1], [], []>} : vector<32x9xf32>, vector<9x4xf32>, vector<32x4xf32> -> vector<32x4xf32>
    %266 = arith.mulf %265, %4 : vector<32x4xf32>
    %267 = arith.addf %266, %7 : vector<32x4xf32>
    %cst_33 = arith.constant 0.000000e+00 : f32
    %268 = vector.broadcast %cst_33 : f32 to vector<32x4xf32>
    %269 = arith.maximumf %267, %268 : vector<32x4xf32>
    %270 = vector.extract_strided_slice %269 {offsets = [0, 0], sizes = [16, 4], strides = [1, 1]} : vector<32x4xf32> to vector<16x4xf32>
    %271 = vector.extract_strided_slice %269 {offsets = [16, 0], sizes = [16, 4], strides = [1, 1]} : vector<32x4xf32> to vector<16x4xf32>
    %272 = arith.maximumf %270, %271 : vector<16x4xf32>
    %cst_34 = arith.constant dense<0.000000e+00> : vector<8x4xf32>
    %273 = tpu.matmul %20, %272, %cst_34 {dimension_numbers = #tpu.dot_dimension_numbers<[1], [0], [0], [1], [0, 0, 1, 1], [], []>} : vector<8x16xf32>, vector<16x4xf32>, vector<8x4xf32> -> vector<8x4xf32>
    %cst_35 = arith.constant dense<0.000000e+00> : vector<8x4xf32>
    %274 = tpu.matmul %27, %272, %cst_35 {dimension_numbers = #tpu.dot_dimension_numbers<[1], [0], [0], [1], [0, 0, 1, 1], [], []>} : vector<8x16xf32>, vector<16x4xf32>, vector<8x4xf32> -> vector<8x4xf32>
    %275 = arith.maximumf %273, %274 : vector<8x4xf32>
    %276 = vector.extract_strided_slice %47 {offsets = [8, 0, 0], sizes = [1, 16, 1], strides = [1, 1, 1]} : vector<18x18x1xf32> to vector<1x16x1xf32>
    %277 = vector.shape_cast %276 : vector<1x16x1xf32> to vector<16x1xf32>
    %278 = vector.extract_strided_slice %47 {offsets = [9, 0, 0], sizes = [1, 16, 1], strides = [1, 1, 1]} : vector<18x18x1xf32> to vector<1x16x1xf32>
    %279 = vector.shape_cast %278 : vector<1x16x1xf32> to vector<16x1xf32>
    %280 = tpu.concatenate %277, %279 in 0 : vector<16x1xf32>, vector<16x1xf32> -> vector<32x1xf32>
    %281 = vector.extract_strided_slice %47 {offsets = [8, 1, 0], sizes = [1, 16, 1], strides = [1, 1, 1]} : vector<18x18x1xf32> to vector<1x16x1xf32>
    %282 = vector.shape_cast %281 : vector<1x16x1xf32> to vector<16x1xf32>
    %283 = vector.extract_strided_slice %47 {offsets = [9, 1, 0], sizes = [1, 16, 1], strides = [1, 1, 1]} : vector<18x18x1xf32> to vector<1x16x1xf32>
    %284 = vector.shape_cast %283 : vector<1x16x1xf32> to vector<16x1xf32>
    %285 = tpu.concatenate %282, %284 in 0 : vector<16x1xf32>, vector<16x1xf32> -> vector<32x1xf32>
    %286 = vector.extract_strided_slice %47 {offsets = [8, 2, 0], sizes = [1, 16, 1], strides = [1, 1, 1]} : vector<18x18x1xf32> to vector<1x16x1xf32>
    %287 = vector.shape_cast %286 : vector<1x16x1xf32> to vector<16x1xf32>
    %288 = vector.extract_strided_slice %47 {offsets = [9, 2, 0], sizes = [1, 16, 1], strides = [1, 1, 1]} : vector<18x18x1xf32> to vector<1x16x1xf32>
    %289 = vector.shape_cast %288 : vector<1x16x1xf32> to vector<16x1xf32>
    %290 = tpu.concatenate %287, %289 in 0 : vector<16x1xf32>, vector<16x1xf32> -> vector<32x1xf32>
    %291 = vector.extract_strided_slice %47 {offsets = [9, 0, 0], sizes = [1, 16, 1], strides = [1, 1, 1]} : vector<18x18x1xf32> to vector<1x16x1xf32>
    %292 = vector.shape_cast %291 : vector<1x16x1xf32> to vector<16x1xf32>
    %293 = vector.extract_strided_slice %47 {offsets = [10, 0, 0], sizes = [1, 16, 1], strides = [1, 1, 1]} : vector<18x18x1xf32> to vector<1x16x1xf32>
    %294 = vector.shape_cast %293 : vector<1x16x1xf32> to vector<16x1xf32>
    %295 = tpu.concatenate %292, %294 in 0 : vector<16x1xf32>, vector<16x1xf32> -> vector<32x1xf32>
    %296 = vector.extract_strided_slice %47 {offsets = [9, 1, 0], sizes = [1, 16, 1], strides = [1, 1, 1]} : vector<18x18x1xf32> to vector<1x16x1xf32>
    %297 = vector.shape_cast %296 : vector<1x16x1xf32> to vector<16x1xf32>
    %298 = vector.extract_strided_slice %47 {offsets = [10, 1, 0], sizes = [1, 16, 1], strides = [1, 1, 1]} : vector<18x18x1xf32> to vector<1x16x1xf32>
    %299 = vector.shape_cast %298 : vector<1x16x1xf32> to vector<16x1xf32>
    %300 = tpu.concatenate %297, %299 in 0 : vector<16x1xf32>, vector<16x1xf32> -> vector<32x1xf32>
    %301 = vector.extract_strided_slice %47 {offsets = [9, 2, 0], sizes = [1, 16, 1], strides = [1, 1, 1]} : vector<18x18x1xf32> to vector<1x16x1xf32>
    %302 = vector.shape_cast %301 : vector<1x16x1xf32> to vector<16x1xf32>
    %303 = vector.extract_strided_slice %47 {offsets = [10, 2, 0], sizes = [1, 16, 1], strides = [1, 1, 1]} : vector<18x18x1xf32> to vector<1x16x1xf32>
    %304 = vector.shape_cast %303 : vector<1x16x1xf32> to vector<16x1xf32>
    %305 = tpu.concatenate %302, %304 in 0 : vector<16x1xf32>, vector<16x1xf32> -> vector<32x1xf32>
    %306 = vector.extract_strided_slice %47 {offsets = [10, 0, 0], sizes = [1, 16, 1], strides = [1, 1, 1]} : vector<18x18x1xf32> to vector<1x16x1xf32>
    %307 = vector.shape_cast %306 : vector<1x16x1xf32> to vector<16x1xf32>
    %308 = vector.extract_strided_slice %47 {offsets = [11, 0, 0], sizes = [1, 16, 1], strides = [1, 1, 1]} : vector<18x18x1xf32> to vector<1x16x1xf32>
    %309 = vector.shape_cast %308 : vector<1x16x1xf32> to vector<16x1xf32>
    %310 = tpu.concatenate %307, %309 in 0 : vector<16x1xf32>, vector<16x1xf32> -> vector<32x1xf32>
    %311 = vector.extract_strided_slice %47 {offsets = [10, 1, 0], sizes = [1, 16, 1], strides = [1, 1, 1]} : vector<18x18x1xf32> to vector<1x16x1xf32>
    %312 = vector.shape_cast %311 : vector<1x16x1xf32> to vector<16x1xf32>
    %313 = vector.extract_strided_slice %47 {offsets = [11, 1, 0], sizes = [1, 16, 1], strides = [1, 1, 1]} : vector<18x18x1xf32> to vector<1x16x1xf32>
    %314 = vector.shape_cast %313 : vector<1x16x1xf32> to vector<16x1xf32>
    %315 = tpu.concatenate %312, %314 in 0 : vector<16x1xf32>, vector<16x1xf32> -> vector<32x1xf32>
    %316 = vector.extract_strided_slice %47 {offsets = [10, 2, 0], sizes = [1, 16, 1], strides = [1, 1, 1]} : vector<18x18x1xf32> to vector<1x16x1xf32>
    %317 = vector.shape_cast %316 : vector<1x16x1xf32> to vector<16x1xf32>
    %318 = vector.extract_strided_slice %47 {offsets = [11, 2, 0], sizes = [1, 16, 1], strides = [1, 1, 1]} : vector<18x18x1xf32> to vector<1x16x1xf32>
    %319 = vector.shape_cast %318 : vector<1x16x1xf32> to vector<16x1xf32>
    %320 = tpu.concatenate %317, %319 in 0 : vector<16x1xf32>, vector<16x1xf32> -> vector<32x1xf32>
    %321 = tpu.concatenate %280, %285, %290, %295, %300, %305, %310, %315, %320 in 1 : vector<32x1xf32>, vector<32x1xf32>, vector<32x1xf32>, vector<32x1xf32>, vector<32x1xf32>, vector<32x1xf32>, vector<32x1xf32>, vector<32x1xf32>, vector<32x1xf32> -> vector<32x9xf32>
    %cst_36 = arith.constant dense<0.000000e+00> : vector<32x4xf32>
    %322 = tpu.matmul %321, %0, %cst_36 {dimension_numbers = #tpu.dot_dimension_numbers<[1], [0], [0], [1], [0, 0, 1, 1], [], []>} : vector<32x9xf32>, vector<9x4xf32>, vector<32x4xf32> -> vector<32x4xf32>
    %323 = arith.mulf %322, %4 : vector<32x4xf32>
    %324 = arith.addf %323, %7 : vector<32x4xf32>
    %cst_37 = arith.constant 0.000000e+00 : f32
    %325 = vector.broadcast %cst_37 : f32 to vector<32x4xf32>
    %326 = arith.maximumf %324, %325 : vector<32x4xf32>
    %327 = vector.extract_strided_slice %326 {offsets = [0, 0], sizes = [16, 4], strides = [1, 1]} : vector<32x4xf32> to vector<16x4xf32>
    %328 = vector.extract_strided_slice %326 {offsets = [16, 0], sizes = [16, 4], strides = [1, 1]} : vector<32x4xf32> to vector<16x4xf32>
    %329 = arith.maximumf %327, %328 : vector<16x4xf32>
    %cst_38 = arith.constant dense<0.000000e+00> : vector<8x4xf32>
    %330 = tpu.matmul %20, %329, %cst_38 {dimension_numbers = #tpu.dot_dimension_numbers<[1], [0], [0], [1], [0, 0, 1, 1], [], []>} : vector<8x16xf32>, vector<16x4xf32>, vector<8x4xf32> -> vector<8x4xf32>
    %cst_39 = arith.constant dense<0.000000e+00> : vector<8x4xf32>
    %331 = tpu.matmul %27, %329, %cst_39 {dimension_numbers = #tpu.dot_dimension_numbers<[1], [0], [0], [1], [0, 0, 1, 1], [], []>} : vector<8x16xf32>, vector<16x4xf32>, vector<8x4xf32> -> vector<8x4xf32>
    %332 = arith.maximumf %330, %331 : vector<8x4xf32>
    %333 = vector.extract_strided_slice %47 {offsets = [10, 0, 0], sizes = [1, 16, 1], strides = [1, 1, 1]} : vector<18x18x1xf32> to vector<1x16x1xf32>
    %334 = vector.shape_cast %333 : vector<1x16x1xf32> to vector<16x1xf32>
    %335 = vector.extract_strided_slice %47 {offsets = [11, 0, 0], sizes = [1, 16, 1], strides = [1, 1, 1]} : vector<18x18x1xf32> to vector<1x16x1xf32>
    %336 = vector.shape_cast %335 : vector<1x16x1xf32> to vector<16x1xf32>
    %337 = tpu.concatenate %334, %336 in 0 : vector<16x1xf32>, vector<16x1xf32> -> vector<32x1xf32>
    %338 = vector.extract_strided_slice %47 {offsets = [10, 1, 0], sizes = [1, 16, 1], strides = [1, 1, 1]} : vector<18x18x1xf32> to vector<1x16x1xf32>
    %339 = vector.shape_cast %338 : vector<1x16x1xf32> to vector<16x1xf32>
    %340 = vector.extract_strided_slice %47 {offsets = [11, 1, 0], sizes = [1, 16, 1], strides = [1, 1, 1]} : vector<18x18x1xf32> to vector<1x16x1xf32>
    %341 = vector.shape_cast %340 : vector<1x16x1xf32> to vector<16x1xf32>
    %342 = tpu.concatenate %339, %341 in 0 : vector<16x1xf32>, vector<16x1xf32> -> vector<32x1xf32>
    %343 = vector.extract_strided_slice %47 {offsets = [10, 2, 0], sizes = [1, 16, 1], strides = [1, 1, 1]} : vector<18x18x1xf32> to vector<1x16x1xf32>
    %344 = vector.shape_cast %343 : vector<1x16x1xf32> to vector<16x1xf32>
    %345 = vector.extract_strided_slice %47 {offsets = [11, 2, 0], sizes = [1, 16, 1], strides = [1, 1, 1]} : vector<18x18x1xf32> to vector<1x16x1xf32>
    %346 = vector.shape_cast %345 : vector<1x16x1xf32> to vector<16x1xf32>
    %347 = tpu.concatenate %344, %346 in 0 : vector<16x1xf32>, vector<16x1xf32> -> vector<32x1xf32>
    %348 = vector.extract_strided_slice %47 {offsets = [11, 0, 0], sizes = [1, 16, 1], strides = [1, 1, 1]} : vector<18x18x1xf32> to vector<1x16x1xf32>
    %349 = vector.shape_cast %348 : vector<1x16x1xf32> to vector<16x1xf32>
    %350 = vector.extract_strided_slice %47 {offsets = [12, 0, 0], sizes = [1, 16, 1], strides = [1, 1, 1]} : vector<18x18x1xf32> to vector<1x16x1xf32>
    %351 = vector.shape_cast %350 : vector<1x16x1xf32> to vector<16x1xf32>
    %352 = tpu.concatenate %349, %351 in 0 : vector<16x1xf32>, vector<16x1xf32> -> vector<32x1xf32>
    %353 = vector.extract_strided_slice %47 {offsets = [11, 1, 0], sizes = [1, 16, 1], strides = [1, 1, 1]} : vector<18x18x1xf32> to vector<1x16x1xf32>
    %354 = vector.shape_cast %353 : vector<1x16x1xf32> to vector<16x1xf32>
    %355 = vector.extract_strided_slice %47 {offsets = [12, 1, 0], sizes = [1, 16, 1], strides = [1, 1, 1]} : vector<18x18x1xf32> to vector<1x16x1xf32>
    %356 = vector.shape_cast %355 : vector<1x16x1xf32> to vector<16x1xf32>
    %357 = tpu.concatenate %354, %356 in 0 : vector<16x1xf32>, vector<16x1xf32> -> vector<32x1xf32>
    %358 = vector.extract_strided_slice %47 {offsets = [11, 2, 0], sizes = [1, 16, 1], strides = [1, 1, 1]} : vector<18x18x1xf32> to vector<1x16x1xf32>
    %359 = vector.shape_cast %358 : vector<1x16x1xf32> to vector<16x1xf32>
    %360 = vector.extract_strided_slice %47 {offsets = [12, 2, 0], sizes = [1, 16, 1], strides = [1, 1, 1]} : vector<18x18x1xf32> to vector<1x16x1xf32>
    %361 = vector.shape_cast %360 : vector<1x16x1xf32> to vector<16x1xf32>
    %362 = tpu.concatenate %359, %361 in 0 : vector<16x1xf32>, vector<16x1xf32> -> vector<32x1xf32>
    %363 = vector.extract_strided_slice %47 {offsets = [12, 0, 0], sizes = [1, 16, 1], strides = [1, 1, 1]} : vector<18x18x1xf32> to vector<1x16x1xf32>
    %364 = vector.shape_cast %363 : vector<1x16x1xf32> to vector<16x1xf32>
    %365 = vector.extract_strided_slice %47 {offsets = [13, 0, 0], sizes = [1, 16, 1], strides = [1, 1, 1]} : vector<18x18x1xf32> to vector<1x16x1xf32>
    %366 = vector.shape_cast %365 : vector<1x16x1xf32> to vector<16x1xf32>
    %367 = tpu.concatenate %364, %366 in 0 : vector<16x1xf32>, vector<16x1xf32> -> vector<32x1xf32>
    %368 = vector.extract_strided_slice %47 {offsets = [12, 1, 0], sizes = [1, 16, 1], strides = [1, 1, 1]} : vector<18x18x1xf32> to vector<1x16x1xf32>
    %369 = vector.shape_cast %368 : vector<1x16x1xf32> to vector<16x1xf32>
    %370 = vector.extract_strided_slice %47 {offsets = [13, 1, 0], sizes = [1, 16, 1], strides = [1, 1, 1]} : vector<18x18x1xf32> to vector<1x16x1xf32>
    %371 = vector.shape_cast %370 : vector<1x16x1xf32> to vector<16x1xf32>
    %372 = tpu.concatenate %369, %371 in 0 : vector<16x1xf32>, vector<16x1xf32> -> vector<32x1xf32>
    %373 = vector.extract_strided_slice %47 {offsets = [12, 2, 0], sizes = [1, 16, 1], strides = [1, 1, 1]} : vector<18x18x1xf32> to vector<1x16x1xf32>
    %374 = vector.shape_cast %373 : vector<1x16x1xf32> to vector<16x1xf32>
    %375 = vector.extract_strided_slice %47 {offsets = [13, 2, 0], sizes = [1, 16, 1], strides = [1, 1, 1]} : vector<18x18x1xf32> to vector<1x16x1xf32>
    %376 = vector.shape_cast %375 : vector<1x16x1xf32> to vector<16x1xf32>
    %377 = tpu.concatenate %374, %376 in 0 : vector<16x1xf32>, vector<16x1xf32> -> vector<32x1xf32>
    %378 = tpu.concatenate %337, %342, %347, %352, %357, %362, %367, %372, %377 in 1 : vector<32x1xf32>, vector<32x1xf32>, vector<32x1xf32>, vector<32x1xf32>, vector<32x1xf32>, vector<32x1xf32>, vector<32x1xf32>, vector<32x1xf32>, vector<32x1xf32> -> vector<32x9xf32>
    %cst_40 = arith.constant dense<0.000000e+00> : vector<32x4xf32>
    %379 = tpu.matmul %378, %0, %cst_40 {dimension_numbers = #tpu.dot_dimension_numbers<[1], [0], [0], [1], [0, 0, 1, 1], [], []>} : vector<32x9xf32>, vector<9x4xf32>, vector<32x4xf32> -> vector<32x4xf32>
    %380 = arith.mulf %379, %4 : vector<32x4xf32>
    %381 = arith.addf %380, %7 : vector<32x4xf32>
    %cst_41 = arith.constant 0.000000e+00 : f32
    %382 = vector.broadcast %cst_41 : f32 to vector<32x4xf32>
    %383 = arith.maximumf %381, %382 : vector<32x4xf32>
    %384 = vector.extract_strided_slice %383 {offsets = [0, 0], sizes = [16, 4], strides = [1, 1]} : vector<32x4xf32> to vector<16x4xf32>
    %385 = vector.extract_strided_slice %383 {offsets = [16, 0], sizes = [16, 4], strides = [1, 1]} : vector<32x4xf32> to vector<16x4xf32>
    %386 = arith.maximumf %384, %385 : vector<16x4xf32>
    %cst_42 = arith.constant dense<0.000000e+00> : vector<8x4xf32>
    %387 = tpu.matmul %20, %386, %cst_42 {dimension_numbers = #tpu.dot_dimension_numbers<[1], [0], [0], [1], [0, 0, 1, 1], [], []>} : vector<8x16xf32>, vector<16x4xf32>, vector<8x4xf32> -> vector<8x4xf32>
    %cst_43 = arith.constant dense<0.000000e+00> : vector<8x4xf32>
    %388 = tpu.matmul %27, %386, %cst_43 {dimension_numbers = #tpu.dot_dimension_numbers<[1], [0], [0], [1], [0, 0, 1, 1], [], []>} : vector<8x16xf32>, vector<16x4xf32>, vector<8x4xf32> -> vector<8x4xf32>
    %389 = arith.maximumf %387, %388 : vector<8x4xf32>
    %390 = vector.extract_strided_slice %47 {offsets = [12, 0, 0], sizes = [1, 16, 1], strides = [1, 1, 1]} : vector<18x18x1xf32> to vector<1x16x1xf32>
    %391 = vector.shape_cast %390 : vector<1x16x1xf32> to vector<16x1xf32>
    %392 = vector.extract_strided_slice %47 {offsets = [13, 0, 0], sizes = [1, 16, 1], strides = [1, 1, 1]} : vector<18x18x1xf32> to vector<1x16x1xf32>
    %393 = vector.shape_cast %392 : vector<1x16x1xf32> to vector<16x1xf32>
    %394 = tpu.concatenate %391, %393 in 0 : vector<16x1xf32>, vector<16x1xf32> -> vector<32x1xf32>
    %395 = vector.extract_strided_slice %47 {offsets = [12, 1, 0], sizes = [1, 16, 1], strides = [1, 1, 1]} : vector<18x18x1xf32> to vector<1x16x1xf32>
    %396 = vector.shape_cast %395 : vector<1x16x1xf32> to vector<16x1xf32>
    %397 = vector.extract_strided_slice %47 {offsets = [13, 1, 0], sizes = [1, 16, 1], strides = [1, 1, 1]} : vector<18x18x1xf32> to vector<1x16x1xf32>
    %398 = vector.shape_cast %397 : vector<1x16x1xf32> to vector<16x1xf32>
    %399 = tpu.concatenate %396, %398 in 0 : vector<16x1xf32>, vector<16x1xf32> -> vector<32x1xf32>
    %400 = vector.extract_strided_slice %47 {offsets = [12, 2, 0], sizes = [1, 16, 1], strides = [1, 1, 1]} : vector<18x18x1xf32> to vector<1x16x1xf32>
    %401 = vector.shape_cast %400 : vector<1x16x1xf32> to vector<16x1xf32>
    %402 = vector.extract_strided_slice %47 {offsets = [13, 2, 0], sizes = [1, 16, 1], strides = [1, 1, 1]} : vector<18x18x1xf32> to vector<1x16x1xf32>
    %403 = vector.shape_cast %402 : vector<1x16x1xf32> to vector<16x1xf32>
    %404 = tpu.concatenate %401, %403 in 0 : vector<16x1xf32>, vector<16x1xf32> -> vector<32x1xf32>
    %405 = vector.extract_strided_slice %47 {offsets = [13, 0, 0], sizes = [1, 16, 1], strides = [1, 1, 1]} : vector<18x18x1xf32> to vector<1x16x1xf32>
    %406 = vector.shape_cast %405 : vector<1x16x1xf32> to vector<16x1xf32>
    %407 = vector.extract_strided_slice %47 {offsets = [14, 0, 0], sizes = [1, 16, 1], strides = [1, 1, 1]} : vector<18x18x1xf32> to vector<1x16x1xf32>
    %408 = vector.shape_cast %407 : vector<1x16x1xf32> to vector<16x1xf32>
    %409 = tpu.concatenate %406, %408 in 0 : vector<16x1xf32>, vector<16x1xf32> -> vector<32x1xf32>
    %410 = vector.extract_strided_slice %47 {offsets = [13, 1, 0], sizes = [1, 16, 1], strides = [1, 1, 1]} : vector<18x18x1xf32> to vector<1x16x1xf32>
    %411 = vector.shape_cast %410 : vector<1x16x1xf32> to vector<16x1xf32>
    %412 = vector.extract_strided_slice %47 {offsets = [14, 1, 0], sizes = [1, 16, 1], strides = [1, 1, 1]} : vector<18x18x1xf32> to vector<1x16x1xf32>
    %413 = vector.shape_cast %412 : vector<1x16x1xf32> to vector<16x1xf32>
    %414 = tpu.concatenate %411, %413 in 0 : vector<16x1xf32>, vector<16x1xf32> -> vector<32x1xf32>
    %415 = vector.extract_strided_slice %47 {offsets = [13, 2, 0], sizes = [1, 16, 1], strides = [1, 1, 1]} : vector<18x18x1xf32> to vector<1x16x1xf32>
    %416 = vector.shape_cast %415 : vector<1x16x1xf32> to vector<16x1xf32>
    %417 = vector.extract_strided_slice %47 {offsets = [14, 2, 0], sizes = [1, 16, 1], strides = [1, 1, 1]} : vector<18x18x1xf32> to vector<1x16x1xf32>
    %418 = vector.shape_cast %417 : vector<1x16x1xf32> to vector<16x1xf32>
    %419 = tpu.concatenate %416, %418 in 0 : vector<16x1xf32>, vector<16x1xf32> -> vector<32x1xf32>
    %420 = vector.extract_strided_slice %47 {offsets = [14, 0, 0], sizes = [1, 16, 1], strides = [1, 1, 1]} : vector<18x18x1xf32> to vector<1x16x1xf32>
    %421 = vector.shape_cast %420 : vector<1x16x1xf32> to vector<16x1xf32>
    %422 = vector.extract_strided_slice %47 {offsets = [15, 0, 0], sizes = [1, 16, 1], strides = [1, 1, 1]} : vector<18x18x1xf32> to vector<1x16x1xf32>
    %423 = vector.shape_cast %422 : vector<1x16x1xf32> to vector<16x1xf32>
    %424 = tpu.concatenate %421, %423 in 0 : vector<16x1xf32>, vector<16x1xf32> -> vector<32x1xf32>
    %425 = vector.extract_strided_slice %47 {offsets = [14, 1, 0], sizes = [1, 16, 1], strides = [1, 1, 1]} : vector<18x18x1xf32> to vector<1x16x1xf32>
    %426 = vector.shape_cast %425 : vector<1x16x1xf32> to vector<16x1xf32>
    %427 = vector.extract_strided_slice %47 {offsets = [15, 1, 0], sizes = [1, 16, 1], strides = [1, 1, 1]} : vector<18x18x1xf32> to vector<1x16x1xf32>
    %428 = vector.shape_cast %427 : vector<1x16x1xf32> to vector<16x1xf32>
    %429 = tpu.concatenate %426, %428 in 0 : vector<16x1xf32>, vector<16x1xf32> -> vector<32x1xf32>
    %430 = vector.extract_strided_slice %47 {offsets = [14, 2, 0], sizes = [1, 16, 1], strides = [1, 1, 1]} : vector<18x18x1xf32> to vector<1x16x1xf32>
    %431 = vector.shape_cast %430 : vector<1x16x1xf32> to vector<16x1xf32>
    %432 = vector.extract_strided_slice %47 {offsets = [15, 2, 0], sizes = [1, 16, 1], strides = [1, 1, 1]} : vector<18x18x1xf32> to vector<1x16x1xf32>
    %433 = vector.shape_cast %432 : vector<1x16x1xf32> to vector<16x1xf32>
    %434 = tpu.concatenate %431, %433 in 0 : vector<16x1xf32>, vector<16x1xf32> -> vector<32x1xf32>
    %435 = tpu.concatenate %394, %399, %404, %409, %414, %419, %424, %429, %434 in 1 : vector<32x1xf32>, vector<32x1xf32>, vector<32x1xf32>, vector<32x1xf32>, vector<32x1xf32>, vector<32x1xf32>, vector<32x1xf32>, vector<32x1xf32>, vector<32x1xf32> -> vector<32x9xf32>
    %cst_44 = arith.constant dense<0.000000e+00> : vector<32x4xf32>
    %436 = tpu.matmul %435, %0, %cst_44 {dimension_numbers = #tpu.dot_dimension_numbers<[1], [0], [0], [1], [0, 0, 1, 1], [], []>} : vector<32x9xf32>, vector<9x4xf32>, vector<32x4xf32> -> vector<32x4xf32>
    %437 = arith.mulf %436, %4 : vector<32x4xf32>
    %438 = arith.addf %437, %7 : vector<32x4xf32>
    %cst_45 = arith.constant 0.000000e+00 : f32
    %439 = vector.broadcast %cst_45 : f32 to vector<32x4xf32>
    %440 = arith.maximumf %438, %439 : vector<32x4xf32>
    %441 = vector.extract_strided_slice %440 {offsets = [0, 0], sizes = [16, 4], strides = [1, 1]} : vector<32x4xf32> to vector<16x4xf32>
    %442 = vector.extract_strided_slice %440 {offsets = [16, 0], sizes = [16, 4], strides = [1, 1]} : vector<32x4xf32> to vector<16x4xf32>
    %443 = arith.maximumf %441, %442 : vector<16x4xf32>
    %cst_46 = arith.constant dense<0.000000e+00> : vector<8x4xf32>
    %444 = tpu.matmul %20, %443, %cst_46 {dimension_numbers = #tpu.dot_dimension_numbers<[1], [0], [0], [1], [0, 0, 1, 1], [], []>} : vector<8x16xf32>, vector<16x4xf32>, vector<8x4xf32> -> vector<8x4xf32>
    %cst_47 = arith.constant dense<0.000000e+00> : vector<8x4xf32>
    %445 = tpu.matmul %27, %443, %cst_47 {dimension_numbers = #tpu.dot_dimension_numbers<[1], [0], [0], [1], [0, 0, 1, 1], [], []>} : vector<8x16xf32>, vector<16x4xf32>, vector<8x4xf32> -> vector<8x4xf32>
    %446 = arith.maximumf %444, %445 : vector<8x4xf32>
    %447 = vector.extract_strided_slice %47 {offsets = [14, 0, 0], sizes = [1, 16, 1], strides = [1, 1, 1]} : vector<18x18x1xf32> to vector<1x16x1xf32>
    %448 = vector.shape_cast %447 : vector<1x16x1xf32> to vector<16x1xf32>
    %449 = vector.extract_strided_slice %47 {offsets = [15, 0, 0], sizes = [1, 16, 1], strides = [1, 1, 1]} : vector<18x18x1xf32> to vector<1x16x1xf32>
    %450 = vector.shape_cast %449 : vector<1x16x1xf32> to vector<16x1xf32>
    %451 = tpu.concatenate %448, %450 in 0 : vector<16x1xf32>, vector<16x1xf32> -> vector<32x1xf32>
    %452 = vector.extract_strided_slice %47 {offsets = [14, 1, 0], sizes = [1, 16, 1], strides = [1, 1, 1]} : vector<18x18x1xf32> to vector<1x16x1xf32>
    %453 = vector.shape_cast %452 : vector<1x16x1xf32> to vector<16x1xf32>
    %454 = vector.extract_strided_slice %47 {offsets = [15, 1, 0], sizes = [1, 16, 1], strides = [1, 1, 1]} : vector<18x18x1xf32> to vector<1x16x1xf32>
    %455 = vector.shape_cast %454 : vector<1x16x1xf32> to vector<16x1xf32>
    %456 = tpu.concatenate %453, %455 in 0 : vector<16x1xf32>, vector<16x1xf32> -> vector<32x1xf32>
    %457 = vector.extract_strided_slice %47 {offsets = [14, 2, 0], sizes = [1, 16, 1], strides = [1, 1, 1]} : vector<18x18x1xf32> to vector<1x16x1xf32>
    %458 = vector.shape_cast %457 : vector<1x16x1xf32> to vector<16x1xf32>
    %459 = vector.extract_strided_slice %47 {offsets = [15, 2, 0], sizes = [1, 16, 1], strides = [1, 1, 1]} : vector<18x18x1xf32> to vector<1x16x1xf32>
    %460 = vector.shape_cast %459 : vector<1x16x1xf32> to vector<16x1xf32>
    %461 = tpu.concatenate %458, %460 in 0 : vector<16x1xf32>, vector<16x1xf32> -> vector<32x1xf32>
    %462 = vector.extract_strided_slice %47 {offsets = [15, 0, 0], sizes = [1, 16, 1], strides = [1, 1, 1]} : vector<18x18x1xf32> to vector<1x16x1xf32>
    %463 = vector.shape_cast %462 : vector<1x16x1xf32> to vector<16x1xf32>
    %464 = vector.extract_strided_slice %47 {offsets = [16, 0, 0], sizes = [1, 16, 1], strides = [1, 1, 1]} : vector<18x18x1xf32> to vector<1x16x1xf32>
    %465 = vector.shape_cast %464 : vector<1x16x1xf32> to vector<16x1xf32>
    %466 = tpu.concatenate %463, %465 in 0 : vector<16x1xf32>, vector<16x1xf32> -> vector<32x1xf32>
    %467 = vector.extract_strided_slice %47 {offsets = [15, 1, 0], sizes = [1, 16, 1], strides = [1, 1, 1]} : vector<18x18x1xf32> to vector<1x16x1xf32>
    %468 = vector.shape_cast %467 : vector<1x16x1xf32> to vector<16x1xf32>
    %469 = vector.extract_strided_slice %47 {offsets = [16, 1, 0], sizes = [1, 16, 1], strides = [1, 1, 1]} : vector<18x18x1xf32> to vector<1x16x1xf32>
    %470 = vector.shape_cast %469 : vector<1x16x1xf32> to vector<16x1xf32>
    %471 = tpu.concatenate %468, %470 in 0 : vector<16x1xf32>, vector<16x1xf32> -> vector<32x1xf32>
    %472 = vector.extract_strided_slice %47 {offsets = [15, 2, 0], sizes = [1, 16, 1], strides = [1, 1, 1]} : vector<18x18x1xf32> to vector<1x16x1xf32>
    %473 = vector.shape_cast %472 : vector<1x16x1xf32> to vector<16x1xf32>
    %474 = vector.extract_strided_slice %47 {offsets = [16, 2, 0], sizes = [1, 16, 1], strides = [1, 1, 1]} : vector<18x18x1xf32> to vector<1x16x1xf32>
    %475 = vector.shape_cast %474 : vector<1x16x1xf32> to vector<16x1xf32>
    %476 = tpu.concatenate %473, %475 in 0 : vector<16x1xf32>, vector<16x1xf32> -> vector<32x1xf32>
    %477 = vector.extract_strided_slice %47 {offsets = [16, 0, 0], sizes = [1, 16, 1], strides = [1, 1, 1]} : vector<18x18x1xf32> to vector<1x16x1xf32>
    %478 = vector.shape_cast %477 : vector<1x16x1xf32> to vector<16x1xf32>
    %479 = vector.extract_strided_slice %47 {offsets = [17, 0, 0], sizes = [1, 16, 1], strides = [1, 1, 1]} : vector<18x18x1xf32> to vector<1x16x1xf32>
    %480 = vector.shape_cast %479 : vector<1x16x1xf32> to vector<16x1xf32>
    %481 = tpu.concatenate %478, %480 in 0 : vector<16x1xf32>, vector<16x1xf32> -> vector<32x1xf32>
    %482 = vector.extract_strided_slice %47 {offsets = [16, 1, 0], sizes = [1, 16, 1], strides = [1, 1, 1]} : vector<18x18x1xf32> to vector<1x16x1xf32>
    %483 = vector.shape_cast %482 : vector<1x16x1xf32> to vector<16x1xf32>
    %484 = vector.extract_strided_slice %47 {offsets = [17, 1, 0], sizes = [1, 16, 1], strides = [1, 1, 1]} : vector<18x18x1xf32> to vector<1x16x1xf32>
    %485 = vector.shape_cast %484 : vector<1x16x1xf32> to vector<16x1xf32>
    %486 = tpu.concatenate %483, %485 in 0 : vector<16x1xf32>, vector<16x1xf32> -> vector<32x1xf32>
    %487 = vector.extract_strided_slice %47 {offsets = [16, 2, 0], sizes = [1, 16, 1], strides = [1, 1, 1]} : vector<18x18x1xf32> to vector<1x16x1xf32>
    %488 = vector.shape_cast %487 : vector<1x16x1xf32> to vector<16x1xf32>
    %489 = vector.extract_strided_slice %47 {offsets = [17, 2, 0], sizes = [1, 16, 1], strides = [1, 1, 1]} : vector<18x18x1xf32> to vector<1x16x1xf32>
    %490 = vector.shape_cast %489 : vector<1x16x1xf32> to vector<16x1xf32>
    %491 = tpu.concatenate %488, %490 in 0 : vector<16x1xf32>, vector<16x1xf32> -> vector<32x1xf32>
    %492 = tpu.concatenate %451, %456, %461, %466, %471, %476, %481, %486, %491 in 1 : vector<32x1xf32>, vector<32x1xf32>, vector<32x1xf32>, vector<32x1xf32>, vector<32x1xf32>, vector<32x1xf32>, vector<32x1xf32>, vector<32x1xf32>, vector<32x1xf32> -> vector<32x9xf32>
    %cst_48 = arith.constant dense<0.000000e+00> : vector<32x4xf32>
    %493 = tpu.matmul %492, %0, %cst_48 {dimension_numbers = #tpu.dot_dimension_numbers<[1], [0], [0], [1], [0, 0, 1, 1], [], []>} : vector<32x9xf32>, vector<9x4xf32>, vector<32x4xf32> -> vector<32x4xf32>
    %494 = arith.mulf %493, %4 : vector<32x4xf32>
    %495 = arith.addf %494, %7 : vector<32x4xf32>
    %cst_49 = arith.constant 0.000000e+00 : f32
    %496 = vector.broadcast %cst_49 : f32 to vector<32x4xf32>
    %497 = arith.maximumf %495, %496 : vector<32x4xf32>
    %498 = vector.extract_strided_slice %497 {offsets = [0, 0], sizes = [16, 4], strides = [1, 1]} : vector<32x4xf32> to vector<16x4xf32>
    %499 = vector.extract_strided_slice %497 {offsets = [16, 0], sizes = [16, 4], strides = [1, 1]} : vector<32x4xf32> to vector<16x4xf32>
    %500 = arith.maximumf %498, %499 : vector<16x4xf32>
    %cst_50 = arith.constant dense<0.000000e+00> : vector<8x4xf32>
    %501 = tpu.matmul %20, %500, %cst_50 {dimension_numbers = #tpu.dot_dimension_numbers<[1], [0], [0], [1], [0, 0, 1, 1], [], []>} : vector<8x16xf32>, vector<16x4xf32>, vector<8x4xf32> -> vector<8x4xf32>
    %cst_51 = arith.constant dense<0.000000e+00> : vector<8x4xf32>
    %502 = tpu.matmul %27, %500, %cst_51 {dimension_numbers = #tpu.dot_dimension_numbers<[1], [0], [0], [1], [0, 0, 1, 1], [], []>} : vector<8x16xf32>, vector<16x4xf32>, vector<8x4xf32> -> vector<8x4xf32>
    %503 = arith.maximumf %501, %502 : vector<8x4xf32>
    %504 = vector.shape_cast %104 : vector<8x4xf32> to vector<1x8x4xf32>
    %505 = vector.shape_cast %161 : vector<8x4xf32> to vector<1x8x4xf32>
    %506 = vector.shape_cast %218 : vector<8x4xf32> to vector<1x8x4xf32>
    %507 = vector.shape_cast %275 : vector<8x4xf32> to vector<1x8x4xf32>
    %508 = vector.shape_cast %332 : vector<8x4xf32> to vector<1x8x4xf32>
    %509 = vector.shape_cast %389 : vector<8x4xf32> to vector<1x8x4xf32>
    %510 = vector.shape_cast %446 : vector<8x4xf32> to vector<1x8x4xf32>
    %511 = vector.shape_cast %503 : vector<8x4xf32> to vector<1x8x4xf32>
    %512 = tpu.concatenate %504, %505, %506, %507, %508, %509, %510, %511 in 0 : vector<1x8x4xf32>, vector<1x8x4xf32>, vector<1x8x4xf32>, vector<1x8x4xf32>, vector<1x8x4xf32>, vector<1x8x4xf32>, vector<1x8x4xf32>, vector<1x8x4xf32> -> vector<8x8x4xf32>
    %cst_52 = arith.constant 0.000000e+00 : f32
    %513 = vector.broadcast %cst_52 : f32 to vector<1x8x4xf32>
    %514 = tpu.concatenate %513, %512, %513 in 0 : vector<1x8x4xf32>, vector<8x8x4xf32>, vector<1x8x4xf32> -> vector<10x8x4xf32>
    %cst_53 = arith.constant 0.000000e+00 : f32
    %515 = vector.broadcast %cst_53 : f32 to vector<10x1x4xf32>
    %516 = tpu.concatenate %515, %514, %515 in 1 : vector<10x1x4xf32>, vector<10x8x4xf32>, vector<10x1x4xf32> -> vector<10x10x4xf32>
    %517 = vector.extract_strided_slice %516 {offsets = [0, 0, 0], sizes = [1, 8, 4], strides = [1, 1, 1]} : vector<10x10x4xf32> to vector<1x8x4xf32>
    %518 = vector.shape_cast %517 : vector<1x8x4xf32> to vector<8x4xf32>
    %519 = vector.extract_strided_slice %516 {offsets = [1, 0, 0], sizes = [1, 8, 4], strides = [1, 1, 1]} : vector<10x10x4xf32> to vector<1x8x4xf32>
    %520 = vector.shape_cast %519 : vector<1x8x4xf32> to vector<8x4xf32>
    %521 = tpu.concatenate %518, %520 in 0 : vector<8x4xf32>, vector<8x4xf32> -> vector<16x4xf32>
    %522 = vector.extract_strided_slice %516 {offsets = [0, 1, 0], sizes = [1, 8, 4], strides = [1, 1, 1]} : vector<10x10x4xf32> to vector<1x8x4xf32>
    %523 = vector.shape_cast %522 : vector<1x8x4xf32> to vector<8x4xf32>
    %524 = vector.extract_strided_slice %516 {offsets = [1, 1, 0], sizes = [1, 8, 4], strides = [1, 1, 1]} : vector<10x10x4xf32> to vector<1x8x4xf32>
    %525 = vector.shape_cast %524 : vector<1x8x4xf32> to vector<8x4xf32>
    %526 = tpu.concatenate %523, %525 in 0 : vector<8x4xf32>, vector<8x4xf32> -> vector<16x4xf32>
    %527 = vector.extract_strided_slice %516 {offsets = [0, 2, 0], sizes = [1, 8, 4], strides = [1, 1, 1]} : vector<10x10x4xf32> to vector<1x8x4xf32>
    %528 = vector.shape_cast %527 : vector<1x8x4xf32> to vector<8x4xf32>
    %529 = vector.extract_strided_slice %516 {offsets = [1, 2, 0], sizes = [1, 8, 4], strides = [1, 1, 1]} : vector<10x10x4xf32> to vector<1x8x4xf32>
    %530 = vector.shape_cast %529 : vector<1x8x4xf32> to vector<8x4xf32>
    %531 = tpu.concatenate %528, %530 in 0 : vector<8x4xf32>, vector<8x4xf32> -> vector<16x4xf32>
    %532 = vector.extract_strided_slice %516 {offsets = [1, 0, 0], sizes = [1, 8, 4], strides = [1, 1, 1]} : vector<10x10x4xf32> to vector<1x8x4xf32>
    %533 = vector.shape_cast %532 : vector<1x8x4xf32> to vector<8x4xf32>
    %534 = vector.extract_strided_slice %516 {offsets = [2, 0, 0], sizes = [1, 8, 4], strides = [1, 1, 1]} : vector<10x10x4xf32> to vector<1x8x4xf32>
    %535 = vector.shape_cast %534 : vector<1x8x4xf32> to vector<8x4xf32>
    %536 = tpu.concatenate %533, %535 in 0 : vector<8x4xf32>, vector<8x4xf32> -> vector<16x4xf32>
    %537 = vector.extract_strided_slice %516 {offsets = [1, 1, 0], sizes = [1, 8, 4], strides = [1, 1, 1]} : vector<10x10x4xf32> to vector<1x8x4xf32>
    %538 = vector.shape_cast %537 : vector<1x8x4xf32> to vector<8x4xf32>
    %539 = vector.extract_strided_slice %516 {offsets = [2, 1, 0], sizes = [1, 8, 4], strides = [1, 1, 1]} : vector<10x10x4xf32> to vector<1x8x4xf32>
    %540 = vector.shape_cast %539 : vector<1x8x4xf32> to vector<8x4xf32>
    %541 = tpu.concatenate %538, %540 in 0 : vector<8x4xf32>, vector<8x4xf32> -> vector<16x4xf32>
    %542 = vector.extract_strided_slice %516 {offsets = [1, 2, 0], sizes = [1, 8, 4], strides = [1, 1, 1]} : vector<10x10x4xf32> to vector<1x8x4xf32>
    %543 = vector.shape_cast %542 : vector<1x8x4xf32> to vector<8x4xf32>
    %544 = vector.extract_strided_slice %516 {offsets = [2, 2, 0], sizes = [1, 8, 4], strides = [1, 1, 1]} : vector<10x10x4xf32> to vector<1x8x4xf32>
    %545 = vector.shape_cast %544 : vector<1x8x4xf32> to vector<8x4xf32>
    %546 = tpu.concatenate %543, %545 in 0 : vector<8x4xf32>, vector<8x4xf32> -> vector<16x4xf32>
    %547 = vector.extract_strided_slice %516 {offsets = [2, 0, 0], sizes = [1, 8, 4], strides = [1, 1, 1]} : vector<10x10x4xf32> to vector<1x8x4xf32>
    %548 = vector.shape_cast %547 : vector<1x8x4xf32> to vector<8x4xf32>
    %549 = vector.extract_strided_slice %516 {offsets = [3, 0, 0], sizes = [1, 8, 4], strides = [1, 1, 1]} : vector<10x10x4xf32> to vector<1x8x4xf32>
    %550 = vector.shape_cast %549 : vector<1x8x4xf32> to vector<8x4xf32>
    %551 = tpu.concatenate %548, %550 in 0 : vector<8x4xf32>, vector<8x4xf32> -> vector<16x4xf32>
    %552 = vector.extract_strided_slice %516 {offsets = [2, 1, 0], sizes = [1, 8, 4], strides = [1, 1, 1]} : vector<10x10x4xf32> to vector<1x8x4xf32>
    %553 = vector.shape_cast %552 : vector<1x8x4xf32> to vector<8x4xf32>
    %554 = vector.extract_strided_slice %516 {offsets = [3, 1, 0], sizes = [1, 8, 4], strides = [1, 1, 1]} : vector<10x10x4xf32> to vector<1x8x4xf32>
    %555 = vector.shape_cast %554 : vector<1x8x4xf32> to vector<8x4xf32>
    %556 = tpu.concatenate %553, %555 in 0 : vector<8x4xf32>, vector<8x4xf32> -> vector<16x4xf32>
    %557 = vector.extract_strided_slice %516 {offsets = [2, 2, 0], sizes = [1, 8, 4], strides = [1, 1, 1]} : vector<10x10x4xf32> to vector<1x8x4xf32>
    %558 = vector.shape_cast %557 : vector<1x8x4xf32> to vector<8x4xf32>
    %559 = vector.extract_strided_slice %516 {offsets = [3, 2, 0], sizes = [1, 8, 4], strides = [1, 1, 1]} : vector<10x10x4xf32> to vector<1x8x4xf32>
    %560 = vector.shape_cast %559 : vector<1x8x4xf32> to vector<8x4xf32>
    %561 = tpu.concatenate %558, %560 in 0 : vector<8x4xf32>, vector<8x4xf32> -> vector<16x4xf32>
    %562 = tpu.concatenate %521, %526, %531, %536, %541, %546, %551, %556, %561 in 1 : vector<16x4xf32>, vector<16x4xf32>, vector<16x4xf32>, vector<16x4xf32>, vector<16x4xf32>, vector<16x4xf32>, vector<16x4xf32>, vector<16x4xf32>, vector<16x4xf32> -> vector<16x36xf32>
    %cst_54 = arith.constant dense<0.000000e+00> : vector<16x8xf32>
    %563 = tpu.matmul %562, %1, %cst_54 {dimension_numbers = #tpu.dot_dimension_numbers<[1], [0], [0], [1], [0, 0, 1, 1], [], []>} : vector<16x36xf32>, vector<36x8xf32>, vector<16x8xf32> -> vector<16x8xf32>
    %564 = arith.mulf %563, %10 : vector<16x8xf32>
    %565 = arith.addf %564, %13 : vector<16x8xf32>
    %cst_55 = arith.constant 0.000000e+00 : f32
    %566 = vector.broadcast %cst_55 : f32 to vector<16x8xf32>
    %567 = arith.maximumf %565, %566 : vector<16x8xf32>
    %568 = vector.extract_strided_slice %567 {offsets = [0, 0], sizes = [8, 8], strides = [1, 1]} : vector<16x8xf32> to vector<8x8xf32>
    %569 = vector.extract_strided_slice %567 {offsets = [8, 0], sizes = [8, 8], strides = [1, 1]} : vector<16x8xf32> to vector<8x8xf32>
    %570 = arith.maximumf %568, %569 : vector<8x8xf32>
    %cst_56 = arith.constant dense<0.000000e+00> : vector<4x8xf32>
    %571 = tpu.matmul %34, %570, %cst_56 {dimension_numbers = #tpu.dot_dimension_numbers<[1], [0], [0], [1], [0, 0, 1, 1], [], []>} : vector<4x8xf32>, vector<8x8xf32>, vector<4x8xf32> -> vector<4x8xf32>
    %cst_57 = arith.constant dense<0.000000e+00> : vector<4x8xf32>
    %572 = tpu.matmul %41, %570, %cst_57 {dimension_numbers = #tpu.dot_dimension_numbers<[1], [0], [0], [1], [0, 0, 1, 1], [], []>} : vector<4x8xf32>, vector<8x8xf32>, vector<4x8xf32> -> vector<4x8xf32>
    %573 = arith.maximumf %571, %572 : vector<4x8xf32>
    %574 = vector.extract_strided_slice %516 {offsets = [2, 0, 0], sizes = [1, 8, 4], strides = [1, 1, 1]} : vector<10x10x4xf32> to vector<1x8x4xf32>
    %575 = vector.shape_cast %574 : vector<1x8x4xf32> to vector<8x4xf32>
    %576 = vector.extract_strided_slice %516 {offsets = [3, 0, 0], sizes = [1, 8, 4], strides = [1, 1, 1]} : vector<10x10x4xf32> to vector<1x8x4xf32>
    %577 = vector.shape_cast %576 : vector<1x8x4xf32> to vector<8x4xf32>
    %578 = tpu.concatenate %575, %577 in 0 : vector<8x4xf32>, vector<8x4xf32> -> vector<16x4xf32>
    %579 = vector.extract_strided_slice %516 {offsets = [2, 1, 0], sizes = [1, 8, 4], strides = [1, 1, 1]} : vector<10x10x4xf32> to vector<1x8x4xf32>
    %580 = vector.shape_cast %579 : vector<1x8x4xf32> to vector<8x4xf32>
    %581 = vector.extract_strided_slice %516 {offsets = [3, 1, 0], sizes = [1, 8, 4], strides = [1, 1, 1]} : vector<10x10x4xf32> to vector<1x8x4xf32>
    %582 = vector.shape_cast %581 : vector<1x8x4xf32> to vector<8x4xf32>
    %583 = tpu.concatenate %580, %582 in 0 : vector<8x4xf32>, vector<8x4xf32> -> vector<16x4xf32>
    %584 = vector.extract_strided_slice %516 {offsets = [2, 2, 0], sizes = [1, 8, 4], strides = [1, 1, 1]} : vector<10x10x4xf32> to vector<1x8x4xf32>
    %585 = vector.shape_cast %584 : vector<1x8x4xf32> to vector<8x4xf32>
    %586 = vector.extract_strided_slice %516 {offsets = [3, 2, 0], sizes = [1, 8, 4], strides = [1, 1, 1]} : vector<10x10x4xf32> to vector<1x8x4xf32>
    %587 = vector.shape_cast %586 : vector<1x8x4xf32> to vector<8x4xf32>
    %588 = tpu.concatenate %585, %587 in 0 : vector<8x4xf32>, vector<8x4xf32> -> vector<16x4xf32>
    %589 = vector.extract_strided_slice %516 {offsets = [3, 0, 0], sizes = [1, 8, 4], strides = [1, 1, 1]} : vector<10x10x4xf32> to vector<1x8x4xf32>
    %590 = vector.shape_cast %589 : vector<1x8x4xf32> to vector<8x4xf32>
    %591 = vector.extract_strided_slice %516 {offsets = [4, 0, 0], sizes = [1, 8, 4], strides = [1, 1, 1]} : vector<10x10x4xf32> to vector<1x8x4xf32>
    %592 = vector.shape_cast %591 : vector<1x8x4xf32> to vector<8x4xf32>
    %593 = tpu.concatenate %590, %592 in 0 : vector<8x4xf32>, vector<8x4xf32> -> vector<16x4xf32>
    %594 = vector.extract_strided_slice %516 {offsets = [3, 1, 0], sizes = [1, 8, 4], strides = [1, 1, 1]} : vector<10x10x4xf32> to vector<1x8x4xf32>
    %595 = vector.shape_cast %594 : vector<1x8x4xf32> to vector<8x4xf32>
    %596 = vector.extract_strided_slice %516 {offsets = [4, 1, 0], sizes = [1, 8, 4], strides = [1, 1, 1]} : vector<10x10x4xf32> to vector<1x8x4xf32>
    %597 = vector.shape_cast %596 : vector<1x8x4xf32> to vector<8x4xf32>
    %598 = tpu.concatenate %595, %597 in 0 : vector<8x4xf32>, vector<8x4xf32> -> vector<16x4xf32>
    %599 = vector.extract_strided_slice %516 {offsets = [3, 2, 0], sizes = [1, 8, 4], strides = [1, 1, 1]} : vector<10x10x4xf32> to vector<1x8x4xf32>
    %600 = vector.shape_cast %599 : vector<1x8x4xf32> to vector<8x4xf32>
    %601 = vector.extract_strided_slice %516 {offsets = [4, 2, 0], sizes = [1, 8, 4], strides = [1, 1, 1]} : vector<10x10x4xf32> to vector<1x8x4xf32>
    %602 = vector.shape_cast %601 : vector<1x8x4xf32> to vector<8x4xf32>
    %603 = tpu.concatenate %600, %602 in 0 : vector<8x4xf32>, vector<8x4xf32> -> vector<16x4xf32>
    %604 = vector.extract_strided_slice %516 {offsets = [4, 0, 0], sizes = [1, 8, 4], strides = [1, 1, 1]} : vector<10x10x4xf32> to vector<1x8x4xf32>
    %605 = vector.shape_cast %604 : vector<1x8x4xf32> to vector<8x4xf32>
    %606 = vector.extract_strided_slice %516 {offsets = [5, 0, 0], sizes = [1, 8, 4], strides = [1, 1, 1]} : vector<10x10x4xf32> to vector<1x8x4xf32>
    %607 = vector.shape_cast %606 : vector<1x8x4xf32> to vector<8x4xf32>
    %608 = tpu.concatenate %605, %607 in 0 : vector<8x4xf32>, vector<8x4xf32> -> vector<16x4xf32>
    %609 = vector.extract_strided_slice %516 {offsets = [4, 1, 0], sizes = [1, 8, 4], strides = [1, 1, 1]} : vector<10x10x4xf32> to vector<1x8x4xf32>
    %610 = vector.shape_cast %609 : vector<1x8x4xf32> to vector<8x4xf32>
    %611 = vector.extract_strided_slice %516 {offsets = [5, 1, 0], sizes = [1, 8, 4], strides = [1, 1, 1]} : vector<10x10x4xf32> to vector<1x8x4xf32>
    %612 = vector.shape_cast %611 : vector<1x8x4xf32> to vector<8x4xf32>
    %613 = tpu.concatenate %610, %612 in 0 : vector<8x4xf32>, vector<8x4xf32> -> vector<16x4xf32>
    %614 = vector.extract_strided_slice %516 {offsets = [4, 2, 0], sizes = [1, 8, 4], strides = [1, 1, 1]} : vector<10x10x4xf32> to vector<1x8x4xf32>
    %615 = vector.shape_cast %614 : vector<1x8x4xf32> to vector<8x4xf32>
    %616 = vector.extract_strided_slice %516 {offsets = [5, 2, 0], sizes = [1, 8, 4], strides = [1, 1, 1]} : vector<10x10x4xf32> to vector<1x8x4xf32>
    %617 = vector.shape_cast %616 : vector<1x8x4xf32> to vector<8x4xf32>
    %618 = tpu.concatenate %615, %617 in 0 : vector<8x4xf32>, vector<8x4xf32> -> vector<16x4xf32>
    %619 = tpu.concatenate %578, %583, %588, %593, %598, %603, %608, %613, %618 in 1 : vector<16x4xf32>, vector<16x4xf32>, vector<16x4xf32>, vector<16x4xf32>, vector<16x4xf32>, vector<16x4xf32>, vector<16x4xf32>, vector<16x4xf32>, vector<16x4xf32> -> vector<16x36xf32>
    %cst_58 = arith.constant dense<0.000000e+00> : vector<16x8xf32>
    %620 = tpu.matmul %619, %1, %cst_58 {dimension_numbers = #tpu.dot_dimension_numbers<[1], [0], [0], [1], [0, 0, 1, 1], [], []>} : vector<16x36xf32>, vector<36x8xf32>, vector<16x8xf32> -> vector<16x8xf32>
    %621 = arith.mulf %620, %10 : vector<16x8xf32>
    %622 = arith.addf %621, %13 : vector<16x8xf32>
    %cst_59 = arith.constant 0.000000e+00 : f32
    %623 = vector.broadcast %cst_59 : f32 to vector<16x8xf32>
    %624 = arith.maximumf %622, %623 : vector<16x8xf32>
    %625 = vector.extract_strided_slice %624 {offsets = [0, 0], sizes = [8, 8], strides = [1, 1]} : vector<16x8xf32> to vector<8x8xf32>
    %626 = vector.extract_strided_slice %624 {offsets = [8, 0], sizes = [8, 8], strides = [1, 1]} : vector<16x8xf32> to vector<8x8xf32>
    %627 = arith.maximumf %625, %626 : vector<8x8xf32>
    %cst_60 = arith.constant dense<0.000000e+00> : vector<4x8xf32>
    %628 = tpu.matmul %34, %627, %cst_60 {dimension_numbers = #tpu.dot_dimension_numbers<[1], [0], [0], [1], [0, 0, 1, 1], [], []>} : vector<4x8xf32>, vector<8x8xf32>, vector<4x8xf32> -> vector<4x8xf32>
    %cst_61 = arith.constant dense<0.000000e+00> : vector<4x8xf32>
    %629 = tpu.matmul %41, %627, %cst_61 {dimension_numbers = #tpu.dot_dimension_numbers<[1], [0], [0], [1], [0, 0, 1, 1], [], []>} : vector<4x8xf32>, vector<8x8xf32>, vector<4x8xf32> -> vector<4x8xf32>
    %630 = arith.maximumf %628, %629 : vector<4x8xf32>
    %631 = vector.extract_strided_slice %516 {offsets = [4, 0, 0], sizes = [1, 8, 4], strides = [1, 1, 1]} : vector<10x10x4xf32> to vector<1x8x4xf32>
    %632 = vector.shape_cast %631 : vector<1x8x4xf32> to vector<8x4xf32>
    %633 = vector.extract_strided_slice %516 {offsets = [5, 0, 0], sizes = [1, 8, 4], strides = [1, 1, 1]} : vector<10x10x4xf32> to vector<1x8x4xf32>
    %634 = vector.shape_cast %633 : vector<1x8x4xf32> to vector<8x4xf32>
    %635 = tpu.concatenate %632, %634 in 0 : vector<8x4xf32>, vector<8x4xf32> -> vector<16x4xf32>
    %636 = vector.extract_strided_slice %516 {offsets = [4, 1, 0], sizes = [1, 8, 4], strides = [1, 1, 1]} : vector<10x10x4xf32> to vector<1x8x4xf32>
    %637 = vector.shape_cast %636 : vector<1x8x4xf32> to vector<8x4xf32>
    %638 = vector.extract_strided_slice %516 {offsets = [5, 1, 0], sizes = [1, 8, 4], strides = [1, 1, 1]} : vector<10x10x4xf32> to vector<1x8x4xf32>
    %639 = vector.shape_cast %638 : vector<1x8x4xf32> to vector<8x4xf32>
    %640 = tpu.concatenate %637, %639 in 0 : vector<8x4xf32>, vector<8x4xf32> -> vector<16x4xf32>
    %641 = vector.extract_strided_slice %516 {offsets = [4, 2, 0], sizes = [1, 8, 4], strides = [1, 1, 1]} : vector<10x10x4xf32> to vector<1x8x4xf32>
    %642 = vector.shape_cast %641 : vector<1x8x4xf32> to vector<8x4xf32>
    %643 = vector.extract_strided_slice %516 {offsets = [5, 2, 0], sizes = [1, 8, 4], strides = [1, 1, 1]} : vector<10x10x4xf32> to vector<1x8x4xf32>
    %644 = vector.shape_cast %643 : vector<1x8x4xf32> to vector<8x4xf32>
    %645 = tpu.concatenate %642, %644 in 0 : vector<8x4xf32>, vector<8x4xf32> -> vector<16x4xf32>
    %646 = vector.extract_strided_slice %516 {offsets = [5, 0, 0], sizes = [1, 8, 4], strides = [1, 1, 1]} : vector<10x10x4xf32> to vector<1x8x4xf32>
    %647 = vector.shape_cast %646 : vector<1x8x4xf32> to vector<8x4xf32>
    %648 = vector.extract_strided_slice %516 {offsets = [6, 0, 0], sizes = [1, 8, 4], strides = [1, 1, 1]} : vector<10x10x4xf32> to vector<1x8x4xf32>
    %649 = vector.shape_cast %648 : vector<1x8x4xf32> to vector<8x4xf32>
    %650 = tpu.concatenate %647, %649 in 0 : vector<8x4xf32>, vector<8x4xf32> -> vector<16x4xf32>
    %651 = vector.extract_strided_slice %516 {offsets = [5, 1, 0], sizes = [1, 8, 4], strides = [1, 1, 1]} : vector<10x10x4xf32> to vector<1x8x4xf32>
    %652 = vector.shape_cast %651 : vector<1x8x4xf32> to vector<8x4xf32>
    %653 = vector.extract_strided_slice %516 {offsets = [6, 1, 0], sizes = [1, 8, 4], strides = [1, 1, 1]} : vector<10x10x4xf32> to vector<1x8x4xf32>
    %654 = vector.shape_cast %653 : vector<1x8x4xf32> to vector<8x4xf32>
    %655 = tpu.concatenate %652, %654 in 0 : vector<8x4xf32>, vector<8x4xf32> -> vector<16x4xf32>
    %656 = vector.extract_strided_slice %516 {offsets = [5, 2, 0], sizes = [1, 8, 4], strides = [1, 1, 1]} : vector<10x10x4xf32> to vector<1x8x4xf32>
    %657 = vector.shape_cast %656 : vector<1x8x4xf32> to vector<8x4xf32>
    %658 = vector.extract_strided_slice %516 {offsets = [6, 2, 0], sizes = [1, 8, 4], strides = [1, 1, 1]} : vector<10x10x4xf32> to vector<1x8x4xf32>
    %659 = vector.shape_cast %658 : vector<1x8x4xf32> to vector<8x4xf32>
    %660 = tpu.concatenate %657, %659 in 0 : vector<8x4xf32>, vector<8x4xf32> -> vector<16x4xf32>
    %661 = vector.extract_strided_slice %516 {offsets = [6, 0, 0], sizes = [1, 8, 4], strides = [1, 1, 1]} : vector<10x10x4xf32> to vector<1x8x4xf32>
    %662 = vector.shape_cast %661 : vector<1x8x4xf32> to vector<8x4xf32>
    %663 = vector.extract_strided_slice %516 {offsets = [7, 0, 0], sizes = [1, 8, 4], strides = [1, 1, 1]} : vector<10x10x4xf32> to vector<1x8x4xf32>
    %664 = vector.shape_cast %663 : vector<1x8x4xf32> to vector<8x4xf32>
    %665 = tpu.concatenate %662, %664 in 0 : vector<8x4xf32>, vector<8x4xf32> -> vector<16x4xf32>
    %666 = vector.extract_strided_slice %516 {offsets = [6, 1, 0], sizes = [1, 8, 4], strides = [1, 1, 1]} : vector<10x10x4xf32> to vector<1x8x4xf32>
    %667 = vector.shape_cast %666 : vector<1x8x4xf32> to vector<8x4xf32>
    %668 = vector.extract_strided_slice %516 {offsets = [7, 1, 0], sizes = [1, 8, 4], strides = [1, 1, 1]} : vector<10x10x4xf32> to vector<1x8x4xf32>
    %669 = vector.shape_cast %668 : vector<1x8x4xf32> to vector<8x4xf32>
    %670 = tpu.concatenate %667, %669 in 0 : vector<8x4xf32>, vector<8x4xf32> -> vector<16x4xf32>
    %671 = vector.extract_strided_slice %516 {offsets = [6, 2, 0], sizes = [1, 8, 4], strides = [1, 1, 1]} : vector<10x10x4xf32> to vector<1x8x4xf32>
    %672 = vector.shape_cast %671 : vector<1x8x4xf32> to vector<8x4xf32>
    %673 = vector.extract_strided_slice %516 {offsets = [7, 2, 0], sizes = [1, 8, 4], strides = [1, 1, 1]} : vector<10x10x4xf32> to vector<1x8x4xf32>
    %674 = vector.shape_cast %673 : vector<1x8x4xf32> to vector<8x4xf32>
    %675 = tpu.concatenate %672, %674 in 0 : vector<8x4xf32>, vector<8x4xf32> -> vector<16x4xf32>
    %676 = tpu.concatenate %635, %640, %645, %650, %655, %660, %665, %670, %675 in 1 : vector<16x4xf32>, vector<16x4xf32>, vector<16x4xf32>, vector<16x4xf32>, vector<16x4xf32>, vector<16x4xf32>, vector<16x4xf32>, vector<16x4xf32>, vector<16x4xf32> -> vector<16x36xf32>
    %cst_62 = arith.constant dense<0.000000e+00> : vector<16x8xf32>
    %677 = tpu.matmul %676, %1, %cst_62 {dimension_numbers = #tpu.dot_dimension_numbers<[1], [0], [0], [1], [0, 0, 1, 1], [], []>} : vector<16x36xf32>, vector<36x8xf32>, vector<16x8xf32> -> vector<16x8xf32>
    %678 = arith.mulf %677, %10 : vector<16x8xf32>
    %679 = arith.addf %678, %13 : vector<16x8xf32>
    %cst_63 = arith.constant 0.000000e+00 : f32
    %680 = vector.broadcast %cst_63 : f32 to vector<16x8xf32>
    %681 = arith.maximumf %679, %680 : vector<16x8xf32>
    %682 = vector.extract_strided_slice %681 {offsets = [0, 0], sizes = [8, 8], strides = [1, 1]} : vector<16x8xf32> to vector<8x8xf32>
    %683 = vector.extract_strided_slice %681 {offsets = [8, 0], sizes = [8, 8], strides = [1, 1]} : vector<16x8xf32> to vector<8x8xf32>
    %684 = arith.maximumf %682, %683 : vector<8x8xf32>
    %cst_64 = arith.constant dense<0.000000e+00> : vector<4x8xf32>
    %685 = tpu.matmul %34, %684, %cst_64 {dimension_numbers = #tpu.dot_dimension_numbers<[1], [0], [0], [1], [0, 0, 1, 1], [], []>} : vector<4x8xf32>, vector<8x8xf32>, vector<4x8xf32> -> vector<4x8xf32>
    %cst_65 = arith.constant dense<0.000000e+00> : vector<4x8xf32>
    %686 = tpu.matmul %41, %684, %cst_65 {dimension_numbers = #tpu.dot_dimension_numbers<[1], [0], [0], [1], [0, 0, 1, 1], [], []>} : vector<4x8xf32>, vector<8x8xf32>, vector<4x8xf32> -> vector<4x8xf32>
    %687 = arith.maximumf %685, %686 : vector<4x8xf32>
    %688 = vector.extract_strided_slice %516 {offsets = [6, 0, 0], sizes = [1, 8, 4], strides = [1, 1, 1]} : vector<10x10x4xf32> to vector<1x8x4xf32>
    %689 = vector.shape_cast %688 : vector<1x8x4xf32> to vector<8x4xf32>
    %690 = vector.extract_strided_slice %516 {offsets = [7, 0, 0], sizes = [1, 8, 4], strides = [1, 1, 1]} : vector<10x10x4xf32> to vector<1x8x4xf32>
    %691 = vector.shape_cast %690 : vector<1x8x4xf32> to vector<8x4xf32>
    %692 = tpu.concatenate %689, %691 in 0 : vector<8x4xf32>, vector<8x4xf32> -> vector<16x4xf32>
    %693 = vector.extract_strided_slice %516 {offsets = [6, 1, 0], sizes = [1, 8, 4], strides = [1, 1, 1]} : vector<10x10x4xf32> to vector<1x8x4xf32>
    %694 = vector.shape_cast %693 : vector<1x8x4xf32> to vector<8x4xf32>
    %695 = vector.extract_strided_slice %516 {offsets = [7, 1, 0], sizes = [1, 8, 4], strides = [1, 1, 1]} : vector<10x10x4xf32> to vector<1x8x4xf32>
    %696 = vector.shape_cast %695 : vector<1x8x4xf32> to vector<8x4xf32>
    %697 = tpu.concatenate %694, %696 in 0 : vector<8x4xf32>, vector<8x4xf32> -> vector<16x4xf32>
    %698 = vector.extract_strided_slice %516 {offsets = [6, 2, 0], sizes = [1, 8, 4], strides = [1, 1, 1]} : vector<10x10x4xf32> to vector<1x8x4xf32>
    %699 = vector.shape_cast %698 : vector<1x8x4xf32> to vector<8x4xf32>
    %700 = vector.extract_strided_slice %516 {offsets = [7, 2, 0], sizes = [1, 8, 4], strides = [1, 1, 1]} : vector<10x10x4xf32> to vector<1x8x4xf32>
    %701 = vector.shape_cast %700 : vector<1x8x4xf32> to vector<8x4xf32>
    %702 = tpu.concatenate %699, %701 in 0 : vector<8x4xf32>, vector<8x4xf32> -> vector<16x4xf32>
    %703 = vector.extract_strided_slice %516 {offsets = [7, 0, 0], sizes = [1, 8, 4], strides = [1, 1, 1]} : vector<10x10x4xf32> to vector<1x8x4xf32>
    %704 = vector.shape_cast %703 : vector<1x8x4xf32> to vector<8x4xf32>
    %705 = vector.extract_strided_slice %516 {offsets = [8, 0, 0], sizes = [1, 8, 4], strides = [1, 1, 1]} : vector<10x10x4xf32> to vector<1x8x4xf32>
    %706 = vector.shape_cast %705 : vector<1x8x4xf32> to vector<8x4xf32>
    %707 = tpu.concatenate %704, %706 in 0 : vector<8x4xf32>, vector<8x4xf32> -> vector<16x4xf32>
    %708 = vector.extract_strided_slice %516 {offsets = [7, 1, 0], sizes = [1, 8, 4], strides = [1, 1, 1]} : vector<10x10x4xf32> to vector<1x8x4xf32>
    %709 = vector.shape_cast %708 : vector<1x8x4xf32> to vector<8x4xf32>
    %710 = vector.extract_strided_slice %516 {offsets = [8, 1, 0], sizes = [1, 8, 4], strides = [1, 1, 1]} : vector<10x10x4xf32> to vector<1x8x4xf32>
    %711 = vector.shape_cast %710 : vector<1x8x4xf32> to vector<8x4xf32>
    %712 = tpu.concatenate %709, %711 in 0 : vector<8x4xf32>, vector<8x4xf32> -> vector<16x4xf32>
    %713 = vector.extract_strided_slice %516 {offsets = [7, 2, 0], sizes = [1, 8, 4], strides = [1, 1, 1]} : vector<10x10x4xf32> to vector<1x8x4xf32>
    %714 = vector.shape_cast %713 : vector<1x8x4xf32> to vector<8x4xf32>
    %715 = vector.extract_strided_slice %516 {offsets = [8, 2, 0], sizes = [1, 8, 4], strides = [1, 1, 1]} : vector<10x10x4xf32> to vector<1x8x4xf32>
    %716 = vector.shape_cast %715 : vector<1x8x4xf32> to vector<8x4xf32>
    %717 = tpu.concatenate %714, %716 in 0 : vector<8x4xf32>, vector<8x4xf32> -> vector<16x4xf32>
    %718 = vector.extract_strided_slice %516 {offsets = [8, 0, 0], sizes = [1, 8, 4], strides = [1, 1, 1]} : vector<10x10x4xf32> to vector<1x8x4xf32>
    %719 = vector.shape_cast %718 : vector<1x8x4xf32> to vector<8x4xf32>
    %720 = vector.extract_strided_slice %516 {offsets = [9, 0, 0], sizes = [1, 8, 4], strides = [1, 1, 1]} : vector<10x10x4xf32> to vector<1x8x4xf32>
    %721 = vector.shape_cast %720 : vector<1x8x4xf32> to vector<8x4xf32>
    %722 = tpu.concatenate %719, %721 in 0 : vector<8x4xf32>, vector<8x4xf32> -> vector<16x4xf32>
    %723 = vector.extract_strided_slice %516 {offsets = [8, 1, 0], sizes = [1, 8, 4], strides = [1, 1, 1]} : vector<10x10x4xf32> to vector<1x8x4xf32>
    %724 = vector.shape_cast %723 : vector<1x8x4xf32> to vector<8x4xf32>
    %725 = vector.extract_strided_slice %516 {offsets = [9, 1, 0], sizes = [1, 8, 4], strides = [1, 1, 1]} : vector<10x10x4xf32> to vector<1x8x4xf32>
    %726 = vector.shape_cast %725 : vector<1x8x4xf32> to vector<8x4xf32>
    %727 = tpu.concatenate %724, %726 in 0 : vector<8x4xf32>, vector<8x4xf32> -> vector<16x4xf32>
    %728 = vector.extract_strided_slice %516 {offsets = [8, 2, 0], sizes = [1, 8, 4], strides = [1, 1, 1]} : vector<10x10x4xf32> to vector<1x8x4xf32>
    %729 = vector.shape_cast %728 : vector<1x8x4xf32> to vector<8x4xf32>
    %730 = vector.extract_strided_slice %516 {offsets = [9, 2, 0], sizes = [1, 8, 4], strides = [1, 1, 1]} : vector<10x10x4xf32> to vector<1x8x4xf32>
    %731 = vector.shape_cast %730 : vector<1x8x4xf32> to vector<8x4xf32>
    %732 = tpu.concatenate %729, %731 in 0 : vector<8x4xf32>, vector<8x4xf32> -> vector<16x4xf32>
    %733 = tpu.concatenate %692, %697, %702, %707, %712, %717, %722, %727, %732 in 1 : vector<16x4xf32>, vector<16x4xf32>, vector<16x4xf32>, vector<16x4xf32>, vector<16x4xf32>, vector<16x4xf32>, vector<16x4xf32>, vector<16x4xf32>, vector<16x4xf32> -> vector<16x36xf32>
    %cst_66 = arith.constant dense<0.000000e+00> : vector<16x8xf32>
    %734 = tpu.matmul %733, %1, %cst_66 {dimension_numbers = #tpu.dot_dimension_numbers<[1], [0], [0], [1], [0, 0, 1, 1], [], []>} : vector<16x36xf32>, vector<36x8xf32>, vector<16x8xf32> -> vector<16x8xf32>
    %735 = arith.mulf %734, %10 : vector<16x8xf32>
    %736 = arith.addf %735, %13 : vector<16x8xf32>
    %cst_67 = arith.constant 0.000000e+00 : f32
    %737 = vector.broadcast %cst_67 : f32 to vector<16x8xf32>
    %738 = arith.maximumf %736, %737 : vector<16x8xf32>
    %739 = vector.extract_strided_slice %738 {offsets = [0, 0], sizes = [8, 8], strides = [1, 1]} : vector<16x8xf32> to vector<8x8xf32>
    %740 = vector.extract_strided_slice %738 {offsets = [8, 0], sizes = [8, 8], strides = [1, 1]} : vector<16x8xf32> to vector<8x8xf32>
    %741 = arith.maximumf %739, %740 : vector<8x8xf32>
    %cst_68 = arith.constant dense<0.000000e+00> : vector<4x8xf32>
    %742 = tpu.matmul %34, %741, %cst_68 {dimension_numbers = #tpu.dot_dimension_numbers<[1], [0], [0], [1], [0, 0, 1, 1], [], []>} : vector<4x8xf32>, vector<8x8xf32>, vector<4x8xf32> -> vector<4x8xf32>
    %cst_69 = arith.constant dense<0.000000e+00> : vector<4x8xf32>
    %743 = tpu.matmul %41, %741, %cst_69 {dimension_numbers = #tpu.dot_dimension_numbers<[1], [0], [0], [1], [0, 0, 1, 1], [], []>} : vector<4x8xf32>, vector<8x8xf32>, vector<4x8xf32> -> vector<4x8xf32>
    %744 = arith.maximumf %742, %743 : vector<4x8xf32>
    %745 = tpu.concatenate %573, %630, %687, %744 in 0 : vector<4x8xf32>, vector<4x8xf32>, vector<4x8xf32>, vector<4x8xf32> -> vector<16x8xf32>
    %c0_70 = arith.constant 0 : index
    %c0_71 = arith.constant 0 : index
    %746 = vector.load %arg8[%c0_70, %c0_71] : memref<8x160xf32, #tpu.memory_space<vmem>>, vector<8x160xf32>
    %cst_72 = arith.constant dense<0.000000e+00> : vector<16x160xf32>
    %747 = tpu.matmul %745, %746, %cst_72 {dimension_numbers = #tpu.dot_dimension_numbers<[1], [0], [0], [1], [0, 0, 1, 1], [], []>} : vector<16x8xf32>, vector<8x160xf32>, vector<16x160xf32> -> vector<16x160xf32>
    %c0_73 = arith.constant 0 : index
    %c0_74 = arith.constant 0 : index
    %748 = vector.load %arg9[%c0_73, %c0_74] : memref<1x10xf32, #tpu.memory_space<vmem>>, vector<1x10xf32>
    %749 = vector.extract_strided_slice %747 {offsets = [0, 0], sizes = [1, 10], strides = [1, 1]} : vector<16x160xf32> to vector<1x10xf32>
    %750 = arith.addf %748, %749 : vector<1x10xf32>
    %751 = vector.extract_strided_slice %747 {offsets = [1, 10], sizes = [1, 10], strides = [1, 1]} : vector<16x160xf32> to vector<1x10xf32>
    %752 = arith.addf %750, %751 : vector<1x10xf32>
    %753 = vector.extract_strided_slice %747 {offsets = [2, 20], sizes = [1, 10], strides = [1, 1]} : vector<16x160xf32> to vector<1x10xf32>
    %754 = arith.addf %752, %753 : vector<1x10xf32>
    %755 = vector.extract_strided_slice %747 {offsets = [3, 30], sizes = [1, 10], strides = [1, 1]} : vector<16x160xf32> to vector<1x10xf32>
    %756 = arith.addf %754, %755 : vector<1x10xf32>
    %757 = vector.extract_strided_slice %747 {offsets = [4, 40], sizes = [1, 10], strides = [1, 1]} : vector<16x160xf32> to vector<1x10xf32>
    %758 = arith.addf %756, %757 : vector<1x10xf32>
    %759 = vector.extract_strided_slice %747 {offsets = [5, 50], sizes = [1, 10], strides = [1, 1]} : vector<16x160xf32> to vector<1x10xf32>
    %760 = arith.addf %758, %759 : vector<1x10xf32>
    %761 = vector.extract_strided_slice %747 {offsets = [6, 60], sizes = [1, 10], strides = [1, 1]} : vector<16x160xf32> to vector<1x10xf32>
    %762 = arith.addf %760, %761 : vector<1x10xf32>
    %763 = vector.extract_strided_slice %747 {offsets = [7, 70], sizes = [1, 10], strides = [1, 1]} : vector<16x160xf32> to vector<1x10xf32>
    %764 = arith.addf %762, %763 : vector<1x10xf32>
    %765 = vector.extract_strided_slice %747 {offsets = [8, 80], sizes = [1, 10], strides = [1, 1]} : vector<16x160xf32> to vector<1x10xf32>
    %766 = arith.addf %764, %765 : vector<1x10xf32>
    %767 = vector.extract_strided_slice %747 {offsets = [9, 90], sizes = [1, 10], strides = [1, 1]} : vector<16x160xf32> to vector<1x10xf32>
    %768 = arith.addf %766, %767 : vector<1x10xf32>
    %769 = vector.extract_strided_slice %747 {offsets = [10, 100], sizes = [1, 10], strides = [1, 1]} : vector<16x160xf32> to vector<1x10xf32>
    %770 = arith.addf %768, %769 : vector<1x10xf32>
    %771 = vector.extract_strided_slice %747 {offsets = [11, 110], sizes = [1, 10], strides = [1, 1]} : vector<16x160xf32> to vector<1x10xf32>
    %772 = arith.addf %770, %771 : vector<1x10xf32>
    %773 = vector.extract_strided_slice %747 {offsets = [12, 120], sizes = [1, 10], strides = [1, 1]} : vector<16x160xf32> to vector<1x10xf32>
    %774 = arith.addf %772, %773 : vector<1x10xf32>
    %775 = vector.extract_strided_slice %747 {offsets = [13, 130], sizes = [1, 10], strides = [1, 1]} : vector<16x160xf32> to vector<1x10xf32>
    %776 = arith.addf %774, %775 : vector<1x10xf32>
    %777 = vector.extract_strided_slice %747 {offsets = [14, 140], sizes = [1, 10], strides = [1, 1]} : vector<16x160xf32> to vector<1x10xf32>
    %778 = arith.addf %776, %777 : vector<1x10xf32>
    %779 = vector.extract_strided_slice %747 {offsets = [15, 150], sizes = [1, 10], strides = [1, 1]} : vector<16x160xf32> to vector<1x10xf32>
    %780 = arith.addf %778, %779 : vector<1x10xf32>
    %c0_75 = arith.constant 0 : index
    %c0_76 = arith.constant 0 : index
    %c0_77 = arith.constant 0 : index
    %781 = vector.load %arg12[%c0_75, %c0_76, %c0_77] : memref<1x1x10xf32, #tpu.memory_space<vmem>>, vector<1x1x10xf32>
    %782 = vector.shape_cast %781 : vector<1x1x10xf32> to vector<1x10xf32>
    %783 = arith.mulf %780, %782 : vector<1x10xf32>
    %c0_78 = arith.constant 0 : index
    %c0_79 = arith.constant 0 : index
    %784 = vector.load %arg10[%c0_78, %c0_79] : memref<10x2xf32, #tpu.memory_space<vmem>>, vector<10x2xf32>
    %cst_80 = arith.constant dense<0.000000e+00> : vector<1x2xf32>
    %785 = tpu.matmul %783, %784, %cst_80 {dimension_numbers = #tpu.dot_dimension_numbers<[1], [0], [0], [1], [0, 0, 1, 1], [], []>} : vector<1x10xf32>, vector<10x2xf32>, vector<1x2xf32> -> vector<1x2xf32>
    %c0_81 = arith.constant 0 : index
    %c0_82 = arith.constant 0 : index
    %786 = vector.load %arg11[%c0_81, %c0_82] : memref<1x2xf32, #tpu.memory_space<vmem>>, vector<1x2xf32>
    %787 = arith.addf %785, %786 : vector<1x2xf32>
    %c0_83 = arith.constant 0 : index
    %c0_84 = arith.constant 0 : index
    %c0_85 = arith.constant 0 : index
    %788 = vector.load %arg13[%c0_83, %c0_84, %c0_85] : memref<1x1x2xf32, #tpu.memory_space<vmem>>, vector<1x1x2xf32>
    %789 = vector.shape_cast %788 : vector<1x1x2xf32> to vector<1x2xf32>
    %790 = vector.shape_cast %787 : vector<1x2xf32> to vector<1x1x2xf32>
    tpu.vector_store %arg13[%c0_83, %c0_84, %c0_85], %790 {strides = array<i32>} : memref<1x1x2xf32, #tpu.memory_space<vmem>>, vector<1x1x2xf32>,
    return
  }
  func.func @transform_0(%arg0: i32) -> (i32, i32, i32, i32) {
    %c0_i32 = arith.constant 0 : i32
    %c0_i32_0 = arith.constant 0 : i32
    %c0_i32_1 = arith.constant 0 : i32
    %c0_i32_2 = arith.constant 0 : i32
    return %arg0, %c0_i32, %c0_i32_0, %c0_i32_1 : i32, i32, i32, i32
  }
  func.func @transform_1(%arg0: i32) -> (i32, i32) {
    %c0_i32 = arith.constant 0 : i32
    %c0_i32_0 = arith.constant 0 : i32
    %c0_i32_1 = arith.constant 0 : i32
    return %c0_i32, %c0_i32_0 : i32, i32
  }
  func.func @transform_2(%arg0: i32) -> (i32, i32) {
    %c0_i32 = arith.constant 0 : i32
    %c0_i32_0 = arith.constant 0 : i32
    %c0_i32_1 = arith.constant 0 : i32
    return %c0_i32, %c0_i32_0 : i32, i32
  }
  func.func @transform_3(%arg0: i32) -> (i32, i32) {
    %c0_i32 = arith.constant 0 : i32
    %c0_i32_0 = arith.constant 0 : i32
    %c0_i32_1 = arith.constant 0 : i32
    return %c0_i32, %c0_i32_0 : i32, i32
  }
  func.func @transform_4(%arg0: i32) -> (i32, i32) {
    %c0_i32 = arith.constant 0 : i32
    %c0_i32_0 = arith.constant 0 : i32
    %c0_i32_1 = arith.constant 0 : i32
    return %c0_i32, %c0_i32_0 : i32, i32
  }
  func.func @transform_5(%arg0: i32) -> (i32, i32) {
    %c0_i32 = arith.constant 0 : i32
    %c0_i32_0 = arith.constant 0 : i32
    %c0_i32_1 = arith.constant 0 : i32
    return %c0_i32, %c0_i32_0 : i32, i32
  }
  func.func @transform_6(%arg0: i32) -> (i32, i32) {
    %c0_i32 = arith.constant 0 : i32
    %c0_i32_0 = arith.constant 0 : i32
    %c0_i32_1 = arith.constant 0 : i32
    return %c0_i32, %c0_i32_0 : i32, i32
  }
  func.func @transform_7(%arg0: i32) -> (i32, i32) {
    %c0_i32 = arith.constant 0 : i32
    %c0_i32_0 = arith.constant 0 : i32
    %c0_i32_1 = arith.constant 0 : i32
    return %c0_i32, %c0_i32_0 : i32, i32
  }
  func.func @transform_8(%arg0: i32) -> (i32, i32) {
    %c0_i32 = arith.constant 0 : i32
    %c0_i32_0 = arith.constant 0 : i32
    %c0_i32_1 = arith.constant 0 : i32
    return %c0_i32, %c0_i32_0 : i32, i32
  }
  func.func @transform_9(%arg0: i32) -> (i32, i32) {
    %c0_i32 = arith.constant 0 : i32
    %c0_i32_0 = arith.constant 0 : i32
    %c0_i32_1 = arith.constant 0 : i32
    return %c0_i32, %c0_i32_0 : i32, i32
  }
  func.func @transform_10(%arg0: i32) -> (i32, i32) {
    %c0_i32 = arith.constant 0 : i32
    %c0_i32_0 = arith.constant 0 : i32
    %c0_i32_1 = arith.constant 0 : i32
    return %c0_i32, %c0_i32_0 : i32, i32
  }
  func.func @transform_11(%arg0: i32) -> (i32, i32, i32) {
    %c0_i32 = arith.constant 0 : i32
    %c0_i32_0 = arith.constant 0 : i32
    %c0_i32_1 = arith.constant 0 : i32
    return %arg0, %c0_i32, %c0_i32_0 : i32, i32, i32
  }
  func.func @transform_12(%arg0: i32) -> (i32, i32, i32) {
    %c0_i32 = arith.constant 0 : i32
    %c0_i32_0 = arith.constant 0 : i32
    %c0_i32_1 = arith.constant 0 : i32
    return %arg0, %c0_i32, %c0_i32_0 : i32, i32, i32
  }
}

</mosaic_0001>

<bundles_post_ra>
// kernel: tpu_custom_call.1
= control target key start
LH: loop header
LB: loop body
LE: loop exit
PB: predicated region body
PF: predicated region fallthrough
CT: control target
= control target key end

     0   :  { %s6456_s0 = inlined_call_operand.vmem [shape: f32[2,16,16,1], index: 0, kind: input, shape index: {}]   ;;  %s6457_s1 = inlined_call_operand.vmem [shape: f32[9,4], index: 1, kind: input, shape index: {}]   ;;  %s6458_s2 = inlined_call_operand.vmem [shape: f32[1,4], index: 2, kind: input, shape index: {}]   ;;  %s6459_s3 = inlined_call_operand.vmem [shape: f32[1,4], index: 3, kind: input, shape index: {}]   ;;  %s6460_s4 = inlined_call_operand.vmem [shape: f32[36,8], index: 4, kind: input, shape index: {}]   ;;  %s6461_s5 = inlined_call_operand.vmem [shape: f32[1,8], index: 5, kind: input, shape index: {}]   ;;  %s6462_s6 = inlined_call_operand.vmem [shape: f32[1,8], index: 6, kind: input, shape index: {}]   ;;  %s6463_s7 = inlined_call_operand.vmem [shape: f32[8,160], index: 7, kind: input, shape index: {}]   ;;  %s6464_s8 = inlined_call_operand.vmem [shape: f32[1,10], index: 8, kind: input, shape index: {}]   ;;  %s6465_s9 = inlined_call_operand.vmem [shape: f32[10,2], index: 9, kind: input, shape index: {}]   ;;  %s6466_s10 = inlined_call_operand.vmem [shape: f32[1,2], index: 10, kind: input, shape index: {}]   ;;  %s6467_s11 = inlined_call_operand.vmem [shape: f32[2,1,10], index: 11, kind: input, shape index: {}]   ;;  %s6468_s12 = inlined_call_operand.hbm [shape: f32[2,1,2], index: 12, kind: output, shape index: {}]  }
   0x1   :  { %6531 = sst [smem:[#allocation57_spill]] %s6456_s0 }
   0x2   :  { %17 = vsyncpa [#allocation3], 0 }
   0x3   :  { %19 = vsyncpa [#allocation3 + $0x1], 0  ;;  %s3980_s21 = smov 0   ;;  %s3982_s22 = smov 0  }
   0x4   :  { %s3984_s23 = smov 0   ;;  %s3986_s24 = smov 0  }
   0x5 LB: > { %6532 = sst [smem:[#allocation5_spill]] %s3881_s23  ;;  %s4001_s25 = sadd.s32 4294967295, %s3885_s24   ;;  %s3885_s24 = sphi %s3986_s24, %s6737_s24   ;;  %s3881_s23 = sphi %s3984_s23, %s6739_s23   ;;  %s3877_s22 = sphi %s3982_s22, %s6741_s22   ;;  %s3873_s21 = sphi %s3980_s21, %s6740_s21  }
   0x6   : > { %s3643_s26 = sadd.s32 4294967294, %s3885_s24   ;;  %s4005_s27 = sadd.s32 1, %s3885_s24  }
   0x7   : > { %6533 = sst [smem:[#allocation6_spill]] %s4005_s27  ;;  %s294_s28 = sadd.s32 1, %s3881_s23 }
   0x8   : > { %s291_s29 = ssub.s32 %s3885_s24, %s4005_s27  ;;  %p304_p0 = scmp.ne.s32.totalorder %s3881_s23, %s3877_s22 }
   0x9   : > { %p292_p1 = scmp.eq.s32.totalorder %s291_s29, 0  ;;  %p305_p2 = scmp.eq.s32.totalorder %s4001_s25, 1 }
   0xa   : > { %p310_p3 = scmp.ne.s32.totalorder %s3877_s22, %s3873_s21  ;;  %p311_p4 = scmp.eq.s32.totalorder %s3643_s26, 1 }
   0xb   : > { %s4016_s30 = scalar_select %p292_p1, %s3881_s23, %s294_s28  }
   0xc   : > { %p4018_p5 = por %p305_p2, %p304_p0  ;;  %p4022_p6 = por %p311_p4, %p310_p3 }
   0xd   : > { %6534 = sst [smem:[#allocation7_spill]] %s4016_s30  ;;  %p3646_p7 = scmp.ge.s32.totalorder %s3885_s24, 1 }
   0xe   : > { %s6536_s14 = scalar_select %p4022_p6, 1, 0 }
   0xf   : > { %p373_p8 = scmp.lt.s32.totalorder %s3885_s24, 3 }
  0x10   : > { %6537 = sst [smem:[#allocation8_spill]] %s6536_s14 }
  0x11   : > { %p374_p9 = pnand %p3646_p7, %p373_p8 }
  0x13   : > { %377 = sbr.rel (%p374_p9) target bundleno = 2313 (0x909), region = 68 }
  0x18   : > { %vm525_vm0 = vcmask 1040384   ;;  %p417_p10 = scmp.lt.s32.totalorder %s4001_s25, 1  ;;  %v6489_v0 = vmov 0.0   ;;  %vm661_vm1 = vcmask 1046528   ;;  %s6541_s0 = sld [smem:[#allocation57_spill]]  ;;  %vm6526_vm2 = vcmask 1045504  }
  0x19   : > { %v4030_v1 = vrot.slane %v6489_v0, 7  ;;  %s6479_s20 = smov 1   ;;  %s6473_s26 = smov 3   ;;  %vm805_vm3 = vcmask 7168   ;;  %vm6523_vm4 = vcmask 15360   ;;  %vm6524_vm5 = vcmask 23552  }
  0x1a   : > { %s4033_s15 = scalar_select %p417_p10, %s4001_s25, 1  ;;  %vm820_vm6 = vcmask 31744   ;;  %vm825_vm7 = vcmask 39936   ;;  %vm830_vm8 = vcmask 48128   ;;  %vm835_vm9 = vcmask 56320  }
  0x1b   : > { %6538 = vst [vmem:[#allocation9_spill] sm:$0xff] %v4030_v1  ;;  %v4037_v2 = vsel %vm525_vm0, 0.0, %v4030_v1  ;;  %v4041_v3 = vsel %vm525_vm0, %v4030_v1, 0.0  ;;  %v663_v4 = vrot.slane %v4030_v1, 1  ;;  %v676_v7 = vrot.slane %v4030_v1, 2  ;;  %s6481_s28 = smov 4  }
  0x1c   : > { %6539 = vst [vmem:[#allocation10_spill] sm:$0xff] %v4037_v2  ;;  %v6487_v5 = vrot.slane %v4037_v2, 1  ;;  %v6488_v6 = vrot.slane %v4041_v3, 1  ;;  %s3735_s16 = sshll.u32 %s4033_s15, 8  ;;  %v6486_v8 = vrot.slane %v4041_v3, 2  ;;  %v6485_v9 = vrot.slane %v4037_v2, 2 }
  0x1d   : > { %6540 = vst [vmem:[#allocation11_spill] sm:$0xff] %v4041_v3  ;;  %s6469_s29 = smov 2   ;;  %s6475_s17 = smov 6   ;;  %vm840_vm10 = vcmask 64512   ;;  %vm845_vm11 = vcmask 72704   ;;  %vm904_vm14 = vcmask 130048  }
  0x1e   : > { %s4052_s19 = scalar_lea.vmem %s6541_s0, %s3735_s16  ;;  %v4058_v10 = vsel %vm661_vm1, %v6487_v5, %v663_v4  ;;  %v4063_v11 = vsel %vm661_vm1, %v663_v4, %v6488_v6  ;;  %v4088_v22 = vsel %vm6526_vm2, %v6485_v9, %v676_v7  ;;  %v4093_v23 = vsel %vm6526_vm2, %v676_v7, %v6486_v8  ;;  %s6483_s16 = smov 5  }
  0x1f   : > { %6542 = vst [vmem:[#allocation12_spill] sm:$0xff] %v4058_v10  ;;  %v460_v12 = vld [vmem:[%s4052_s19] sm:$0xff]  ;;  %v4067_v13 = vld [vmem:[%s4052_s19 + $0x8] sm:$0xff]  ;;  %v462_v14 = vld [vmem:[%s4052_s19 + $0x10] sm:$0xff]  ;;  %v3803_v15 = vpack.i.bf16 %v4063_v11, %v4058_v10  ;;  %v3808_v31 = vpack.i.bf16 %v4093_v23, %v4088_v22  ;;  %s6477_s18 = smov 7   ;;  %s6552_s0 = smov 1  }
  0x20   : > { %6543 = vst [vmem:[#allocation13_spill] sm:$0xff] %v4063_v11  ;;  %v528_v16 = vrot.slane %v460_v12, 7  ;;  %v529_v17 = vrot.slane %v4067_v13, 7  ;;  %v4074_v18 = vld [vmem:[%s4052_s19 + $0x18] sm:$0xff]  ;;  %v531_v19 = vrot.slane %v462_v14, 7  ;;  %v464_v36 = vld [vmem:[%s4052_s19 + $0x20] sm:$0xff] }
  0x21   : > { %3804 = vrot.lane.b32.xlu0 %v3803_v15, %s6479_s20  ;;  %6544 = vst [vmem:[#allocation14_spill] sm:$0xff] %v4088_v22  ;;  %v532_v26 = vrot.slane %v4074_v18, 7  ;;  %v465_v37 = vld [vmem:[%s4052_s19 + $0x28] sm:$0xff]  ;;  %v534_v41 = vrot.slane %v464_v36, 7  ;;  %v466_v48 = vld [vmem:[%s4052_s19 + $0x30] sm:$0xff]  ;;  %v467_v49 = vld [vmem:[%s4052_s19 + $0x38] sm:$0xff] }
  0x22   : > { %v4078_v20 = vsel %vm525_vm0, 0.0, %v528_v16  ;;  %v4083_v21 = vsel %vm525_vm0, %v528_v16, %v529_v17  ;;  %6545 = vst [vmem:[#allocation15_spill] sm:$0xff] %v4093_v23  ;;  %v4101_v27 = vsel %vm525_vm0, 0.0, %v531_v19  ;;  %v535_v42 = vrot.slane %v465_v37, 7  ;;  %s6553_s30 = smov 4   ;;  %s3896_s27 = smov 12  }
  0x23   : > { %733 = vrot.lane.b32.xlu1 %v4078_v20, %s6473_s26  ;;  %v669_v24 = vrot.slane %v4078_v20, 1  ;;  %v670_v25 = vrot.slane %v4083_v21, 1  ;;  %v687_v28 = vrot.slane %v4101_v27, 1  ;;  %v4110_v30 = vsel %vm525_vm0, %v531_v19, %v532_v26  ;;  %s3897_s14 = smov 16   ;;  %s3912_s23 = smov 126  }
  0x24   : > { %v688_v32 = vrot.slane %v4110_v30, 1  ;;  %v692_v33 = vrot.slane %v4101_v27, 2  ;;  %v693_v34 = vrot.slane %v4110_v30, 2  ;;  %v680_v39 = vrot.slane %v4078_v20, 2 }
  0x25   : > { %v4107_v29 = vsel %vm661_vm1, %v669_v24, %v670_v25  ;;  %v681_v40 = vrot.slane %v4083_v21, 2  ;;  %v4138_v44 = vsel %vm525_vm0, %v534_v41, %v535_v42  ;;  %v4141_v45 = vsel %vm525_vm0, 0.0, %v534_v41  ;;  %v4269_v41 = vld [vmem:[%s4052_s19 + $0x48] sm:$0xff] }
  0x26   : > { %745 = vrot.lane.b32.xlu2 %v4107_v29, %s6481_s28  ;;  %v4120_v35 = vsel %vm661_vm1, %v687_v28, %v688_v32  ;;  %v4128_v38 = vsel %vm6526_vm2, %v692_v33, %v693_v34  ;;  %v699_v46 = vrot.slane %v4141_v45, 1  ;;  %v700_v47 = vrot.slane %v4138_v44, 1 }
  0x27   : > { %v4135_v43 = vsel %vm6526_vm2, %v680_v39, %v681_v40  ;;  %v704_v51 = vrot.slane %v4141_v45, 2  ;;  %v705_v52 = vrot.slane %v4138_v44, 2  ;;  %v537_v53 = vrot.slane %v466_v48, 7 }
  0x28   : > { %v4154_v50 = vsel %vm661_vm1, %v699_v46, %v700_v47  ;;  %v538_v54 = vrot.slane %v467_v49, 7  ;;  %v644_v63 = vsel %vm525_vm0, %v532_v26, 0.0  ;;  %v643_v12 = vsel %vm525_vm0, %v529_v17, 0.0 }
  0x29   : > { %3809 = vrot.lane.b32.xlu0 %v3808_v31, %s6469_s29  ;;  %v4163_v55 = vsel %vm6526_vm2, %v704_v51, %v705_v52  ;;  %v4169_v57 = vsel %vm525_vm0, 0.0, %v537_v53  ;;  %v690_v7 = vrot.slane %v644_v63, 1  ;;  %v672_v15 = vrot.slane %v643_v12, 1  ;;  %v425_v51 = vld [vmem:[%s6457_s1] sm:$0xff] }
  0x2a   : > { %v4166_v56 = vsel %vm525_vm0, %v537_v53, %v538_v54  ;;  %v954_v58 = vrot.slane %v4169_v57, 1  ;;  %v959_v61 = vrot.slane %v4169_v57, 2  ;;  %v695_v16 = vrot.slane %v644_v63, 2 }
  0x2b   : > { %976 = vrot.lane.b32.xlu1 %v4120_v35, %s6479_s20  ;;  %v955_v59 = vrot.slane %v4166_v56, 1  ;;  %v960_v62 = vrot.slane %v4166_v56, 2  ;;  %v4198_v14 = vsel %vm661_vm1, %v688_v32, %v690_v7  ;;  %v673_v13 = vsel %vm661_vm1, %v670_v25, %v672_v15 }
  0x2c   : > { %v683_v18 = vrot.slane %v643_v12, 2  ;;  %v4206_v17 = vsel %vm6526_vm2, %v693_v34, %v695_v16  ;;  %v645_v24 = vsel %vm525_vm0, %v535_v42, 0.0  ;;  %v646_v32 = vsel %vm525_vm0, %v538_v54, 0.0 }
  0x2d   : > { %v4180_v60 = vsel %vm661_vm1, %v954_v58, %v955_v59  ;;  %v4188_v4 = vsel %vm6526_vm2, %v959_v61, %v960_v62  ;;  %v702_v26 = vrot.slane %v645_v24, 1  ;;  %v707_v28 = vrot.slane %v645_v24, 2 }
  0x2e   : > { %988 = vrot.lane.b32.xlu2 %v4128_v38, %s6469_s29  ;;  %s6471_s29 = smov 8   ;;  %v684_v19 = vsel %vm6526_vm2, %v681_v40, %v683_v18  ;;  %v957_v33 = vrot.slane %v646_v32, 1  ;;  %v962_v36 = vrot.slane %v646_v32, 2  ;;  %v468_v40 = vld [vmem:[%s4052_s19 + $0x40] sm:$0xff]  ;;  %vm6525_vm15 = vcmask 97280  }
  0x2f   : > { %v4219_v25 = vsel %vm661_vm1, %v700_v47, %v702_v26  ;;  %v4224_v31 = vsel %vm6526_vm2, %v705_v52, %v707_v28  ;;  %v426_v47 = vld [vmem:[%s6457_s1 + $0x8] sm:$0x1] }
  0x30   : > { %v4238_v34 = vsel %vm661_vm1, %v955_v59, %v957_v33  ;;  %v4243_v37 = vsel %vm6526_vm2, %v960_v62, %v962_v36  ;;  %3651 = vmatpush.msk.msra.mxu0 %vm525_vm0, %v426_v47  ;;  %3658 = vmatpush.msk.msra.mxu3 %vm525_vm0, %v426_v47 }
  0x31   : > { %757 = vrot.lane.b32.xlu0 %v4135_v43, %s6483_s16 }
  0x32   : > { %876 = vmatpush.msra.mxu0 %v425_v51  ;;  %1131 = vmatpush.msra.mxu3 %v425_v51 }
  0x33   : > { %1000 = vrot.lane.b32.xlu1 %v4141_v45, %s6473_s26 }
  0x34   : > { %3672 = vmatpush.msk.msrb.mxu0 %vm525_vm0, %v426_v47 }
  0x36   : > { %769 = vrot.lane.b32.xlu2 %v4101_v27, %s6475_s17  ;;  %1627 = vmatpush.msrb.mxu0 %v425_v51 }
  0x39   : > { %1012 = vrot.lane.b32.xlu0 %v4154_v50, %s6481_s28 }
  0x3b   : > { %781 = vrot.lane.b32.xlu1 %v4120_v35, %s6477_s18 }
  0x3e   : > { %1024 = vrot.lane.b32.xlu2 %v4163_v55, %s6483_s16 }
  0x41   : > { %793 = vrot.lane.b32.xlu0 %v4128_v38, %s6471_s29 }
  0x43   : > { %1036 = vrot.lane.b32.xlu1 %v4169_v57, %s6475_s17 }
  0x46   : > { %1048 = vrot.lane.b32.xlu2 %v4180_v60, %s6477_s18 }
  0x49   : > { %1060 = vrot.lane.b32.xlu0 %v4188_v4, %s6471_s29  ;;  %s6546_s29 = smov 2  }
  0x4b   : > { %735 = vrot.lane.b32.xlu1 %v4083_v21, %s6473_s26 }
  0x4e   : > { %978 = vrot.lane.b32.xlu2 %v4198_v14, %s6479_s20 }
  0x51   : > { %747 = vrot.lane.b32.xlu0 %v673_v13, %s6481_s28 }
  0x53   : > { %990 = vrot.lane.b32.xlu1 %v4206_v17, %s6546_s29 }
  0x56   : > { %759 = vrot.lane.b32.xlu2 %v684_v19, %s6483_s16 }
  0x59   : > { %1002 = vrot.lane.b32.xlu0 %v4138_v44, %s6473_s26  ;;  %s6547_s26 = smov 8  }
  0x5b   : > { %771 = vrot.lane.b32.xlu1 %v4110_v30, %s6475_s17 }
  0x5e   : > { %1014 = vrot.lane.b32.xlu2 %v4219_v25, %s6481_s28 }
  0x61   : > { %783 = vrot.lane.b32.xlu0 %v4198_v14, %s6477_s18 }
  0x63   : > { %1026 = vrot.lane.b32.xlu1 %v4224_v31, %s6483_s16 }
  0x66   : > { %795 = vrot.lane.b32.xlu2 %v4206_v17, %s6547_s26 }
  0x69   : > { %1038 = vrot.lane.b32.xlu0 %v4166_v56, %s6475_s17  ;;  %s6548_s17 = smov 3  }
  0x6b   : > { %713 = vrot.lane.b32.xlu1 %v4107_v29, %s6479_s20 }
  0x6e   : > { %1050 = vrot.lane.b32.xlu2 %v4238_v34, %s6477_s18  ;;  %s6549_s18 = smov 6  }
  0x71   : > { %725 = vrot.lane.b32.xlu0 %v4135_v43, %s6546_s29 }
  0x73   : > { %1062 = vrot.lane.b32.xlu1 %v4243_v37, %s6547_s26 }
  0x76   : > { %737 = vrot.lane.b32.xlu2 %v4101_v27, %s6548_s17 }
  0x79   : > { %980 = vrot.lane.b32.xlu0 %v4154_v50, %s6479_s20  ;;  %s6550_s20 = smov 7  }
  0x7b   : > { %749 = vrot.lane.b32.xlu1 %v4120_v35, %s6481_s28  ;;  %v540_v35 = vrot.slane %v468_v40, 7 }
  0x7d   : > { %v4284_v46 = vsel %vm525_vm0, 0.0, %v540_v35 }
  0x7e   : > { %992 = vrot.lane.b32.xlu2 %v4163_v55, %s6546_s29  ;;  %v966_v48 = vrot.slane %v4284_v46, 1  ;;  %v971_v54 = vrot.slane %v4284_v46, 2 }
  0x80   : > { %v4257_v29 = vpop.permute.xlu2 %745 }
  0x81   : > { %761 = vrot.lane.b32.xlu0 %v4128_v38, %s6483_s16  ;;  %v541_v38 = vrot.slane %v4269_v41, 7 }
  0x83   : > { %1004 = vrot.lane.b32.xlu1 %v4169_v57, %s6548_s17  ;;  %v4281_v43 = vsel %vm525_vm0, %v540_v35, %v541_v38 }
  0x84   : > { %6551 = vst [vmem:[#allocation16_spill] sm:$0xff] %v4281_v43  ;;  %v967_v49 = vrot.slane %v4281_v43, 1 }
  0x86   : > { %773 = vrot.lane.b32.xlu2 %v4141_v45, %s6549_s18  ;;  %v4306_v53 = vsel %vm661_vm1, %v966_v48, %v967_v49 }
  0x88   : > { %v4265_v39 = vpop.permute.xlu2 %988 }
  0x89   : > { %1016 = vrot.lane.b32.xlu0 %v4180_v60, %s6481_s28  ;;  %s6554_s28 = smov 5  }
  0x8b   : > { %785 = vrot.lane.b32.xlu1 %v4154_v50, %s6550_s20 }
  0x8e   : > { %1028 = vrot.lane.b32.xlu2 %v4188_v4, %s6483_s16  ;;  %s3902_s16 = smov 118  }
  0x90   : > { %v770_v42 = vpop.permute.xlu2 %769 }
  0x91   : > { %797 = vrot.lane.b32.xlu0 %v4163_v55, %s6547_s26  ;;  %v972_v55 = vrot.slane %v4281_v43, 2 }
  0x93   : > { %1040 = vrot.lane.b32.xlu1 %v4284_v46, %s6549_s18  ;;  %v4296_v50 = vpop.permute.xlu0 %3804  ;;  %v4317_v59 = vsel %vm6526_vm2, %v971_v54, %v972_v55 }
  0x94   : > { %v3806_v7 = vunpack.i.l.bf16 %v4296_v50 }
  0x95   : > { %v734_v52 = vpop.permute.xlu1 %733 }
  0x96   : > { %715 = vrot.lane.b32.xlu2 %v673_v13, %s6552_s0  ;;  %v806_v13 = vsel %vm805_vm3, %v4037_v2, %v3806_v7 }
  0x98   : > { %v1025_v58 = vpop.permute.xlu2 %1024 }
  0x99   : > { %1052 = vrot.lane.b32.xlu0 %v4306_v53, %s6550_s20 }
  0x9b   : > { %727 = vrot.lane.b32.xlu1 %v684_v19, %s6546_s29  ;;  %v4319_v61 = vpop.permute.xlu0 %3809 }
  0x9c   : > { %v3811_v15 = vunpack.i.l.bf16 %v4319_v61 }
  0x9d   : > { %v977_v62 = vpop.permute.xlu1 %976 }
  0x9e   : > { %1064 = vrot.lane.b32.xlu2 %v4317_v59, %s6547_s26  ;;  %v811_v19 = vsel %vm6523_vm4, %v806_v13, %v3811_v15  ;;  %v1072_v32 = vsel %vm805_vm3, %v4101_v27, %v977_v62  ;;  %v470_v13 = vld [vmem:[%s4052_s19 + $0x50] sm:$0xff] }
  0x9f   : > { %v816_v24 = vsel %vm6524_vm5, %v811_v19, %v734_v52  ;;  %v647_v52 = vsel %vm525_vm0, %v541_v38, 0.0  ;;  %v471_v19 = vld [vmem:[%s4052_s19 + $0x58] sm:$0xff] }
  0xa0   : > { %v1049_v63 = vpop.permute.xlu2 %1048  ;;  %v821_v28 = vsel %vm820_vm6, %v816_v24, %v4257_v29  ;;  %v974_v7 = vrot.slane %v647_v52, 2  ;;  %v543_v24 = vrot.slane %v470_v13, 7 }
  0xa1   : > { %739 = vrot.lane.b32.xlu0 %v4110_v30, %s6548_s17 }
  0xa2   : > { %v4386_v15 = vsel %vm6526_vm2, %v972_v55, %v974_v7  ;;  %v3812_v55 = vunpack.i.h.bf16 %v4319_v61 }
  0xa3   : > { %982 = vrot.lane.b32.xlu1 %v4219_v25, %s6552_s0  ;;  %v758_v12 = vpop.permute.xlu0 %757 }
  0xa4   : > { %v826_v33 = vsel %vm825_vm7, %v821_v28, %v758_v12 }
  0xa5   : > { %v1001_v16 = vpop.permute.xlu1 %1000  ;;  %v831_v40 = vsel %vm830_vm8, %v826_v33, %v770_v42  ;;  %v4406_v33 = vsel %vm525_vm0, 0.0, %v543_v24 }
  0xa6   : > { %751 = vrot.lane.b32.xlu2 %v4198_v14, %s6553_s30  ;;  %v1202_v61 = vrot.slane %v4406_v33, 1 }
  0xa8   : > { %v4333_v18 = vpop.permute.xlu2 %978 }
  0xa9   : > { %994 = vrot.lane.b32.xlu0 %v4224_v31, %s6546_s29  ;;  %v1073_v7 = vsel %vm805_vm3, %v4110_v30, %v4333_v18 }
  0xab   : > { %763 = vrot.lane.b32.xlu1 %v4206_v17, %s6554_s28  ;;  %v1013_v26 = vpop.permute.xlu0 %1012  ;;  %v1076_v17 = vsel %vm6523_vm4, %v1072_v32, %v4265_v39 }
  0xac   : > { %v1080_v27 = vsel %vm6524_vm5, %v1076_v17, %v1001_v16 }
  0xad   : > { %v782_v14 = vpop.permute.xlu1 %781  ;;  %v1084_v47 = vsel %vm820_vm6, %v1080_v27, %v1013_v26  ;;  %v544_v26 = vrot.slane %v471_v19, 7 }
  0xae   : > { %1006 = vrot.lane.b32.xlu2 %v4166_v56, %s6548_s17  ;;  %v836_v29 = vsel %vm835_vm9, %v831_v40, %v782_v14  ;;  %v1088_v39 = vsel %vm825_vm7, %v1084_v47, %v1025_v58  ;;  %v3807_v14 = vunpack.i.h.bf16 %v4296_v50 }
  0xaf   : > { %v4403_v32 = vsel %vm525_vm0, %v543_v24, %v544_v26  ;;  %v648_v18 = vsel %vm525_vm0, %v544_v26, 0.0 }
  0xb0   : > { %v760_v36 = vpop.permute.xlu2 %759  ;;  %v1203_v40 = vrot.slane %v4403_v32, 1  ;;  %v1210_v26 = vrot.slane %v648_v18, 2 }
  0xb1   : > { %775 = vrot.lane.b32.xlu0 %v4138_v44, %s6549_s18 }
  0xb2   : > { %v4425_v47 = vsel %vm661_vm1, %v1202_v61, %v1203_v40 }
  0xb3   : > { %1018 = vrot.lane.b32.xlu1 %v4238_v34, %s6553_s30  ;;  %v794_v35 = vpop.permute.xlu0 %793 }
  0xb4   : > { %v841_v51 = vsel %vm840_vm10, %v836_v29, %v794_v35 }
  0xb5   : > { %v1037_v48 = vpop.permute.xlu1 %1036  ;;  %3652 = vmatmul.msk.f32.vlgmr.msra.gmra.mxu0 %vm845_vm11, %v841_v51  ;;  %v1208_v51 = vrot.slane %v4403_v32, 2 }
  0xb6   : > { %787 = vrot.lane.b32.xlu2 %v4219_v25, %s6550_s20  ;;  %v1092_v54 = vsel %vm830_vm8, %v1088_v39, %v1037_v48  ;;  %v969_v25 = vrot.slane %v647_v52, 1  ;;  %v1207_v48 = vrot.slane %v4406_v33, 2 }
  0xb7   : > { %v1096_v58 = vsel %vm835_vm9, %v1092_v54, %v1049_v63 }
  0xb8   : > { %v4363_v42 = vpop.permute.xlu2 %1014  ;;  %v4381_v38 = vsel %vm661_vm1, %v967_v49, %v969_v25 }
  0xb9   : > { %1030 = vrot.lane.b32.xlu0 %v4243_v37, %s6554_s28 }
  0xbb   : > { %799 = vrot.lane.b32.xlu1 %v4224_v31, %s6547_s26  ;;  %v1061_v62 = vpop.permute.xlu0 %1060 }
  0xbc   : > { %v1100_v41 = vsel %vm840_vm10, %v1096_v58, %v1061_v62  ;;  %v4436_v62 = vsel %vm6526_vm2, %v1207_v48, %v1208_v51 }
  0xbd   : > { %v736_v12 = vpop.permute.xlu1 %735  ;;  %3659 = vmatmul.msk.f32.vlgmr.msra.gmra.mxu3 %vm845_vm11, %v1100_v41 }
  0xbe   : > { %1042 = vrot.lane.b32.xlu2 %v4281_v43, %s6549_s18 }
  0xc0   : > { %v796_v31 = vpop.permute.xlu2 %795 }
  0xc1   : > { %1054 = vrot.lane.b32.xlu0 %v4381_v38, %s6550_s20 }
  0xc3   : > { %1066 = vrot.lane.b32.xlu1 %v4386_v15, %s6547_s26  ;;  %v748_v63 = vpop.permute.xlu0 %747 }
  0xc5   : > { %v991_v16 = vpop.permute.xlu1 %990 }
  0xc6   : > { %1224 = vrot.lane.b32.xlu2 %v4180_v60, %s6552_s0  ;;  %v807_v60 = vsel %vm805_vm3, %v4030_v1, %v3807_v14 }
  0xc7   : > { %v812_v50 = vsel %vm6523_vm4, %v807_v60, %v3812_v55 }
  0xc8   : > { %v1051_v49 = vpop.permute.xlu2 %1050 }
  0xc9   : > { %1236 = vrot.lane.b32.xlu0 %v4188_v4, %s6546_s29  ;;  %v817_v4 = vsel %vm6524_vm5, %v812_v50, %v736_v12  ;;  %v1077_v12 = vsel %vm6523_vm4, %v1073_v7, %v991_v16  ;;  %v1205_v16 = vrot.slane %v648_v18, 1 }
  0xca   : > { %v822_v27 = vsel %vm820_vm6, %v817_v4, %v748_v63  ;;  %v4482_v4 = vld [vmem:[%s4052_s19 + $0x68] sm:$0xff] }
  0xcb   : > { %1248 = vrot.lane.b32.xlu1 %v4284_v46, %s6548_s17  ;;  %v1003_v28 = vpop.permute.xlu0 %1002  ;;  %v827_v35 = vsel %vm825_vm7, %v822_v27, %v760_v36 }
  0xcd   : > { %v772_v17 = vpop.permute.xlu1 %771 }
  0xce   : > { %1260 = vrot.lane.b32.xlu2 %v4306_v53, %s6553_s30  ;;  %v832_v39 = vsel %vm830_vm8, %v827_v35, %v772_v17  ;;  %v547_v35 = vrot.slane %v4482_v4, 7 }
  0xd0   : > { %v4417_v29 = vpop.permute.xlu2 %737 }
  0xd1   : > { %1272 = vrot.lane.b32.xlu0 %v4317_v59, %s6554_s28 }
  0xd3   : > { %1284 = vrot.lane.b32.xlu1 %v4406_v33, %s6549_s18  ;;  %v784_v52 = vpop.permute.xlu0 %783 }
  0xd4   : > { %v837_v54 = vsel %vm835_vm9, %v832_v39, %v784_v52 }
  0xd5   : > { %v1027_v25 = vpop.permute.xlu1 %1026  ;;  %v842_v36 = vsel %vm840_vm10, %v837_v54, %v796_v31  ;;  %v1081_v31 = vsel %vm6524_vm5, %v1077_v12, %v1003_v28  ;;  %v4466_v28 = vsel %vm661_vm1, %v1203_v40, %v1205_v16  ;;  %v472_v40 = vld [vmem:[%s4052_s19 + $0x60] sm:$0xff] }
  0xd6   : > { %1296 = vrot.lane.b32.xlu2 %v4425_v47, %s6550_s20  ;;  %3653 = vmatmul.msk.f32.gmra.mxu0 %vm845_vm11, %v842_v36  ;;  %v1085_v13 = vsel %vm820_vm6, %v1081_v31, %v4363_v42  ;;  %v546_v48 = vrot.slane %v472_v40, 7 }
  0xd7   : > { %v1089_v30 = vsel %vm825_vm7, %v1085_v13, %v1027_v25  ;;  %v4523_v13 = vld [vmem:[%s4052_s19 + $0x78] sm:$0xff] }
  0xd8   : > { %v4438_v58 = vpop.permute.xlu2 %992  ;;  %v4493_v39 = vsel %vm525_vm0, %v546_v48, %v547_v35 }
  0xd9   : > { %1308 = vrot.lane.b32.xlu0 %v4436_v62, %s6547_s26  ;;  %v1215_v36 = vrot.slane %v4493_v39, 1 }
  0xdb   : > { %1226 = vrot.lane.b32.xlu1 %v4238_v34, %s6552_s0  ;;  %v1039_v41 = vpop.permute.xlu0 %1038 }
  0xdc   : > { %v1093_v24 = vsel %vm830_vm8, %v1089_v30, %v1039_v41 }
  0xdd   : > { %v714_v63 = vpop.permute.xlu1 %713 }
  0xde   : > { %1238 = vrot.lane.b32.xlu2 %v4243_v37, %s6546_s29  ;;  %v1097_v37 = vsel %vm835_vm9, %v1093_v24, %v1051_v49  ;;  %v4473_v49 = vsel %vm6526_vm2, %v1208_v51, %v1210_v26  ;;  %v1220_v24 = vrot.slane %v4493_v39, 2 }
  0xe0   : > { %v774_v19 = vpop.permute.xlu2 %773 }
  0xe1   : > { %1250 = vrot.lane.b32.xlu0 %v4281_v43, %s6548_s17 }
  0xe3   : > { %1262 = vrot.lane.b32.xlu1 %v4381_v38, %s6553_s30  ;;  %v726_v34 = vpop.permute.xlu0 %725 }
  0xe5   : > { %v1063_v14 = vpop.permute.xlu1 %1062 }
  0xe6   : > { %1274 = vrot.lane.b32.xlu2 %v4386_v15, %s6554_s28  ;;  %v1101_v42 = vsel %vm840_vm10, %v1097_v37, %v1063_v14  ;;  %v474_v14 = vld [vmem:[%s4052_s19 + $0x70] sm:$0xff] }
  0xe7   : > { %3660 = vmatmul.msk.f32.gmra.mxu3 %vm845_vm11, %v1101_v42  ;;  %v550_v42 = vrot.slane %v4523_v13, 7 }
  0xe8   : > { %v1029_v55 = vpop.permute.xlu2 %1028 }
  0xe9   : > { %1286 = vrot.lane.b32.xlu0 %v4403_v32, %s6549_s18 }
  0xeb   : > { %1298 = vrot.lane.b32.xlu1 %v4466_v28, %s6550_s20  ;;  %v981_v60 = vpop.permute.xlu0 %980 }
  0xed   : > { %v750_v17 = vpop.permute.xlu1 %749 }
  0xee   : > { %1310 = vrot.lane.b32.xlu2 %v4473_v49, %s6547_s26 }
  0xf0   : > { %v4477_v50 = vpop.permute.xlu2 %715 }
  0xf1   : > { %1228 = vrot.lane.b32.xlu0 %v4306_v53, %s6552_s0  ;;  %v808_v53 = vsel %vm805_vm3, %v4078_v20, %v714_v63 }
  0xf2   : > { %v813_v52 = vsel %vm6523_vm4, %v808_v53, %v726_v34 }
  0xf3   : > { %1472 = vrot.lane.b32.xlu1 %v4425_v47, %s6552_s0  ;;  %v762_v61 = vpop.permute.xlu0 %761  ;;  %v818_v20 = vsel %vm6524_vm5, %v813_v52, %v4417_v29  ;;  %v1074_v29 = vsel %vm805_vm3, %v4141_v45, %v981_v60  ;;  %v549_v60 = vrot.slane %v474_v14, 7 }
  0xf4   : > { %v823_v12 = vsel %vm820_vm6, %v818_v20, %v750_v17  ;;  %v1078_v45 = vsel %vm6523_vm4, %v1074_v29, %v4438_v58 }
  0xf5   : > { %v1005_v27 = vpop.permute.xlu1 %1004  ;;  %v828_v41 = vsel %vm825_vm7, %v823_v12, %v762_v61  ;;  %v4551_v58 = vsel %vm525_vm0, %v549_v60, %v550_v42  ;;  %v4559_v40 = vsel %vm525_vm0, 0.0, %v549_v60 }
  0xf6   : > { %1240 = vrot.lane.b32.xlu2 %v4317_v59, %s6546_s29  ;;  %v4503_v59 = vsel %vm525_vm0, 0.0, %v546_v48  ;;  %v833_v30 = vsel %vm830_vm8, %v828_v41, %v774_v19  ;;  %v1082_v19 = vsel %vm6524_vm5, %v1078_v45, %v1005_v27  ;;  %6555 = vst [vmem:[#allocation17_spill] sm:$0xff] %v4551_v58  ;;  %v1450_v53 = vrot.slane %v4559_v40, 1 }
  0xf7   : > { %v1214_v25 = vrot.slane %v4503_v59, 1  ;;  %v1219_v18 = vrot.slane %v4503_v59, 2  ;;  %6556 = vst [vmem:[#allocation18_spill] sm:$0xff] %v4559_v40  ;;  %v1451_v52 = vrot.slane %v4551_v58, 1  ;;  %v1455_v12 = vrot.slane %v4559_v40, 2 }
  0xf8   : > { %v1065_v51 = vpop.permute.xlu2 %1064  ;;  %v1456_v41 = vrot.slane %v4551_v58, 2  ;;  %v649_v45 = vsel %vm525_vm0, %v547_v35, 0.0 }
  0xf9   : > { %1484 = vrot.lane.b32.xlu0 %v4436_v62, %s6546_s29  ;;  %v4518_v63 = vsel %vm661_vm1, %v1214_v25, %v1215_v36  ;;  %v4545_v26 = vsel %vm6526_vm2, %v1219_v18, %v1220_v24  ;;  %v4572_v20 = vsel %vm661_vm1, %v1450_v53, %v1451_v52 }
  0xfb   : > { %1252 = vrot.lane.b32.xlu1 %v4406_v33, %s6548_s17  ;;  %v1017_v54 = vpop.permute.xlu0 %1016 }
  0xfc   : > { %v1086_v17 = vsel %vm820_vm6, %v1082_v19, %v1017_v54 }
  0xfd   : > { %v786_v7 = vpop.permute.xlu1 %785 }
  0xfe   : > { %1496 = vrot.lane.b32.xlu2 %v4503_v59, %s6548_s17  ;;  %v838_v34 = vsel %vm835_vm9, %v833_v30, %v786_v7  ;;  %v4585_v30 = vsel %vm6526_vm2, %v1455_v12, %v1456_v41 }
 0x100   : > { %v4513_v31 = vpop.permute.xlu2 %751 }
 0x101   : > { %1264 = vrot.lane.b32.xlu0 %v4425_v47, %s6553_s30 }
 0x103   : > { %1508 = vrot.lane.b32.xlu1 %v4518_v63, %s6553_s30  ;;  %v798_v16 = vpop.permute.xlu0 %797 }
 0x104   : > { %v843_v47 = vsel %vm840_vm10, %v838_v34, %v798_v16 }
 0x105   : > { %v1041_v37 = vpop.permute.xlu1 %1040  ;;  %3654 = vmatmul.msk.f32.gmra.mxu0 %vm845_vm11, %v843_v47 }
 0x106   : > { %1276 = vrot.lane.b32.xlu2 %v4436_v62, %s6554_s28  ;;  %v1090_v62 = vsel %vm825_vm7, %v1086_v17, %v1029_v55 }
 0x107   : > { %v1094_v27 = vsel %vm830_vm8, %v1090_v62, %v1041_v37  ;;  %v809_v37 = vsel %vm805_vm3, %v4083_v21, %v4477_v50  ;;  %v1217_v21 = vrot.slane %v649_v45, 1 }
 0x108   : > { %v1007_v61 = vpop.permute.xlu2 %1006 }
 0x109   : > { %1520 = vrot.lane.b32.xlu0 %v4545_v26, %s6554_s28  ;;  %v4624_v35 = vsel %vm661_vm1, %v1215_v36, %v1217_v21 }
 0x10b   : > { %1288 = vrot.lane.b32.xlu1 %v4503_v59, %s6549_s18  ;;  %v1053_v48 = vpop.permute.xlu0 %1052 }
 0x10c   : > { %v1098_v54 = vsel %vm835_vm9, %v1094_v27, %v1053_v48  ;;  %v1222_v48 = vrot.slane %v649_v45, 2 }
 0x10d   : > { %v728_v25 = vpop.permute.xlu1 %727  ;;  %v1102_v55 = vsel %vm840_vm10, %v1098_v54, %v1065_v51 }
 0x10e   : > { %1532 = vrot.lane.b32.xlu2 %v4559_v40, %s6549_s18  ;;  %3661 = vmatmul.msk.f32.gmra.mxu3 %vm845_vm11, %v1102_v55  ;;  %v814_v47 = vsel %vm6523_vm4, %v809_v37, %v728_v25  ;;  %v1223_v55 = vsel %vm6526_vm2, %v1220_v24, %v1222_v48 }
 0x110   : > { %v788_v7 = vpop.permute.xlu2 %787 }
 0x111   : > { %1300 = vrot.lane.b32.xlu0 %v4518_v63, %s6550_s20 }
 0x113   : > { %1544 = vrot.lane.b32.xlu1 %v4572_v20, %s6550_s20  ;;  %v740_v29 = vpop.permute.xlu0 %739 }
 0x114   : > { %v819_v19 = vsel %vm6524_vm5, %v814_v47, %v740_v29  ;;  %v650_v29 = vsel %vm525_vm0, %v550_v42, 0.0 }
 0x115   : > { %v983_v51 = vpop.permute.xlu1 %982 }
 0x116   : > { %1312 = vrot.lane.b32.xlu2 %v4545_v26, %s6547_s26  ;;  %v1075_v4 = vsel %vm805_vm3, %v4138_v44, %v983_v51 }
 0x118   : > { %v1043_v18 = vpop.permute.xlu2 %1042 }
 0x119   : > { %1556 = vrot.lane.b32.xlu0 %v4585_v30, %s6547_s26 }
 0x11b   : > { %1230 = vrot.lane.b32.xlu1 %v4381_v38, %s6552_s0  ;;  %v995_v34 = vpop.permute.xlu0 %994 }
 0x11d   : > { %v764_v16 = vpop.permute.xlu1 %763 }
 0x11e   : > { %1474 = vrot.lane.b32.xlu2 %v4466_v28, %s6552_s0 }
 0x120   : > { %v4593_v14 = vpop.permute.xlu2 %1224 }
 0x121   : > { %1242 = vrot.lane.b32.xlu0 %v4386_v15, %s6546_s29  ;;  %v824_v15 = vsel %vm820_vm6, %v819_v19, %v4513_v31  ;;  %v1079_v31 = vsel %vm6523_vm4, %v1075_v4, %v995_v34  ;;  %v476_v19 = vld [vmem:[%s4052_s19 + $0x80] sm:$0xff] }
 0x122   : > { %v829_v17 = vsel %vm825_vm7, %v824_v15, %v764_v16  ;;  %v1083_v25 = vsel %vm6524_vm5, %v1079_v31, %v1007_v61  ;;  %v552_v15 = vrot.slane %v476_v19, 7 }
 0x123   : > { %1486 = vrot.lane.b32.xlu1 %v4473_v49, %s6546_s29  ;;  %v776_v38 = vpop.permute.xlu0 %775 }
 0x124   : > { %v834_v62 = vsel %vm830_vm8, %v829_v17, %v776_v38  ;;  %v4699_v4 = vsel %vm525_vm0, 0.0, %v552_v15 }
 0x125   : > { %v1019_v60 = vpop.permute.xlu1 %1018  ;;  %v839_v54 = vsel %vm835_vm9, %v834_v62, %v788_v7  ;;  %6559 = vst [vmem:[#allocation21_spill] sm:$0xff] %v4699_v4 }
 0x126   : > { %1254 = vrot.lane.b32.xlu2 %v4403_v32, %s6548_s17 }
 0x128   : > { %v4611_v50 = vpop.permute.xlu2 %1260 }
 0x129   : > { %1498 = vrot.lane.b32.xlu0 %v4493_v39, %s6548_s17 }
 0x12b   : > { %1266 = vrot.lane.b32.xlu1 %v4466_v28, %s6553_s30  ;;  %v1031_v27 = vpop.permute.xlu0 %1030  ;;  %v1087_v28 = vsel %vm820_vm6, %v1083_v25, %v1019_v60  ;;  %v477_v60 = vld [vmem:[%s4052_s19 + $0x88] sm:$0xff] }
 0x12c   : > { %v1091_v12 = vsel %vm825_vm7, %v1087_v28, %v1031_v27  ;;  %v553_v17 = vrot.slane %v477_v60, 7 }
 0x12d   : > { %v800_v53 = vpop.permute.xlu1 %799  ;;  %v1095_v61 = vsel %vm830_vm8, %v1091_v12, %v1043_v18  ;;  %v1458_v18 = vrot.slane %v650_v29, 2 }
 0x12e   : > { %1510 = vrot.lane.b32.xlu2 %v4624_v35, %s6553_s30  ;;  %v844_v44 = vsel %vm840_vm10, %v839_v54, %v800_v53  ;;  %v4696_v62 = vsel %vm525_vm0, %v552_v15, %v553_v17  ;;  %v1467_v53 = vrot.slane %v4699_v4, 2 }
 0x12f   : > { %3655 = vmatmul.msk.f32.gmra.mxu0 %vm845_vm11, %v844_v44  ;;  %v4674_v38 = vsel %vm6526_vm2, %v1456_v41, %v1458_v18  ;;  %6558 = vst [vmem:[#allocation20_spill] sm:$0xff] %v4696_v62  ;;  %v1468_v54 = vrot.slane %v4696_v62, 2 }
 0x130   : > { %v4634_v36 = vpop.permute.xlu2 %1296 }
 0x131   : > { %1278 = vrot.lane.b32.xlu0 %v4473_v49, %s6554_s28  ;;  %v1453_v49 = vrot.slane %v650_v29, 1  ;;  %v4725_v28 = vsel %vm6526_vm2, %v1467_v53, %v1468_v54 }
 0x133   : > { %1522 = vrot.lane.b32.xlu1 %v1223_v55, %s6554_s28  ;;  %v1055_v7 = vpop.permute.xlu0 %1054  ;;  %v4661_v13 = vsel %vm661_vm1, %v1451_v52, %v1453_v49 }
 0x134   : > { %v1099_v51 = vsel %vm835_vm9, %v1095_v61, %v1055_v7 }
 0x135   : > { %v1067_v34 = vpop.permute.xlu1 %1066 }
 0x136   : > { %1290 = vrot.lane.b32.xlu2 %v4493_v39, %s6549_s18  ;;  %v1103_v24 = vsel %vm840_vm10, %v1099_v51, %v1067_v34  ;;  %v651_v51 = vsel %vm525_vm0, %v553_v17, 0.0 }
 0x137   : > { %3662 = vmatmul.msk.f32.gmra.mxu3 %vm845_vm11, %v1103_v24 }
 0x138   : > { %v4652_v16 = vpop.permute.xlu2 %1238 }
 0x139   : > { %1534 = vrot.lane.b32.xlu0 %v4551_v58, %s6549_s18 }
 0x13b   : > { %1302 = vrot.lane.b32.xlu1 %v4624_v35, %s6550_s20  ;;  %v4663_v42 = vpop.permute.xlu0 %1236 }
 0x13d   : > { %v4665_v37 = vpop.permute.xlu1 %1248 }
 0x13e   : > { %1546 = vrot.lane.b32.xlu2 %v4661_v13, %s6550_s20 }
 0x140   : > { %v4669_v47 = vpop.permute.xlu2 %1274 }
 0x141   : > { %1314 = vrot.lane.b32.xlu0 %v1223_v55, %s6547_s26 }
 0x143   : > { %1558 = vrot.lane.b32.xlu1 %v4674_v38, %s6547_s26  ;;  %v4679_v52 = vpop.permute.xlu0 %1272 }
 0x145   : > { %v4681_v45 = vpop.permute.xlu1 %1284 }
 0x146   : > { %1476 = vrot.lane.b32.xlu2 %v4518_v63, %s6552_s0  ;;  %v1462_v63 = vrot.slane %v4699_v4, 1 }
 0x148   : > { %v4687_v21 = vpop.permute.xlu2 %1310 }
 0x149   : > { %6557 = vst [vmem:[#allocation19_spill] sm:$0xff] %v4687_v21  ;;  %1488 = vrot.lane.b32.xlu0 %v4545_v26, %s6546_s29  ;;  %v1463_v26 = vrot.slane %v4696_v62, 1 }
 0x14b   : > { %1500 = vrot.lane.b32.xlu1 %v4559_v40, %s6548_s17  ;;  %v4693_v41 = vpop.permute.xlu0 %1308  ;;  %v4714_v48 = vsel %vm661_vm1, %v1462_v63, %v1463_v26  ;;  %v478_v63 = vld [vmem:[%s4052_s19 + $0x90] sm:$0xff] }
 0x14d   : > { %v4701_v31 = vpop.permute.xlu1 %1226 }
 0x14e   : > { %1512 = vrot.lane.b32.xlu2 %v4572_v20, %s6553_s30 }
 0x150   : > { %v4707_v27 = vpop.permute.xlu2 %1240 }
 0x151   : > { %1524 = vrot.lane.b32.xlu0 %v4585_v30, %s6554_s28 }
 0x153   : > { %1536 = vrot.lane.b32.xlu1 %v4699_v4, %s6549_s18  ;;  %v4718_v44 = vpop.permute.xlu0 %1250 }
 0x155   : > { %v4720_v25 = vpop.permute.xlu1 %1262 }
 0x156   : > { %1548 = vrot.lane.b32.xlu2 %v4714_v48, %s6550_s20 }
 0x158   : > { %v1497_v12 = vpop.permute.xlu2 %1496 }
 0x159   : > { %1560 = vrot.lane.b32.xlu0 %v4725_v28, %s6547_s26 }
 0x15b   : > { %1478 = vrot.lane.b32.xlu1 %v4624_v35, %s6552_s0  ;;  %v4731_v7 = vpop.permute.xlu0 %1286  ;;  %v1465_v35 = vrot.slane %v651_v51, 1 }
 0x15d   : > { %v4733_v61 = vpop.permute.xlu1 %1298  ;;  %v4748_v18 = vsel %vm661_vm1, %v1463_v26, %v1465_v35  ;;  %v479_v26 = vld [vmem:[%s4052_s19 + $0x98] sm:$0xff] }
 0x15e   : > { %1490 = vrot.lane.b32.xlu2 %v1223_v55, %s6546_s29  ;;  %v1470_v55 = vrot.slane %v651_v51, 2  ;;  %v556_v51 = vrot.slane %v479_v26, 7 }
 0x160   : > { %v4736_v29 = vpop.permute.xlu2 %1276  ;;  %v4755_v19 = vsel %vm6526_vm2, %v1468_v54, %v1470_v55  ;;  %v555_v54 = vrot.slane %v478_v63, 7 }
 0x161   : > { %6560 = vst [vmem:[#allocation22_spill] sm:$0xff] %v4736_v29  ;;  %1502 = vrot.lane.b32.xlu0 %v4551_v58, %s6548_s17 }
 0x162   : > { %v4776_v9 = vsel %vm525_vm0, %v555_v54, %v556_v51  ;;  %v4779_v8 = vsel %vm525_vm0, 0.0, %v555_v54 }
 0x163   : > { %1514 = vrot.lane.b32.xlu1 %v4661_v13, %s6553_s30  ;;  %v4743_v34 = vpop.permute.xlu0 %1228  ;;  %6562 = vst [vmem:[#allocation24_spill] sm:$0xff] %v4776_v9  ;;  %v1703_v5 = vrot.slane %v4779_v8, 2  ;;  %v1704_v6 = vrot.slane %v4776_v9, 2 }
 0x164   : > { %6563 = vst [vmem:[#allocation25_spill] sm:$0xff] %v4779_v8 }
 0x165   : > { %v1473_v24 = vpop.permute.xlu1 %1472  ;;  %v4802_v11 = vsel %vm6526_vm2, %v1703_v5, %v1704_v6 }
 0x166   : > { %1526 = vrot.lane.b32.xlu2 %v4674_v38, %s6554_s28  ;;  %v1568_v63 = vsel %vm805_vm3, %v4406_v33, %v1473_v24 }
 0x168   : > { %v1533_v49 = vpop.permute.xlu2 %1532 }
 0x169   : > { %1538 = vrot.lane.b32.xlu0 %v4696_v62, %s6549_s18 }
 0x16b   : > { %1550 = vrot.lane.b32.xlu1 %v4748_v18, %s6550_s20  ;;  %v1485_v60 = vpop.permute.xlu0 %1484 }
 0x16c   : > { %v1572_v0 = vsel %vm6523_vm4, %v1568_v63, %v1485_v60 }
 0x16d   : > { %v4757_v15 = vpop.permute.xlu1 %1252  ;;  %v1576_v33 = vsel %vm6524_vm5, %v1572_v0, %v1497_v12 }
 0x16e   : > { %1562 = vrot.lane.b32.xlu2 %v4755_v19, %s6547_s26 }
 0x170   : > { %v4761_v17 = vpop.permute.xlu2 %1312 }
 0x171   : > { %6561 = vst [vmem:[#allocation23_spill] sm:$0xff] %v4761_v17  ;;  %1720 = vrot.lane.b32.xlu0 %v4572_v20, %s6552_s0  ;;  %v1698_v20 = vrot.slane %v4779_v8, 1 }
 0x173   : > { %1732 = vrot.lane.b32.xlu1 %v4585_v30, %s6546_s29  ;;  %v4769_v53 = vpop.permute.xlu0 %1264  ;;  %v1699_v30 = vrot.slane %v4776_v9, 1 }
 0x175   : > { %v1509_v35 = vpop.permute.xlu1 %1508  ;;  %v4797_v3 = vsel %vm661_vm1, %v1698_v20, %v1699_v30 }
 0x176   : > { %1744 = vrot.lane.b32.xlu2 %v4699_v4, %s6548_s17  ;;  %v1580_v60 = vsel %vm820_vm6, %v1576_v33, %v1509_v35  ;;  %v652_v35 = vsel %vm525_vm0, %v556_v51, 0.0 }
 0x177   : > { %v1706_v51 = vrot.slane %v652_v35, 2 }
 0x178   : > { %v4773_v55 = vpop.permute.xlu2 %1474 }
 0x179   : > { %1756 = vrot.lane.b32.xlu0 %v4714_v48, %s6553_s30 }
 0x17b   : > { %1768 = vrot.lane.b32.xlu1 %v4725_v28, %s6554_s28  ;;  %v1521_v26 = vpop.permute.xlu0 %1520 }
 0x17c   : > { %v1584_v20 = vsel %vm825_vm7, %v1580_v60, %v1521_v26  ;;  %v878_v26 = vpop.f32.mrf.mxu0 }
 0x17d   : > { %v4791_v54 = vpop.permute.xlu1 %1288  ;;  %v1588_v0 = vsel %vm830_vm8, %v1584_v20, %v1533_v49  ;;  %v4844_v20 = vsel %vm6526_vm2, %v1704_v6, %v1706_v51 }
 0x17e   : > { %6564 = vst [vmem:[#allocation26_spill] sm:$0xff] %v4791_v54  ;;  %1780 = vrot.lane.b32.xlu2 %v4779_v8, %s6549_s18 }
 0x180   : > { %v4799_v23 = vpop.permute.xlu2 %1254 }
 0x181   : > { %6565 = vst [vmem:[#allocation27_spill] sm:$0xff] %v4799_v23  ;;  %1792 = vrot.lane.b32.xlu0 %v4797_v3, %s6550_s20 }
 0x183   : > { %1804 = vrot.lane.b32.xlu1 %v4802_v11, %s6547_s26  ;;  %v4809_v24 = vpop.permute.xlu0 %1300 }
 0x184   : > { %6566 = vst [vmem:[#allocation28_spill] sm:$0xff] %v4809_v24 }
 0x185   : > { %v1545_v63 = vpop.permute.xlu1 %1544 }
 0x186   : > { %1722 = vrot.lane.b32.xlu2 %v4661_v13, %s6552_s0  ;;  %v1592_v12 = vsel %vm835_vm9, %v1588_v0, %v1545_v63 }
 0x188   : > { %v4815_v5 = vpop.permute.xlu2 %1510 }
 0x189   : > { %1734 = vrot.lane.b32.xlu0 %v4674_v38, %s6546_s29  ;;  %v1701_v38 = vrot.slane %v652_v35, 1 }
 0x18b   : > { %1746 = vrot.lane.b32.xlu1 %v4696_v62, %s6548_s17  ;;  %v1557_v1 = vpop.permute.xlu0 %1556  ;;  %v4871_v62 = vpop.f32.mrf.mxu3 }
 0x18c   : > { %v1596_v33 = vsel %vm840_vm10, %v1592_v12, %v1557_v1  ;;  %v4837_v1 = vsel %vm661_vm1, %v1699_v30, %v1701_v38  ;;  %v480_v12 = vld [vmem:[%s4052_s19 + $0xa0] sm:$0xff]  ;;  %v881_v30 = vpop.f32.mrf.mxu0 }
 0x18d   : > { %v4825_v13 = vpop.permute.xlu1 %1230  ;;  %3673 = vmatmul.msk.f32.vlgmr.msrb.gmra.mxu0 %vm845_vm11, %v1596_v33  ;;  %v4852_v33 = vld [vmem:[%s4052_s19 + $0xa8] sm:$0xff]  ;;  %v558_v22 = vrot.slane %v480_v12, 7 }
 0x18e   : > { %6567 = vst [vmem:[#allocation29_spill] sm:$0xff] %v4825_v13  ;;  %1758 = vrot.lane.b32.xlu2 %v4748_v18, %s6553_s30  ;;  %v6502_v10 = vrot.slane %v4852_v33, 7 }
 0x18f   : > { %v4869_v2 = vsel %vm525_vm0, 0.0, %v558_v22 }
 0x190   : > { %v4830_v49 = vpop.permute.xlu2 %1290  ;;  %v4866_v51 = vsel %vm525_vm0, %v558_v22, %v6502_v10  ;;  %6572 = vst [vmem:[#allocation34_spill] sm:$0xff] %v4869_v2  ;;  %v1710_v4 = vrot.slane %v4869_v2, 1  ;;  %v1569_v22 = vsel %vm805_vm3, %v4403_v32, %v4773_v55 }
 0x191   : > { %6568 = vst [vmem:[#allocation30_spill] sm:$0xff] %v4830_v49  ;;  %1770 = vrot.lane.b32.xlu0 %v4755_v19, %s6554_s28  ;;  %v1715_v49 = vrot.slane %v4869_v2, 2  ;;  %v6574_v32 = vrot.slane %v4866_v51, 1 }
 0x192   : > { %6571 = vst [vmem:[#allocation33_spill] sm:$0xff] %v4866_v51 }
 0x193   : > { %1782 = vrot.lane.b32.xlu1 %v4776_v9, %s6549_s18  ;;  %v4839_v60 = vpop.permute.xlu0 %1242  ;;  %v4899_v55 = vsel %vm661_vm1, %v1710_v4, %v6574_v32  ;;  %v1136_v54 = vpop.f32.mrf.mxu3  ;;  %v6575_v4 = vrot.slane %v4866_v51, 2 }
 0x194   : > { %6569 = vst [vmem:[#allocation31_spill] sm:$0xff] %v4839_v60 }
 0x195   : > { %v1487_v63 = vpop.permute.xlu1 %1486 }
 0x196   : > { %1794 = vrot.lane.b32.xlu2 %v4837_v1, %s6550_s20  ;;  %v1573_v10 = vsel %vm6523_vm4, %v1569_v22, %v1487_v63  ;;  %v4908_v63 = vld [vmem:[%s6459_s3] ss:$0 sm:$0xff] }
 0x198   : > { %v4846_v0 = vpop.permute.xlu2 %1546 }
 0x199   : > { %1806 = vrot.lane.b32.xlu0 %v4844_v20, %s6547_s26 }
 0x19b   : > { %1724 = vrot.lane.b32.xlu1 %v4714_v48, %s6552_s0  ;;  %v1499_v35 = vpop.permute.xlu0 %1498  ;;  %v448_v48 = vlaneseq }
 0x19d   : > { %v4856_v38 = vpop.permute.xlu1 %1266  ;;  %v449_v40 = vshrl.u32 %v448_v48, 7 }
 0x19e   : > { %6570 = vst [vmem:[#allocation32_spill] sm:$0xff] %v4856_v38  ;;  %1736 = vrot.lane.b32.xlu2 %v4725_v28, %s6546_s29  ;;  %v884_v28 = vpop.f32.mrf.mxu0 }
 0x19f   : > { %v452_v24 = vmul.u32 2, %v449_v40  ;;  %v4917_v40 = vsel %vm6526_vm2, %v1715_v49, %v6575_v4 }
 0x1a0   : > { %v4861_v6 = vpop.permute.xlu2 %1476 }
 0x1a1   : > { %1748 = vrot.lane.b32.xlu0 %v4779_v8, %s6548_s17  ;;  %v4889_v8 = vld [vmem:[%s6458_s2] ss:$0 sm:$0xff] }
 0x1a2   : > { %v891_v38 = vmul.f32 %v4889_v8, %v881_v30  ;;  %v892_v23 = vmul.f32 %v4889_v8, %v884_v28  ;;  %v890_v22 = vmul.f32 %v4889_v8, %v878_v26  ;;  %v451_v26 = vand.u32 127, %v448_v48  ;;  %v1139_v48 = vpop.f32.mrf.mxu3 }
 0x1a3   : > { %1760 = vrot.lane.b32.xlu1 %v4797_v3, %s6553_s30  ;;  %v4877_v12 = vpop.permute.xlu0 %1278 }
 0x1a4   : > { %6573 = vst [vmem:[#allocation35_spill] sm:$0xff] %v4877_v12  ;;  %v1577_v12 = vsel %vm6524_vm5, %v1573_v10, %v1499_v35  ;;  %v895_v32 = vadd.f32 %v4908_v63, %v891_v38  ;;  %v896_v60 = vadd.f32 %v4908_v63, %v892_v23  ;;  %v456_v10 = vadd.s32 1, %v452_v24 }
 0x1a5   : > { %v1523_v58 = vpop.permute.xlu1 %1522  ;;  %v1581_v35 = vsel %vm820_vm6, %v1577_v12, %v4815_v5  ;;  %v894_v49 = vadd.f32 %v4908_v63, %v890_v22  ;;  %vm453_vm13 = vcmp.eq.s32.totalorder %v451_v26, %v452_v24  ;;  %v6577_v22 = vmov 0.0  }
 0x1a6   : > { %1772 = vrot.lane.b32.xlu2 %v4802_v11, %s6554_s28  ;;  %v899_v38 = vmax.f32 %v895_v32, 0.0  ;;  %v900_v23 = vmax.f32 %v896_v60, 0.0  ;;  %vm457_vm12 = vcmp.eq.s32.totalorder %v451_v26, %v456_v10  ;;  %v1146_v24 = vmul.f32 %v4889_v8, %v1136_v54 }
 0x1a7   : > { %v898_v5 = vmax.f32 %v894_v49, 0.0  ;;  %v4941_v60 = vsel %vm457_vm12, 1.0, %v6577_v22  ;;  %v1320_v26 = vsel %vm805_vm3, %v4169_v57, %v4593_v14  ;;  %v6578_v54 = vrot.slane %v4852_v33, 7 }
 0x1a8   : > { %v4894_v17 = vpop.permute.xlu2 %1512  ;;  %v1145_v10 = vmul.f32 %v4889_v8, %v4871_v62  ;;  %v1570_v57 = vsel %vm805_vm3, %v4503_v59, %v4861_v6  ;;  %v1324_v33 = vsel %vm6523_vm4, %v1320_v26, %v4663_v42  ;;  %v1321_v26 = vsel %vm805_vm3, %v4166_v56, %v4701_v31 }
 0x1a9   : > { %1784 = vrot.lane.b32.xlu0 %v4869_v2, %s6549_s18  ;;  %v902_v32 = vmax.f32 %v898_v5, %v900_v23  ;;  %v1328_v42 = vsel %vm6524_vm5, %v1324_v33, %v4665_v37  ;;  %v482_v33 = vld [vmem:[%s4052_s19 + $0xb0] sm:$0xff]  ;;  %vm2799_vm12 = vcmask 162816  }
 0x1ab   : > { %1796 = vrot.lane.b32.xlu1 %v4899_v55, %s6550_s20  ;;  %v1535_v30 = vpop.permute.xlu0 %1534 }
 0x1ac   : > { %v887_v28 = vpop.f32.mrf.mxu0 }
 0x1ad   : > { %v893_v29 = vmul.f32 %v4889_v8, %v887_v28  ;;  %v4922_v21 = vpop.permute.xlu1 %1302  ;;  %v1585_v28 = vsel %vm825_vm7, %v1581_v35, %v1523_v58  ;;  %v1150_v35 = vadd.f32 %v4908_v63, %v1146_v24 }
 0x1ae   : > { %6576 = vst [vmem:[#allocation36_spill] sm:$0xff] %v4922_v21  ;;  %1808 = vrot.lane.b32.xlu2 %v4917_v40, %s6547_s26  ;;  %v1589_v21 = vsel %vm830_vm8, %v1585_v28, %v1535_v30  ;;  %v1149_v28 = vadd.f32 %v4908_v63, %v1145_v10 }
 0x1af   : > { %v897_v4 = vadd.f32 %v4908_v63, %v893_v29  ;;  %v1593_v30 = vsel %vm835_vm9, %v1589_v21, %v4846_v0  ;;  %v653_v0 = vsel %vm525_vm0, %v6578_v54, 0.0  ;;  %v1154_v5 = vmax.f32 %v1150_v35, 0.0 }
 0x1b0   : > { %v4930_v43 = vpop.permute.xlu2 %1548  ;;  %v1718_v23 = vrot.slane %v653_v0, 2  ;;  %v1153_v37 = vmax.f32 %v1149_v28, 0.0 }
 0x1b1   : > { %v901_v13 = vmax.f32 %v897_v4, 0.0  ;;  %1726 = vrot.lane.b32.xlu0 %v4748_v18, %s6552_s0  ;;  %v4946_v18 = vsel %vm453_vm13, 1.0, %v6577_v22  ;;  %v1713_v4 = vrot.slane %v653_v0, 1  ;;  %v1332_v0 = vsel %vm820_vm6, %v1328_v42, %v4611_v50 }
 0x1b2   : > { %v1336_v31 = vsel %vm825_vm7, %v1332_v0, %v4679_v52  ;;  %v6585_v0 = vld [vmem:[#allocation19_spill] sm:$0xff]  ;;  %vm2802_vm13 = vcmask 195584  }
 0x1b3   : > { %1738 = vrot.lane.b32.xlu1 %v4755_v19, %s6546_s29  ;;  %v903_v29 = vmax.f32 %v899_v38, %v901_v13  ;;  %v4938_v12 = vpop.permute.xlu0 %1314  ;;  %v1147_v13 = vmul.f32 %v4889_v8, %v1139_v48  ;;  %v1340_v52 = vsel %vm830_vm8, %v1336_v31, %v4681_v45  ;;  %v5048_v45 = vld [vmem:[%s6457_s1] sm:$0xff] }
 0x1b4   : > { %v1344_v28 = vsel %vm835_vm9, %v1340_v52, %v4634_v36  ;;  %v6587_v31 = vld [vmem:[#allocation31_spill] sm:$0xff]  ;;  %v6589_v52 = vld [vmem:[#allocation28_spill] sm:$0xff] }
 0x1b5   : > { %v1559_v58 = vpop.permute.xlu1 %1558  ;;  %922 = vmatpush.msra.mxu1 %v903_v29  ;;  %945 = vmatpush.msra.mxu2 %v903_v29  ;;  %v1151_v49 = vadd.f32 %v4908_v63, %v1147_v13 }
 0x1b6   : > { %1750 = vrot.lane.b32.xlu2 %v4776_v9, %s6548_s17  ;;  %v1597_v19 = vsel %vm840_vm10, %v1593_v30, %v1559_v58 }
 0x1b7   : > { %923 = vmatpush.msra.mxu1 %v902_v32  ;;  %946 = vmatpush.msra.mxu2 %v902_v32  ;;  %v1155_v29 = vmax.f32 %v1151_v49, 0.0  ;;  %v6579_v32 = vrot.slane %v4866_v51, 1  ;;  %v5018_v49 = vld [vmem:[%s4052_s19 + $0xb8] sm:$0xff] }
 0x1b8   : > { %3674 = vmatmul.msk.f32.gmra.mxu0 %vm845_vm11, %v1597_v19  ;;  %3657 = vmatmul.msk.f32.vlgmr.msra.gmra.mxu2 %vm904_vm14, %v4941_v60  ;;  %v4959_v21 = vpop.permute.xlu2 %1490  ;;  %v6580_v19 = vrot.slane %v4866_v51, 2 }
 0x1b9   : > { %3656 = vmatmul.msk.f32.vlgmr.msra.gmra.mxu1 %vm904_vm14, %v4946_v18  ;;  %1762 = vrot.lane.b32.xlu0 %v4837_v1, %s6553_s30  ;;  %v4991_v30 = vsel %vm661_vm1, %v6579_v32, %v1713_v4  ;;  %v1157_v35 = vmax.f32 %v1153_v37, %v1155_v29  ;;  %v562_v4 = vrot.slane %v5018_v49, 7  ;;  %v6583_v37 = vld [vmem:[#allocation29_spill] sm:$0xff] }
 0x1ba   : > { %v1142_v14 = vpop.f32.mrf.mxu3  ;;  %v4998_v13 = vsel %vm6526_vm2, %v6580_v19, %v1718_v23 }
 0x1bb   : > { %v1148_v62 = vmul.f32 %v4889_v8, %v1142_v14  ;;  %1774 = vrot.lane.b32.xlu1 %v4844_v20, %s6554_s28  ;;  %v1489_v38 = vpop.permute.xlu0 %1488 }
 0x1bc   : > { %v1574_v6 = vsel %vm6523_vm4, %v1570_v57, %v1489_v38  ;;  %v1325_v57 = vsel %vm6523_vm4, %v1321_v26, %v4652_v16  ;;  %v6584_v26 = vld [vmem:[#allocation16_spill] sm:$0xff] }
 0x1bd   : > { %v1152_v59 = vadd.f32 %v4908_v63, %v1148_v62  ;;  %v1501_v48 = vpop.permute.xlu1 %1500 }
 0x1be   : > { %1786 = vrot.lane.b32.xlu2 %v4866_v51, %s6549_s18  ;;  %v1578_v58 = vsel %vm6524_vm5, %v1574_v6, %v1501_v48 }
 0x1bf   : > { %v1156_v22 = vmax.f32 %v1152_v59, 0.0  ;;  %v1582_v10 = vsel %vm820_vm6, %v1578_v58, %v4894_v17  ;;  %v1329_v17 = vsel %vm6524_vm5, %v1325_v57, %v4718_v44  ;;  %v561_v44 = vrot.slane %v482_v33, 7  ;;  %v6588_v33 = vld [vmem:[#allocation26_spill] sm:$0xff] }
 0x1c0   : > { %v4993_v24 = vpop.permute.xlu2 %1526  ;;  %v1333_v38 = vsel %vm820_vm6, %v1329_v17, %v4720_v25  ;;  %v1322_v25 = vsel %vm805_vm3, %v4284_v46, %v4743_v34  ;;  %v1348_v46 = vsel %vm840_vm10, %v1344_v28, %v4693_v41 }
 0x1c1   : > { %v1158_v54 = vmax.f32 %v1154_v5, %v1156_v22  ;;  %1798 = vrot.lane.b32.xlu0 %v4991_v30, %s6550_s20  ;;  %v5063_v59 = vsel %vm525_vm0, %v561_v44, %v562_v4  ;;  %v5066_v6 = vsel %vm525_vm0, 0.0, %v561_v44  ;;  %v1326_v34 = vsel %vm6523_vm4, %v1322_v25, %v4707_v27 }
 0x1c2   : > { %6581 = vst [vmem:[#allocation37_spill] sm:$0xff] %v5063_v59  ;;  %v1947_v5 = vrot.slane %v5063_v59, 1  ;;  %v1330_v27 = vsel %vm6524_vm5, %v1326_v34, %v4757_v15  ;;  %v1952_v32 = vrot.slane %v5063_v59, 2 }
 0x1c3   : > { %1810 = vrot.lane.b32.xlu1 %v4998_v13, %s6547_s26  ;;  %1173 = vmatpush.msrb.mxu1 %v1158_v54  ;;  %v1525_v56 = vpop.permute.xlu0 %1524  ;;  %6582 = vst [vmem:[#allocation38_spill] sm:$0xff] %v5066_v6  ;;  %v1334_v15 = vsel %vm820_vm6, %v1330_v27, %v4769_v53 }
 0x1c4   : > { %1193 = vmatpush.msrb.mxu2 %v1158_v54  ;;  %v1586_v50 = vsel %vm825_vm7, %v1582_v10, %v1525_v56 }
 0x1c5   : > { %v1537_v14 = vpop.permute.xlu1 %1536  ;;  %1174 = vmatpush.msrb.mxu1 %v1157_v35 }
 0x1c6   : > { %1194 = vmatpush.msrb.mxu2 %v1157_v35  ;;  %1968 = vrot.lane.b32.xlu2 %v4797_v3, %s6552_s0  ;;  %v1590_v16 = vsel %vm830_vm8, %v1586_v50, %v1537_v14  ;;  %v5036_v3 = vld [vmem:[%s6457_s1 + $0x8] sm:$0x1]  ;;  %v6586_v35 = vld [vmem:[#allocation22_spill] sm:$0xff] }
 0x1c7   : > { %3663 = vmatmul.msk.f32.vlgmr.msrb.gmra.mxu1 %vm904_vm14, %v4946_v18  ;;  %3664 = vmatmul.msk.f32.vlgmr.msrb.gmra.mxu2 %vm904_vm14, %v4941_v60  ;;  %v1594_v23 = vsel %vm835_vm9, %v1590_v16, %v4930_v43  ;;  %v1337_v43 = vsel %vm825_vm7, %v1333_v38, %v4669_v47  ;;  %v1946_v47 = vrot.slane %v5066_v6, 1  ;;  %v1338_v57 = vsel %vm825_vm7, %v1334_v15, %v6586_v35  ;;  %v6590_v38 = vld [vmem:[#allocation27_spill] sm:$0xff] }
 0x1c8   : > { %v5031_v62 = vpop.permute.xlu2 %1562  ;;  %3665 = vmatpush.msk.msra.mxu1 %vm525_vm0, %v5036_v3  ;;  %v1341_v41 = vsel %vm830_vm8, %v1337_v43, %v4731_v7  ;;  %v1951_v7 = vrot.slane %v5066_v6, 2  ;;  %v1342_v17 = vsel %vm830_vm8, %v1338_v57, %v6588_v33  ;;  %v6591_v43 = vld [vmem:[#allocation32_spill] sm:$0xff] }
 0x1c9   : > { %1980 = vrot.lane.b32.xlu0 %v4802_v11, %s6546_s29  ;;  %v1345_v22 = vsel %vm835_vm9, %v1341_v41, %v4733_v61  ;;  %v5098_v58 = vsel %vm661_vm1, %v1946_v47, %v1947_v5  ;;  %v1346_v44 = vsel %vm835_vm9, %v1342_v17, %v6589_v52  ;;  %v654_v41 = vsel %vm525_vm0, %v562_v4, 0.0 }
 0x1ca   : > { %1379 = vmatpush.msra.mxu1 %v5048_v45  ;;  %v1349_v10 = vsel %vm840_vm10, %v1345_v22, %v6585_v0  ;;  %v5117_v53 = vsel %vm6526_vm2, %v1951_v7, %v1952_v32  ;;  %v6595_v22 = vld [vmem:[#allocation36_spill] sm:$0xff]  ;;  %v1954_v15 = vrot.slane %v654_v41, 2 }
 0x1cb   : > { %1992 = vrot.lane.b32.xlu1 %v4869_v2, %s6548_s17  ;;  %v1561_v11 = vpop.permute.xlu0 %1560 }
 0x1cc   : > { %v1598_v48 = vsel %vm840_vm10, %v1594_v23, %v1561_v11 }
 0x1cd   : > { %v1479_v36 = vpop.permute.xlu1 %1478  ;;  %3675 = vmatmul.msk.f32.gmra.mxu0 %vm845_vm11, %v1598_v48 }
 0x1ce   : > { %2004 = vrot.lane.b32.xlu2 %v4899_v55, %s6553_s30  ;;  %v1571_v42 = vsel %vm805_vm3, %v4493_v39, %v1479_v36 }
 0x1cf   : > { %3666 = vmatmul.msk.f32.vlgmr.msra.gmra.mxu1 %vm845_vm11, %v1348_v46  ;;  %v1575_v39 = vsel %vm6523_vm4, %v1571_v42, %v4959_v21  ;;  %v1323_v21 = vsel %vm805_vm3, %v6584_v26, %v6583_v37  ;;  %v6593_v42 = vld [vmem:[#allocation35_spill] sm:$0xff]  ;;  %v5181_v26 = vsel %vm6526_vm2, %v1952_v32, %v1954_v15 }
 0x1d0   : > { %v5085_v29 = vpop.permute.xlu2 %1744  ;;  %v1327_v50 = vsel %vm6523_vm4, %v1323_v21, %v6587_v31 }
 0x1d1   : > { %2016 = vrot.lane.b32.xlu0 %v4917_v40, %s6554_s28  ;;  %v1331_v23 = vsel %vm6524_vm5, %v1327_v50, %v6590_v38 }
 0x1d2   : > { %v1335_v36 = vsel %vm820_vm6, %v1331_v23, %v6591_v43 }
 0x1d3   : > { %2028 = vrot.lane.b32.xlu1 %v5066_v6, %s6549_s18  ;;  %v1503_v19 = vpop.permute.xlu0 %1502  ;;  %v1339_v47 = vsel %vm825_vm7, %v1335_v36, %v6593_v42 }
 0x1d4   : > { %v1579_v61 = vsel %vm6524_vm5, %v1575_v39, %v1503_v19  ;;  %v1949_v39 = vrot.slane %v654_v41, 1  ;;  %v486_v41 = vld [vmem:[%s4052_s19 + $0xd0] sm:$0xff] }
 0x1d5   : > { %v1515_v54 = vpop.permute.xlu1 %1514 }
 0x1d6   : > { %2040 = vrot.lane.b32.xlu2 %v5098_v58, %s6550_s20  ;;  %v1583_v56 = vsel %vm820_vm6, %v1579_v61, %v1515_v54  ;;  %v5174_v37 = vsel %vm661_vm1, %v1947_v5, %v1949_v39  ;;  %v484_v5 = vld [vmem:[%s4052_s19 + $0xc0] sm:$0xff]  ;;  %v485_v54 = vld [vmem:[%s4052_s19 + $0xc8] sm:$0xff] }
 0x1d7   : > { %3667 = vmatmul.msk.f32.gmra.mxu1 %vm845_vm11, %v1349_v10  ;;  %v1587_v16 = vsel %vm825_vm7, %v1583_v56, %v4993_v24  ;;  %v6592_v24 = vld [vmem:[#allocation23_spill] sm:$0xff]  ;;  %v564_v32 = vrot.slane %v484_v5, 7  ;;  %v565_v10 = vrot.slane %v485_v54, 7 }
 0x1d8   : > { %v5121_v14 = vpop.permute.xlu2 %1780  ;;  %v1350_v46 = vsel %vm840_vm10, %v1346_v44, %v6592_v24 }
 0x1d9   : > { %2052 = vrot.lane.b32.xlu0 %v5117_v53, %s6547_s26  ;;  %v5206_v56 = vsel %vm525_vm0, %v564_v32, %v565_v10  ;;  %v5209_v31 = vsel %vm525_vm0, 0.0, %v564_v32  ;;  %v655_v43 = vsel %vm525_vm0, %v565_v10, 0.0 }
 0x1da   : > { %6596 = vst [vmem:[#allocation29_spill] sm:$0xff] %v5206_v56  ;;  %v1963_v33 = vrot.slane %v5209_v31, 2  ;;  %v1964_v17 = vrot.slane %v5206_v56, 2  ;;  %v1966_v24 = vrot.slane %v655_v43, 2 }
 0x1db   : > { %1970 = vrot.lane.b32.xlu1 %v4837_v1, %s6552_s0  ;;  %v1539_v28 = vpop.permute.xlu0 %1538  ;;  %6597 = vst [vmem:[#allocation16_spill] sm:$0xff] %v5209_v31 }
 0x1dc   : > { %v1591_v25 = vsel %vm830_vm8, %v1587_v16, %v1539_v28  ;;  %v5231_v38 = vsel %vm6526_vm2, %v1963_v33, %v1964_v17  ;;  %v5272_v42 = vsel %vm6526_vm2, %v1964_v17, %v1966_v24 }
 0x1dd   : > { %v1551_v11 = vpop.permute.xlu1 %1550 }
 0x1de   : > { %v1595_v48 = vsel %vm835_vm9, %v1591_v25, %v1551_v11  ;;  %1982 = vrot.lane.b32.xlu2 %v4844_v20, %s6546_s29  ;;  %v6594_v20 = vld [vmem:[#allocation30_spill] sm:$0xff] }
 0x1df   : > { %3668 = vmatmul.msk.f32.gmra.mxu1 %vm845_vm11, %v1350_v46  ;;  %v1599_v1 = vsel %vm840_vm10, %v1595_v48, %v5031_v62  ;;  %v1343_v62 = vsel %vm830_vm8, %v1339_v47, %v6594_v20  ;;  %v487_v20 = vld [vmem:[%s4052_s19 + $0xd8] sm:$0xff] }
 0x1e0   : > { %3676 = vmatmul.msk.f32.gmra.mxu0 %vm845_vm11, %v1599_v1  ;;  %v5147_v34 = vpop.permute.xlu2 %1722  ;;  %v1347_v7 = vsel %vm835_vm9, %v1343_v62, %v6595_v22  ;;  %v567_v22 = vrot.slane %v486_v41, 7 }
 0x1e1   : > { %1994 = vrot.lane.b32.xlu0 %v4866_v51, %s6548_s17  ;;  %v1351_v4 = vsel %vm840_vm10, %v1347_v7, %v4938_v12  ;;  %v568_v7 = vrot.slane %v487_v20, 7 }
 0x1e2   : > { %v5294_v5 = vsel %vm525_vm0, 0.0, %v567_v22 }
 0x1e3   : > { %2006 = vrot.lane.b32.xlu1 %v4991_v30, %s6553_s30  ;;  %v5160_v27 = vpop.permute.xlu0 %1720  ;;  %v5291_v15 = vsel %vm525_vm0, %v567_v22, %v568_v7  ;;  %6601 = vst [vmem:[#allocation26_spill] sm:$0xff] %v5294_v5  ;;  %v2194_v54 = vrot.slane %v5294_v5, 1  ;;  %v2199_v10 = vrot.slane %v5294_v5, 2 }
 0x1e5   : > { %v5164_v49 = vpop.permute.xlu1 %1732 }
 0x1e6   : > { %2018 = vrot.lane.b32.xlu2 %v4998_v13, %s6554_s28 }
 0x1e7   : > { %3669 = vmatmul.msk.f32.gmra.mxu1 %vm845_vm11, %v1351_v4 }
 0x1e8   : > { %v5171_v19 = vpop.permute.xlu2 %1758 }
 0x1e9   : > { %2030 = vrot.lane.b32.xlu0 %v5063_v59, %s6549_s18 }
 0x1eb   : > { %2042 = vrot.lane.b32.xlu1 %v5174_v37, %s6550_s20  ;;  %v5183_v21 = vpop.permute.xlu0 %1756 }
 0x1ed   : > { %v5185_v12 = vpop.permute.xlu1 %1768 }
 0x1ee   : > { %2054 = vrot.lane.b32.xlu2 %v5181_v26, %s6547_s26 }
 0x1f0   : > { %v5189_v61 = vpop.permute.xlu2 %1794 }
 0x1f1   : > { %1972 = vrot.lane.b32.xlu0 %v4899_v55, %s6552_s0  ;;  %v1958_v55 = vrot.slane %v5209_v31, 1 }
 0x1f3   : > { %1984 = vrot.lane.b32.xlu1 %v4917_v40, %s6546_s29  ;;  %v5197_v0 = vpop.permute.xlu0 %1792  ;;  %v1959_v40 = vrot.slane %v5206_v56, 1 }
 0x1f5   : > { %v5199_v35 = vpop.permute.xlu1 %1804  ;;  %v5226_v52 = vsel %vm661_vm1, %v1958_v55, %v1959_v40  ;;  %v2200_v55 = vrot.slane %v5291_v15, 2 }
 0x1f6   : > { %1996 = vrot.lane.b32.xlu2 %v5066_v6, %s6548_s17 }
 0x1f7   : > { %v5320_v17 = vsel %vm6526_vm2, %v2199_v10, %v2200_v55 }
 0x1f8   : > { %v5203_v57 = vpop.permute.xlu2 %1736 }
 0x1f9   : > { %2008 = vrot.lane.b32.xlu0 %v5098_v58, %s6553_s30 }
 0x1fb   : > { %2020 = vrot.lane.b32.xlu1 %v5117_v53, %s6554_s28  ;;  %v5217_v50 = vpop.permute.xlu0 %1734 }
 0x1fd   : > { %v5221_v16 = vpop.permute.xlu1 %1746 }
 0x1fe   : > { %2032 = vrot.lane.b32.xlu2 %v5209_v31, %s6549_s18 }
 0x200   : > { %v5228_v44 = vpop.permute.xlu2 %1772 }
 0x201   : > { %2044 = vrot.lane.b32.xlu0 %v5226_v52, %s6550_s20 }
 0x203   : > { %2056 = vrot.lane.b32.xlu1 %v5231_v38, %s6547_s26  ;;  %v5237_v23 = vpop.permute.xlu0 %1770 }
 0x205   : > { %v5239_v28 = vpop.permute.xlu1 %1782 }
 0x206   : > { %1974 = vrot.lane.b32.xlu2 %v4991_v30, %s6552_s0  ;;  %v1961_v30 = vrot.slane %v655_v43, 1 }
 0x208   : > { %v5243_v25 = vpop.permute.xlu2 %1808 }
 0x209   : > { %6598 = vst [vmem:[#allocation19_spill] sm:$0xff] %v5243_v25  ;;  %1986 = vrot.lane.b32.xlu0 %v4998_v13, %s6546_s29  ;;  %v5263_v13 = vsel %vm661_vm1, %v1959_v40, %v1961_v30 }
 0x20b   : > { %1998 = vrot.lane.b32.xlu1 %v5063_v59, %s6548_s17  ;;  %v5249_v11 = vpop.permute.xlu0 %1806 }
 0x20d   : > { %v5252_v36 = vpop.permute.xlu1 %1724 }
 0x20e   : > { %2010 = vrot.lane.b32.xlu2 %v5174_v37, %s6553_s30 }
 0x210   : > { %v5256_v48 = vpop.permute.xlu2 %1750 }
 0x211   : > { %2022 = vrot.lane.b32.xlu0 %v5181_v26, %s6554_s28 }
 0x213   : > { %2034 = vrot.lane.b32.xlu1 %v5206_v56, %s6549_s18  ;;  %v5265_v46 = vpop.permute.xlu0 %1748 }
 0x215   : > { %v5267_v1 = vpop.permute.xlu1 %1760 }
 0x216   : > { %2046 = vrot.lane.b32.xlu2 %v5263_v13, %s6550_s20 }
 0x218   : > { %v5274_v47 = vpop.permute.xlu2 %1786 }
 0x219   : > { %6599 = vst [vmem:[#allocation22_spill] sm:$0xff] %v5274_v47  ;;  %2058 = vrot.lane.b32.xlu0 %v5272_v42, %s6547_s26 }
 0x21b   : > { %2216 = vrot.lane.b32.xlu1 %v5098_v58, %s6552_s0  ;;  %v5282_v62 = vpop.permute.xlu0 %1784 }
 0x21d   : > { %v5284_v39 = vpop.permute.xlu1 %1796 }
 0x21e   : > { %2228 = vrot.lane.b32.xlu2 %v5117_v53, %s6546_s29  ;;  %v2195_v53 = vrot.slane %v5291_v15, 1 }
 0x220   : > { %v5288_v4 = vpop.permute.xlu2 %1968  ;;  %v5313_v33 = vsel %vm661_vm1, %v2194_v54, %v2195_v53  ;;  %v656_v54 = vsel %vm525_vm0, %v568_v7, 0.0 }
 0x221   : > { %6600 = vst [vmem:[#allocation31_spill] sm:$0xff] %v5288_v4  ;;  %2240 = vrot.lane.b32.xlu0 %v5209_v31, %s6548_s17  ;;  %v2202_v31 = vrot.slane %v656_v54, 2 }
 0x223   : > { %2252 = vrot.lane.b32.xlu1 %v5226_v52, %s6553_s30  ;;  %v5300_v58 = vpop.permute.xlu0 %1726  ;;  %v5361_v6 = vsel %vm6526_vm2, %v2200_v55, %v2202_v31 }
 0x225   : > { %v5304_v32 = vpop.permute.xlu1 %1738 }
 0x226   : > { %2264 = vrot.lane.b32.xlu2 %v5231_v38, %s6554_s28 }
 0x228   : > { %v5310_v40 = vpop.permute.xlu2 %2004 }
 0x229   : > { %6602 = vst [vmem:[#allocation28_spill] sm:$0xff] %v5310_v40  ;;  %2276 = vrot.lane.b32.xlu0 %v5294_v5, %s6549_s18 }
 0x22b   : > { %2288 = vrot.lane.b32.xlu1 %v5313_v33, %s6550_s20  ;;  %v5322_v43 = vpop.permute.xlu0 %1762 }
 0x22d   : > { %v5324_v30 = vpop.permute.xlu1 %1774 }
 0x22e   : > { %2300 = vrot.lane.b32.xlu2 %v5320_v17, %s6547_s26 }
 0x230   : > { %v5328_v24 = vpop.permute.xlu2 %2040 }
 0x231   : > { %6603 = vst [vmem:[#allocation27_spill] sm:$0xff] %v5328_v24  ;;  %2218 = vrot.lane.b32.xlu0 %v5174_v37, %s6552_s0  ;;  %v2197_v37 = vrot.slane %v656_v54, 1  ;;  %v1629_v24 = vpop.f32.mrf.mxu0 }
 0x233   : > { %2230 = vrot.lane.b32.xlu1 %v5181_v26, %s6546_s29  ;;  %v5334_v41 = vpop.permute.xlu0 %1798  ;;  %v5356_v7 = vsel %vm661_vm1, %v2195_v53, %v2197_v37  ;;  %v488_v53 = vld [vmem:[%s4052_s19 + $0xe0] sm:$0xff]  ;;  %v489_v37 = vld [vmem:[%s4052_s19 + $0xe8] sm:$0xff] }
 0x234   : > { %6604 = vst [vmem:[#allocation32_spill] sm:$0xff] %v5334_v41  ;;  %v570_v55 = vrot.slane %v488_v53, 7 }
 0x235   : > { %v5336_v20 = vpop.permute.xlu1 %1810 }
 0x236   : > { %6605 = vst [vmem:[#allocation23_spill] sm:$0xff] %v5336_v20  ;;  %2242 = vrot.lane.b32.xlu2 %v5206_v56, %s6548_s17  ;;  %v5345_v10 = vpop.f32.mrf.mxu1  ;;  %v5389_v40 = vsel %vm525_vm0, 0.0, %v570_v55 }
 0x237   : > { %6607 = vst [vmem:[#allocation30_spill] sm:$0xff] %v5345_v10 }
 0x238   : > { %v5340_v22 = vpop.permute.xlu2 %1982 }
 0x239   : > { %6606 = vst [vmem:[#allocation35_spill] sm:$0xff] %v5340_v22  ;;  %2254 = vrot.lane.b32.xlu0 %v5263_v13, %s6553_s30 }
 0x23b   : > { %2266 = vrot.lane.b32.xlu1 %v5272_v42, %s6554_s28  ;;  %v5349_v26 = vpop.permute.xlu0 %1980 }
 0x23c   : > { %6608 = vst [vmem:[#allocation36_spill] sm:$0xff] %v5349_v26 }
 0x23d   : > { %v5351_v59 = vpop.permute.xlu1 %1992 }
 0x23e   : > { %6609 = vst [vmem:[#allocation39_spill] sm:$0xff] %v5351_v59  ;;  %2278 = vrot.lane.b32.xlu2 %v5291_v15, %s6549_s18 }
 0x240   : > { %v5358_v56 = vpop.permute.xlu2 %2018 }
 0x241   : > { %6610 = vst [vmem:[#allocation40_spill] sm:$0xff] %v5358_v56  ;;  %2290 = vrot.lane.b32.xlu0 %v5356_v7, %s6550_s20  ;;  %v571_v56 = vrot.slane %v489_v37, 7 }
 0x243   : > { %2302 = vrot.lane.b32.xlu1 %v5361_v6, %s6547_s26  ;;  %v5369_v51 = vpop.permute.xlu0 %2016  ;;  %v657_v47 = vsel %vm525_vm0, %v571_v56, 0.0 }
 0x244   : > { %v5367_v54 = vpop.f32.mrf.mxu1  ;;  %6612 = vst [vmem:[#allocation42_spill] sm:$0xff] %v5369_v51 }
 0x245   : > { %6611 = vst [vmem:[#allocation41_spill] sm:$0xff] %v5367_v54  ;;  %v5371_v2 = vpop.permute.xlu1 %2028 }
 0x246   : > { %6613 = vst [vmem:[#allocation43_spill] sm:$0xff] %v5371_v2  ;;  %2220 = vrot.lane.b32.xlu2 %v5226_v52, %s6552_s0  ;;  %v5386_v2 = vsel %vm525_vm0, %v570_v55, %v571_v56  ;;  %v1632_v52 = vpop.f32.mrf.mxu0 }
 0x247   : > { %6616 = vst [vmem:[#allocation46_spill] sm:$0xff] %v5386_v2  ;;  %v2207_v53 = vrot.slane %v5386_v2, 1 }
 0x248   : > { %v5377_v31 = vpop.permute.xlu2 %2054 }
 0x249   : > { %6614 = vst [vmem:[#allocation44_spill] sm:$0xff] %v5377_v31  ;;  %2232 = vrot.lane.b32.xlu0 %v5231_v38, %s6546_s29  ;;  %v2206_v38 = vrot.slane %v5389_v40, 1  ;;  %v2211_v31 = vrot.slane %v5389_v40, 2 }
 0x24b   : > { %2244 = vrot.lane.b32.xlu1 %v5294_v5, %s6548_s17  ;;  %v5383_v51 = vpop.permute.xlu0 %2052  ;;  %v5404_v55 = vsel %vm661_vm1, %v2206_v38, %v2207_v53  ;;  %v1642_v38 = vmul.f32 %v4889_v8, %v1632_v52 }
 0x24c   : > { %v1381_v22 = vpop.f32.mrf.mxu1  ;;  %6615 = vst [vmem:[#allocation45_spill] sm:$0xff] %v5383_v51  ;;  %v2212_v51 = vrot.slane %v5386_v2, 2 }
 0x24d   : > { %v5391_v9 = vpop.permute.xlu1 %1970 }
 0x24e   : > { %6617 = vst [vmem:[#allocation47_spill] sm:$0xff] %v5391_v9  ;;  %2256 = vrot.lane.b32.xlu2 %v5313_v33, %s6553_s30  ;;  %v1635_v26 = vpop.f32.mrf.mxu0 }
 0x24f   : > { %v1643_v54 = vmul.f32 %v4889_v8, %v1635_v26 }
 0x250   : > { %v5397_v37 = vpop.permute.xlu2 %1996 }
 0x251   : > { %6618 = vst [vmem:[#allocation48_spill] sm:$0xff] %v5397_v37  ;;  %2268 = vrot.lane.b32.xlu0 %v5320_v17, %s6554_s28  ;;  %v5415_v37 = vsel %vm6526_vm2, %v2211_v31, %v2212_v51  ;;  %v1647_v52 = vadd.f32 %v4908_v63, %v1643_v54 }
 0x253   : > { %2280 = vrot.lane.b32.xlu1 %v5389_v40, %s6549_s18  ;;  %v5408_v59 = vpop.permute.xlu0 %1994  ;;  %v1651_v25 = vmax.f32 %v1647_v52, 0.0 }
 0x254   : > { %v1384_v9 = vpop.f32.mrf.mxu1  ;;  %6619 = vst [vmem:[#allocation49_spill] sm:$0xff] %v5408_v59 }
 0x255   : > { %v5410_v4 = vpop.permute.xlu1 %2006 }
 0x256   : > { %6620 = vst [vmem:[#allocation50_spill] sm:$0xff] %v5410_v4  ;;  %2292 = vrot.lane.b32.xlu2 %v5404_v55, %s6550_s20  ;;  %v1641_v4 = vmul.f32 %v4889_v8, %v1629_v24 }
 0x258   : > { %v5417_v5 = vpop.permute.xlu2 %2032  ;;  %v1645_v41 = vadd.f32 %v4908_v63, %v1641_v4 }
 0x259   : > { %6621 = vst [vmem:[#allocation51_spill] sm:$0xff] %v5417_v5  ;;  %2304 = vrot.lane.b32.xlu0 %v5415_v37, %s6547_s26  ;;  %v1646_v5 = vadd.f32 %v4908_v63, %v1642_v38 }
 0x25a   : > { %v1649_v4 = vmax.f32 %v1645_v41, 0.0 }
 0x25b   : > { %2222 = vrot.lane.b32.xlu1 %v5263_v13, %s6552_s0  ;;  %v5426_v10 = vpop.permute.xlu0 %2030  ;;  %v1650_v38 = vmax.f32 %v1646_v5, 0.0 }
 0x25c   : > { %v1387_v59 = vpop.f32.mrf.mxu1  ;;  %6622 = vst [vmem:[#allocation52_spill] sm:$0xff] %v5426_v10  ;;  %v1394_v10 = vmul.f32 %v4889_v8, %v1384_v9 }
 0x25d   : > { %v5428_v20 = vpop.permute.xlu1 %2042  ;;  %v1638_v31 = vpop.f32.mrf.mxu0 }
 0x25e   : > { %6623 = vst [vmem:[#allocation53_spill] sm:$0xff] %v5428_v20  ;;  %v1644_v26 = vmul.f32 %v4889_v8, %v1638_v31  ;;  %2234 = vrot.lane.b32.xlu2 %v5272_v42, %s6546_s29  ;;  %v1395_v20 = vmul.f32 %v4889_v8, %v1387_v59  ;;  %v1393_v42 = vmul.f32 %v4889_v8, %v1381_v22 }
 0x25f   : > { %v1398_v59 = vadd.f32 %v4908_v63, %v1394_v10  ;;  %v1653_v22 = vmax.f32 %v1649_v4, %v1651_v25 }
 0x260   : > { %v1648_v13 = vadd.f32 %v4908_v63, %v1644_v26  ;;  %v5437_v24 = vpop.permute.xlu2 %1974  ;;  %v1399_v56 = vadd.f32 %v4908_v63, %v1395_v20  ;;  %v1397_v41 = vadd.f32 %v4908_v63, %v1393_v42 }
 0x261   : > { %6624 = vst [vmem:[#allocation54_spill] sm:$0xff] %v5437_v24  ;;  %2246 = vrot.lane.b32.xlu0 %v5291_v15, %s6548_s17  ;;  %v2209_v24 = vrot.slane %v657_v47, 1  ;;  %v1402_v20 = vmax.f32 %v1398_v59, 0.0  ;;  %v491_v59 = vld [vmem:[%s4052_s19 + $0xf8] sm:$0xff] }
 0x262   : > { %v1652_v54 = vmax.f32 %v1648_v13, 0.0  ;;  %v1401_v25 = vmax.f32 %v1397_v41, 0.0  ;;  %v574_v41 = vrot.slane %v491_v59, 7 }
 0x263   : > { %2258 = vrot.lane.b32.xlu1 %v5356_v7, %s6553_s30  ;;  %v5447_v26 = vpop.permute.xlu0 %1972  ;;  %v5461_v10 = vsel %vm661_vm1, %v2207_v53, %v2209_v24 }
 0x264   : > { %v1390_v31 = vpop.f32.mrf.mxu1  ;;  %6625 = vst [vmem:[#allocation55_spill] sm:$0xff] %v5447_v26  ;;  %v1654_v9 = vmax.f32 %v1650_v38, %v1652_v54  ;;  %v2214_v26 = vrot.slane %v657_v47, 2 }
 0x265   : > { %v1396_v5 = vmul.f32 %v4889_v8, %v1390_v31  ;;  %v5452_v52 = vpop.permute.xlu1 %1984  ;;  %v1403_v8 = vmax.f32 %v1399_v56, 0.0  ;;  %v490_v31 = vld [vmem:[%s4052_s19 + $0xf0] sm:$0xff]  ;;  %s3898_s19 = smov 20  }
 0x266   : > { %2270 = vrot.lane.b32.xlu2 %v5361_v6, %s6554_s28  ;;  %1689 = vmatpush.msrb.mxu3 %v1654_v9  ;;  %v5470_v47 = vsel %vm6526_vm2, %v2212_v51, %v2214_v26  ;;  %v6626_v51 = vld [vmem:[#allocation18_spill] sm:$0xff] }
 0x267   : > { %v1400_v13 = vadd.f32 %v4908_v63, %v1396_v5  ;;  %v1405_v42 = vmax.f32 %v1401_v25, %v1403_v8  ;;  %v1816_v26 = vsel %vm805_vm3, %v6626_v51, %v5160_v27  ;;  %v573_v5 = vrot.slane %v490_v31, 7 }
 0x268   : > { %1690 = vmatpush.msrb.mxu3 %v1653_v22  ;;  %v5458_v38 = vpop.permute.xlu2 %2010 }
 0x269   : > { %v1404_v54 = vmax.f32 %v1400_v13, 0.0  ;;  %3678 = vmatmul.msk.f32.vlgmr.msrb.gmra.mxu3 %vm904_vm14, %v4941_v60  ;;  %2282 = vrot.lane.b32.xlu0 %v5386_v2, %s6549_s18  ;;  %v1820_v13 = vsel %vm6523_vm4, %v1816_v26, %v5164_v49  ;;  %v6627_v49 = vld [vmem:[#allocation17_spill] sm:$0xff] }
 0x26a   : > { %v1824_v27 = vsel %vm6524_vm5, %v1820_v13, %v5085_v29 }
 0x26b   : > { %v1406_v63 = vmax.f32 %v1402_v20, %v1404_v54  ;;  %2294 = vrot.lane.b32.xlu1 %v5461_v10, %s6550_s20  ;;  %v5472_v53 = vpop.permute.xlu0 %2008  ;;  %v1828_v29 = vsel %vm820_vm6, %v1824_v27, %v5183_v21 }
 0x26c   : > { %v1832_v21 = vsel %vm825_vm7, %v1828_v29, %v5185_v12  ;;  %v6628_v12 = vld [vmem:[#allocation21_spill] sm:$0xff] }
 0x26d   : > { %1421 = vmatpush.msra.mxu2 %v1406_v63  ;;  %v5474_v24 = vpop.permute.xlu1 %2020  ;;  %v1836_v51 = vsel %vm830_vm8, %v1832_v21, %v5121_v14  ;;  %v1818_v26 = vsel %vm805_vm3, %v6628_v12, %v5252_v36  ;;  %v6631_v12 = vld [vmem:[#allocation22_spill] sm:$0xff] }
 0x26e   : > { %2306 = vrot.lane.b32.xlu2 %v5470_v47, %s6547_s26  ;;  %v1822_v27 = vsel %vm6523_vm4, %v1818_v26, %v5203_v57 }
 0x26f   : > { %1422 = vmatpush.msra.mxu2 %v1405_v42 }
 0x270   : > { %3670 = vmatmul.msk.f32.vlgmr.msra.gmra.mxu2 %vm904_vm14, %v4946_v18  ;;  %v5480_v4 = vpop.permute.xlu2 %2046 }
 0x271   : > { %1441 = vmatpush.msrb.mxu2 %v1406_v63  ;;  %2452 = vrot.lane.b32.xlu0 %v5313_v33, %s6552_s0 }
 0x273   : > { %1442 = vmatpush.msrb.mxu2 %v1405_v42  ;;  %2464 = vrot.lane.b32.xlu1 %v5320_v17, %s6546_s29  ;;  %v5491_v56 = vpop.permute.xlu0 %2044  ;;  %v5506_v17 = vsel %vm525_vm0, %v573_v5, %v574_v41 }
 0x274   : > { %v2443_v54 = vrot.slane %v5506_v17, 1 }
 0x275   : > { %1669 = vmatpush.msra.mxu2 %v1654_v9  ;;  %v5495_v20 = vpop.permute.xlu1 %2056  ;;  %v5509_v9 = vsel %vm525_vm0, 0.0, %v573_v5 }
 0x276   : > { %2476 = vrot.lane.b32.xlu2 %v5389_v40, %s6548_s17  ;;  %v2442_v8 = vrot.slane %v5509_v9, 1  ;;  %v2447_v25 = vrot.slane %v5509_v9, 2 }
 0x277   : > { %1670 = vmatpush.msra.mxu2 %v1653_v22  ;;  %v1817_v22 = vsel %vm805_vm3, %v6627_v49, %v5147_v34  ;;  %v2448_v34 = vrot.slane %v5506_v17, 2  ;;  %v1826_v49 = vsel %vm6524_vm5, %v1822_v27, %v5265_v46 }
 0x278   : > { %3671 = vmatmul.msk.f32.vlgmr.msrb.gmra.mxu2 %vm904_vm14, %v4941_v60  ;;  %v5503_v33 = vpop.permute.xlu2 %2228  ;;  %v1821_v63 = vsel %vm6523_vm4, %v1817_v22, %v5217_v50  ;;  %v2444_v31 = vsel %vm661_vm1, %v2442_v8, %v2443_v54  ;;  %v6629_v22 = vld [vmem:[#allocation20_spill] sm:$0xff] }
 0x279   : > { %3679 = vmatpush.msk.msrb.mxu2 %vm525_vm0, %v5036_v3  ;;  %2488 = vrot.lane.b32.xlu0 %v5404_v55, %s6553_s30  ;;  %v2449_v50 = vsel %vm6526_vm2, %v2447_v25, %v2448_v34 }
 0x27b   : > { %2500 = vrot.lane.b32.xlu1 %v5415_v37, %s6554_s28  ;;  %1875 = vmatpush.msrb.mxu2 %v5048_v45  ;;  %v5525_v3 = vpop.permute.xlu0 %1986  ;;  %v1825_v45 = vsel %vm6524_vm5, %v1821_v63, %v5221_v16  ;;  %v1840_v16 = vsel %vm835_vm9, %v1836_v51, %v5197_v0 }
 0x27c   : > { %v1829_v5 = vsel %vm820_vm6, %v1825_v45, %v5171_v19  ;;  %v1844_v19 = vsel %vm840_vm10, %v1840_v16, %v5199_v35  ;;  %v1830_v35 = vsel %vm820_vm6, %v1826_v49, %v5267_v1  ;;  %v6630_v45 = vld [vmem:[#allocation19_spill] sm:$0xff] }
 0x27d   : > { %v5531_v42 = vpop.permute.xlu1 %1998  ;;  %v1833_v36 = vsel %vm825_vm7, %v1829_v5, %v5237_v23  ;;  %v1819_v23 = vsel %vm805_vm3, %v6629_v22, %v5300_v58 }
 0x27e   : > { %2512 = vrot.lane.b32.xlu2 %v5509_v9, %s6549_s18  ;;  %v1837_v57 = vsel %vm830_vm8, %v1833_v36, %v5239_v28  ;;  %v658_v28 = vsel %vm525_vm0, %v574_v41, 0.0  ;;  %v1823_v29 = vsel %vm6523_vm4, %v1819_v23, %v5304_v32 }
 0x27f   : > { %v2445_v8 = vrot.slane %v658_v28, 1  ;;  %v2450_v25 = vrot.slane %v658_v28, 2  ;;  %v948_v28 = vpop.f32.mrf.mxu2 }
 0x280   : > { %3677 = vmatmul.msk.f32.vlgmr.msra.gmra.mxu2 %vm904_vm14, %v4946_v18  ;;  %v5542_v59 = vpop.permute.xlu2 %2264 }
 0x281   : > { %2524 = vrot.lane.b32.xlu0 %v2444_v31, %s6550_s20  ;;  %v2451_v51 = vsel %vm6526_vm2, %v2448_v34, %v2450_v25  ;;  %v6633_v34 = vld [vmem:[#allocation23_spill] sm:$0xff] }
 0x283   : > { %2536 = vrot.lane.b32.xlu1 %v2449_v50, %s6547_s26  ;;  %v5556_v13 = vpop.permute.xlu0 %2022 }
 0x285   : > { %v5560_v14 = vpop.permute.xlu1 %2034 }
 0x286   : > { %2454 = vrot.lane.b32.xlu2 %v5356_v7, %s6552_s0  ;;  %v1841_v7 = vsel %vm835_vm9, %v1837_v57, %v5189_v61  ;;  %v1827_v61 = vsel %vm6524_vm5, %v1823_v29, %v5256_v48  ;;  %v6635_v57 = vld [vmem:[#allocation12_spill] sm:$0xff] }
 0x287   : > { %v1845_v1 = vsel %vm840_vm10, %v1841_v7, %v5249_v11  ;;  %v2446_v11 = vsel %vm661_vm1, %v2443_v54, %v2445_v8 }
 0x288   : > { %3680 = vmatmul.msk.f32.vlgmr.msrb.gmra.mxu2 %vm845_vm11, %v1844_v19  ;;  %v5571_v0 = vpop.permute.xlu2 %2300 }
 0x289   : > { %2466 = vrot.lane.b32.xlu0 %v5361_v6, %s6546_s29  ;;  %v1834_v6 = vsel %vm825_vm7, %v1830_v35, %v5228_v44  ;;  %v1831_v44 = vsel %vm820_vm6, %v1827_v61, %v5322_v43 }
 0x28a   : > { %v1838_v32 = vsel %vm830_vm8, %v1834_v6, %v5282_v62  ;;  %v1835_v62 = vsel %vm825_vm7, %v1831_v44, %v5324_v30  ;;  %v6632_v30 = vld [vmem:[#allocation32_spill] sm:$0xff]  ;;  %v6638_v6 = vld [vmem:[#allocation30_spill] sm:$0xff]  ;;  %v6642_v44 = vld [vmem:[#allocation15_spill] sm:$0xff] }
 0x28b   : > { %2478 = vrot.lane.b32.xlu1 %v5386_v2, %s6548_s17  ;;  %v5584_v46 = vpop.permute.xlu0 %2058  ;;  %v1842_v48 = vsel %vm835_vm9, %v1838_v32, %v5284_v39  ;;  %v1839_v39 = vsel %vm830_vm8, %v1835_v62, %v6631_v12  ;;  %v1196_v32 = vpop.f32.mrf.mxu2 }
 0x28c   : > { %v1846_v43 = vsel %vm840_vm10, %v1842_v48, %v6630_v45  ;;  %v1843_v26 = vsel %vm835_vm9, %v1839_v39, %v6632_v30  ;;  %v6648_v39 = vld [vmem:[#allocation41_spill] sm:$0xff] }
 0x28d   : > { %v5591_v58 = vpop.permute.xlu1 %2216  ;;  %v1847_v27 = vsel %vm840_vm10, %v1843_v26, %v6633_v34  ;;  %v1199_v30 = vmax.f32 %v6648_v39, %v1196_v32 }
 0x28e   : > { %2490 = vrot.lane.b32.xlu2 %v5461_v10, %s6553_s30 }
 0x290   : > { %3681 = vmatmul.msk.f32.gmra.mxu2 %vm845_vm11, %v1845_v1  ;;  %v5602_v41 = vpop.permute.xlu2 %2242  ;;  %v6639_v1 = vld [vmem:[#allocation9_spill] sm:$0xff] }
 0x291   : > { %2502 = vrot.lane.b32.xlu0 %v5470_v47, %s6554_s28 }
 0x293   : > { %2514 = vrot.lane.b32.xlu1 %v5506_v17, %s6549_s18  ;;  %v5615_v63 = vpop.permute.xlu0 %2240 }
 0x295   : > { %v5617_v21 = vpop.permute.xlu1 %2252 }
 0x296   : > { %2526 = vrot.lane.b32.xlu2 %v2446_v11, %s6550_s20 }
 0x298   : > { %3682 = vmatmul.msk.f32.gmra.mxu2 %vm845_vm11, %v1846_v43  ;;  %v5626_v54 = vpop.permute.xlu2 %2278 }
 0x299   : > { %2538 = vrot.lane.b32.xlu0 %v2451_v51, %s6547_s26 }
 0x29b   : > { %2456 = vrot.lane.b32.xlu1 %v5404_v55, %s6552_s0  ;;  %v5635_v5 = vpop.permute.xlu0 %2276 }
 0x29d   : > { %v5637_v16 = vpop.permute.xlu1 %2288 }
 0x29e   : > { %2468 = vrot.lane.b32.xlu2 %v5415_v37, %s6546_s29  ;;  %v6634_v37 = vld [vmem:[#allocation10_spill] sm:$0xff] }
 0x29f   : > { %v6645_v48 = vrot.slane %v6634_v37, 1  ;;  %v6650_v34 = vrot.slane %v6634_v37, 2 }
 0x2a0   : > { %3683 = vmatmul.msk.f32.gmra.mxu2 %vm845_vm11, %v1847_v27  ;;  %v5644_v36 = vpop.permute.xlu2 %2220 }
 0x2a1   : > { %2480 = vrot.lane.b32.xlu0 %v5509_v9, %s6548_s17  ;;  %v6636_v9 = vld [vmem:[#allocation14_spill] sm:$0xff] }
 0x2a3   : > { %2492 = vrot.lane.b32.xlu1 %v2444_v31, %s6553_s30  ;;  %v5649_v55 = vpop.permute.xlu0 %2218 }
 0x2a5   : > { %v5651_v19 = vpop.permute.xlu1 %2230 }
 0x2a6   : > { %2504 = vrot.lane.b32.xlu2 %v2449_v50, %s6554_s28 }
 0x2a8   : > { %v5654_v49 = vpop.permute.xlu2 %2256 }
 0x2a9   : > { %2516 = vrot.lane.b32.xlu0 %v6634_v37, %s6549_s18 }
 0x2ab   : > { %2528 = vrot.lane.b32.xlu1 %v6635_v57, %s6550_s20  ;;  %v5660_v22 = vpop.permute.xlu0 %2254 }
 0x2ad   : > { %v5662_v23 = vpop.permute.xlu1 %2266 }
 0x2ae   : > { %2540 = vrot.lane.b32.xlu2 %v6636_v9, %s6547_s26 }
 0x2b0   : > { %v5666_v31 = vpop.permute.xlu2 %2292 }
 0x2b1   : > { %6637 = vst [vmem:[#allocation18_spill] sm:$0xff] %v5666_v31  ;;  %2458 = vrot.lane.b32.xlu0 %v5461_v10, %s6552_s0  ;;  %s3906_s0 = smov 78  }
 0x2b3   : > { %2470 = vrot.lane.b32.xlu1 %v5470_v47, %s6546_s29  ;;  %v5672_v50 = vpop.permute.xlu0 %2290  ;;  %v951_v47 = vmax.f32 %v6638_v6, %v948_v28  ;;  %v2685_v6 = vrot.slane %v1199_v30, 7  ;;  %s6529_s29 = smov 28  }
 0x2b5   : > { %v5674_v35 = vpop.permute.xlu1 %2302  ;;  %v2684_v61 = vrot.slane %v951_v47, 7 }
 0x2b6   : > { %2482 = vrot.lane.b32.xlu2 %v5506_v17, %s6548_s17  ;;  %v6641_v17 = vld [vmem:[#allocation13_spill] sm:$0xff]  ;;  %s6527_s17 = smov 32  }
 0x2b7   : > { %v2708_v12 = vsel %vm525_vm0, %v2684_v61, 0.0 }
 0x2b8   : > { %v5678_v7 = vpop.permute.xlu2 %2234  ;;  %v2720_v28 = vrot.slane %v2708_v12, 1 }
 0x2b9   : > { %2494 = vrot.lane.b32.xlu0 %v2446_v11, %s6553_s30  ;;  %v6643_v11 = vld [vmem:[#allocation11_spill] sm:$0xff] }
 0x2ba   : > { %v6644_v25 = vrot.slane %v6643_v11, 1  ;;  %v6649_v26 = vrot.slane %v6643_v11, 2  ;;  %v2709_v11 = vsel %vm525_vm0, %v2685_v6, 0.0 }
 0x2bb   : > { %2506 = vrot.lane.b32.xlu1 %v2451_v51, %s6554_s28  ;;  %v5682_v29 = vpop.permute.xlu0 %2232  ;;  %v5707_v51 = vsel %vm525_vm0, 0.0, %v2684_v61  ;;  %v2724_v61 = vrot.slane %v2708_v12, 2  ;;  %s3908_s28 = smov 58  }
 0x2bc   : > { %v5700_v62 = vsel %vm661_vm1, %v6645_v48, %v6644_v25  ;;  %v5718_v27 = vsel %vm6526_vm2, %v6650_v34, %v6649_v26  ;;  %v2719_v9 = vrot.slane %v5707_v51, 1  ;;  %v2729_v48 = vrot.slane %v2709_v11, 1 }
 0x2bd   : > { %v5684_v10 = vpop.permute.xlu1 %2244  ;;  %6646 = vst [vmem:[#allocation21_spill] sm:$0xff] %v5700_v62  ;;  %v2732_v26 = vrot.slane %v2709_v11, 2 }
 0x2be   : > { %2518 = vrot.lane.b32.xlu2 %v6639_v1, %s6549_s18  ;;  %6651 = vst [vmem:[#allocation19_spill] sm:$0xff] %v5718_v27  ;;  %v2723_v1 = vrot.slane %v5707_v51, 2  ;;  %v2721_v32 = vsel %vm661_vm1, %v2719_v9, %v2720_v28  ;;  %s3903_s18 = smov 108  }
 0x2c0   : > { %v5689_v8 = vpop.permute.xlu2 %2270  ;;  %v2725_v39 = vsel %vm6526_vm2, %v2723_v1, %v2724_v61 }
 0x2c1   : > { %6640 = vst [vmem:[#allocation17_spill] sm:$0xff] %v5689_v8  ;;  %2530 = vrot.lane.b32.xlu0 %v6641_v17, %s6550_s20  ;;  %s3899_s20 = smov 24  }
 0x2c3   : > { %2542 = vrot.lane.b32.xlu1 %v6642_v44, %s6547_s26  ;;  %v5702_v45 = vpop.permute.xlu0 %2268  ;;  %v5734_v44 = vsel %vm525_vm0, 0.0, %v2685_v6 }
 0x2c4   : > { %v2728_v30 = vrot.slane %v5734_v44, 1  ;;  %v2731_v28 = vrot.slane %v5734_v44, 2 }
 0x2c5   : > { %v5704_v43 = vpop.permute.xlu1 %2280 }
 0x2c6   : > { %6647 = vst [vmem:[#allocation20_spill] sm:$0xff] %v5704_v43  ;;  %2742 = vrot.lane.b32.xlu2 %v5700_v62, %s6553_s30  ;;  %v2730_v9 = vsel %vm661_vm1, %v2728_v30, %v2729_v48  ;;  %v2733_v1 = vsel %vm6526_vm2, %v2731_v28, %v2732_v26  ;;  %v6658_v62 = vld [vmem:[#allocation26_spill] sm:$0xff]  ;;  %v6675_v43 = vld [vmem:[#allocation24_spill] sm:$0xff] }
 0x2c8   : > { %v5720_v57 = vpop.permute.xlu2 %2306 }
 0x2c9   : > { %6652 = vst [vmem:[#allocation22_spill] sm:$0xff] %v5720_v57  ;;  %2748 = vrot.lane.b32.xlu0 %v5718_v27, %s6547_s26 }
 0x2cb   : > { %2754 = vrot.lane.b32.xlu1 %v5707_v51, %s3896_s27  ;;  %v5727_v47 = vpop.permute.xlu0 %2304 }
 0x2cc   : > { %6653 = vst [vmem:[#allocation32_spill] sm:$0xff] %v5727_v47 }
 0x2cd   : > { %v5730_v17 = vpop.permute.xlu1 %2222 }
 0x2ce   : > { %2760 = vrot.lane.b32.xlu2 %v2721_v32, %s3897_s14 }
 0x2d0   : > { %v2477_v25 = vpop.permute.xlu2 %2476 }
 0x2d1   : > { %2766 = vrot.lane.b32.xlu0 %v2725_v39, %s3898_s19 }
 0x2d3   : > { %2772 = vrot.lane.b32.xlu1 %v5734_v44, %s3899_s20  ;;  %v5743_v12 = vpop.permute.xlu0 %2246 }
 0x2d4   : > { %6654 = vst [vmem:[#allocation23_spill] sm:$0xff] %v5743_v12 }
 0x2d5   : > { %v5745_v34 = vpop.permute.xlu1 %2258 }
 0x2d6   : > { %6655 = vst [vmem:[#allocation10_spill] sm:$0xff] %v5745_v34  ;;  %2778 = vrot.lane.b32.xlu2 %v2730_v9, %s6529_s29 }
 0x2d8   : > { %v2513_v6 = vpop.permute.xlu2 %2512 }
 0x2d9   : > { %2784 = vrot.lane.b32.xlu0 %v2733_v1, %s6527_s17 }
 0x2db   : > { %2744 = vrot.lane.b32.xlu1 %v2721_v32, %s6553_s30  ;;  %v5753_v61 = vpop.permute.xlu0 %2282 }
 0x2dc   : > { %6656 = vst [vmem:[#allocation12_spill] sm:$0xff] %v5753_v61 }
 0x2dd   : > { %v5755_v11 = vpop.permute.xlu1 %2294 }
 0x2de   : > { %6657 = vst [vmem:[#allocation14_spill] sm:$0xff] %v5755_v11  ;;  %2750 = vrot.lane.b32.xlu2 %v2725_v39, %s6547_s26 }
 0x2e0   : > { %v2455_v48 = vpop.permute.xlu2 %2454 }
 0x2e1   : > { %2756 = vrot.lane.b32.xlu0 %v5734_v44, %s3896_s27 }
 0x2e3   : > { %2762 = vrot.lane.b32.xlu1 %v2730_v9, %s3897_s14  ;;  %v2453_v30 = vpop.permute.xlu0 %2452 }
 0x2e4   : > { %v2548_v26 = vsel %vm805_vm3, %v6658_v62, %v2453_v30 }
 0x2e5   : > { %v2465_v28 = vpop.permute.xlu1 %2464 }
 0x2e6   : > { %v2552_v27 = vsel %vm6523_vm4, %v2548_v26, %v2465_v28  ;;  %2768 = vrot.lane.b32.xlu2 %v2733_v1, %s3898_s19 }
 0x2e7   : > { %v2556_v32 = vsel %vm6524_vm5, %v2552_v27, %v2477_v25  ;;  %v2549_v27 = vsel %vm805_vm3, %v5291_v15, %v2455_v48 }
 0x2e8   : > { %v2491_v2 = vpop.permute.xlu2 %2490 }
 0x2eb   : > { %v2489_v57 = vpop.permute.xlu0 %2488 }
 0x2ec   : > { %v2560_v39 = vsel %vm820_vm6, %v2556_v32, %v2489_v57 }
 0x2ed   : > { %v2501_v11 = vpop.permute.xlu1 %2500 }
 0x2ee   : > { %v2564_v61 = vsel %vm825_vm7, %v2560_v39, %v2501_v11 }
 0x2ef   : > { %v2568_v47 = vsel %vm830_vm8, %v2564_v61, %v2513_v6 }
 0x2f0   : > { %v5769_v8 = vpop.permute.xlu2 %2526 }
 0x2f1   : > { %6659 = vst [vmem:[#allocation30_spill] sm:$0xff] %v5769_v8 }
 0x2f3   : > { %v1424_v31 = vpop.f32.mrf.mxu2  ;;  %v2525_v62 = vpop.permute.xlu0 %2524 }
 0x2f4   : > { %v2572_v30 = vsel %vm835_vm9, %v2568_v47, %v2525_v62 }
 0x2f5   : > { %v2537_v26 = vpop.permute.xlu1 %2536 }
 0x2f6   : > { %v5773_v28 = vsel %vm840_vm10, %v2572_v30, %v2537_v26 }
 0x2f7   : > { %6660 = vst [vmem:[#allocation9_spill] sm:$0xff] %v5773_v28 }
 0x2f8   : > { %v2469_v57 = vpop.permute.xlu2 %2468 }
 0x2fb   : > { %v1444_v25 = vpop.f32.mrf.mxu2  ;;  %v2467_v34 = vpop.permute.xlu0 %2466 }
 0x2fc   : > { %v1447_v32 = vmax.f32 %v1424_v31, %v1444_v25  ;;  %v2553_v11 = vsel %vm6523_vm4, %v2549_v27, %v2467_v34 }
 0x2fd   : > { %v2479_v6 = vpop.permute.xlu1 %2478 }
 0x2fe   : > { %v2686_v61 = vrot.slane %v1447_v32, 7  ;;  %v2557_v39 = vsel %vm6524_vm5, %v2553_v11, %v2479_v6  ;;  %v1692_v6 = vpop.f32.mrf.mxu3 }
 0x2ff   : > { %v2561_v8 = vsel %vm820_vm6, %v2557_v39, %v2491_v2 }
 0x300   : > { %v5781_v47 = vsel %vm525_vm0, 0.0, %v2686_v61  ;;  %v2710_v62 = vsel %vm525_vm0, %v2686_v61, 0.0  ;;  %v2505_v11 = vpop.permute.xlu2 %2504 }
 0x301   : > { %v2737_v30 = vrot.slane %v2710_v62, 1  ;;  %v2740_v26 = vrot.slane %v2710_v62, 2  ;;  %2774 = vrot.lane.b32.xlu0 %v5781_v47, %s3899_s20  ;;  %v2736_v15 = vrot.slane %v5781_v47, 1  ;;  %v2739_v31 = vrot.slane %v5781_v47, 2 }
 0x303   : > { %v1672_v34 = vpop.f32.mrf.mxu2  ;;  %v2738_v48 = vsel %vm661_vm1, %v2736_v15, %v2737_v30  ;;  %v2741_v27 = vsel %vm6526_vm2, %v2739_v31, %v2740_v26  ;;  %v2503_v2 = vpop.permute.xlu0 %2502 }
 0x304   : > { %2780 = vrot.lane.b32.xlu1 %v2738_v48, %s6529_s29  ;;  %2786 = vrot.lane.b32.xlu2 %v2741_v27, %s6527_s17  ;;  %v2565_v25 = vsel %vm825_vm7, %v2561_v8, %v2503_v2  ;;  %v1695_v39 = vmax.f32 %v1672_v34, %v1692_v6 }
 0x305   : > { %v2515_v32 = vpop.permute.xlu1 %2514 }
 0x306   : > { %v5794_v61 = vsel %vm830_vm8, %v2565_v25, %v2515_v32  ;;  %v2687_v26 = vrot.slane %v1695_v39, 7 }
 0x307   : > { %6661 = vst [vmem:[#allocation13_spill] sm:$0xff] %v5794_v61 }
 0x308   : > { %v5805_v2 = vpop.permute.xlu2 %2540  ;;  %v5808_v34 = vsel %vm525_vm0, 0.0, %v2687_v26 }
 0x309   : > { %2913 = vrot.lane.b32.xlu0 %v2730_v9, %s6553_s30  ;;  %6663 = vst [vmem:[#allocation11_spill] sm:$0xff] %v5805_v2  ;;  %v2711_v9 = vsel %vm525_vm0, %v2687_v26, 0.0  ;;  %v2902_v26 = vrot.slane %v5808_v34, 2 }
 0x30a   : > { %6664 = vst [vmem:[#allocation41_spill] sm:$0xff] %v5808_v34  ;;  %v2900_v25 = vrot.slane %v2711_v9, 1 }
 0x30b   : > { %v1877_v62 = vpop.f32.mrf.mxu2  ;;  %v5800_v30 = vpop.permute.xlu0 %2538 }
 0x30c   : > { %2919 = vrot.lane.b32.xlu1 %v2733_v1, %s6547_s26  ;;  %2925 = vrot.lane.b32.xlu2 %v5781_v47, %s3896_s27  ;;  %6662 = vst [vmem:[#allocation15_spill] sm:$0xff] %v5800_v30 }
 0x30d   : > { %v2457_v15 = vpop.permute.xlu1 %2456 }
 0x30e   : > { %v2550_v8 = vsel %vm805_vm3, %v5389_v40, %v2457_v15  ;;  %v2899_v40 = vrot.slane %v5808_v34, 1  ;;  %v2903_v15 = vrot.slane %v2711_v9, 2 }
 0x30f   : > { %v2554_v31 = vsel %vm6523_vm4, %v2550_v8, %v2469_v57 }
 0x310   : > { %v2901_v2 = vsel %vm661_vm1, %v2899_v40, %v2900_v25  ;;  %v5822_v28 = vpop.permute.xlu2 %2482  ;;  %v2904_v61 = vsel %vm6526_vm2, %v2902_v26, %v2903_v15 }
 0x311   : > { %2931 = vrot.lane.b32.xlu0 %v2738_v48, %s3897_s14  ;;  %6665 = vst [vmem:[#allocation26_spill] sm:$0xff] %v5822_v28 }
 0x313   : > { %v1880_v1 = vpop.f32.mrf.mxu2  ;;  %v2481_v32 = vpop.permute.xlu0 %2480 }
 0x314   : > { %2937 = vrot.lane.b32.xlu1 %v2741_v27, %s3898_s19  ;;  %2943 = vrot.lane.b32.xlu2 %v5808_v34, %s3899_s20  ;;  %v2558_v57 = vsel %vm6524_vm5, %v2554_v31, %v2481_v32 }
 0x315   : > { %v2493_v6 = vpop.permute.xlu1 %2492 }
 0x316   : > { %v2562_v39 = vsel %vm820_vm6, %v2558_v57, %v2493_v6  ;;  %v6667_v6 = vld [vmem:[#allocation31_spill] sm:$0xff] }
 0x317   : > { %v2566_v8 = vsel %vm825_vm7, %v2562_v39, %v2505_v11  ;;  %v5834_v11 = vld [vmem:[%s6458_s2] ss:$0 sm:$0xff] }
 0x318   : > { %v1890_v25 = vmul.f32 %v5834_v11, %v1880_v1  ;;  %v1889_v15 = vmul.f32 %v5834_v11, %v1877_v62  ;;  %v6671_v62 = vld [vmem:[#allocation36_spill] sm:$0xff] }
 0x319   : > { %2949 = vrot.lane.b32.xlu0 %v2901_v2, %s6529_s29 }
 0x31b   : > { %v1883_v30 = vpop.f32.mrf.mxu2  ;;  %v2517_v31 = vpop.permute.xlu0 %2516 }
 0x31c   : > { %2955 = vrot.lane.b32.xlu1 %v2904_v61, %s6527_s17  ;;  %2915 = vrot.lane.b32.xlu2 %v2738_v48, %s6553_s30  ;;  %v2570_v9 = vsel %vm830_vm8, %v2566_v8, %v2517_v31  ;;  %v1891_v40 = vmul.f32 %v5834_v11, %v1883_v30  ;;  %v6668_v48 = vld [vmem:[#allocation25_spill] sm:$0xff]  ;;  %v5846_v8 = vld [vmem:[%s6459_s3] ss:$0 sm:$0xff] }
 0x31d   : > { %v2529_v32 = vpop.permute.xlu1 %2528  ;;  %v2064_v39 = vsel %vm805_vm3, %v6668_v48, %v6667_v6  ;;  %v1894_v31 = vadd.f32 %v5846_v8, %v1890_v25  ;;  %v1893_v48 = vadd.f32 %v5846_v8, %v1889_v15 }
 0x31e   : > { %v5829_v57 = vsel %vm835_vm9, %v2570_v9, %v2529_v32  ;;  %v5849_v9 = vpop.permute.xlu2 %2518  ;;  %v2068_v1 = vsel %vm6523_vm4, %v2064_v39, %v6671_v62  ;;  %v1895_v32 = vadd.f32 %v5846_v8, %v1891_v40  ;;  %v6676_v40 = vld [vmem:[#allocation28_spill] sm:$0xff] }
 0x31f   : > { %6666 = vst [vmem:[#allocation56_spill] sm:$0xff] %v5829_v57  ;;  %v1898_v57 = vmax.f32 %v1894_v31, 0.0  ;;  %v1897_v12 = vmax.f32 %v1893_v48, 0.0  ;;  %v6677_v31 = vld [vmem:[#allocation35_spill] sm:$0xff]  ;;  %v6683_v48 = vld [vmem:[#allocation50_spill] sm:$0xff] }
 0x320   : > { %6669 = vst [vmem:[#allocation31_spill] sm:$0xff] %v5849_v9  ;;  %v6673_v9 = vld [vmem:[#allocation39_spill] sm:$0xff]  ;;  %v1899_v28 = vmax.f32 %v1895_v32, 0.0 }
 0x321   : > { %2921 = vrot.lane.b32.xlu0 %v2741_v27, %s6547_s26 }
 0x323   : > { %v1886_v26 = vpop.f32.mrf.mxu2  ;;  %v5855_v27 = vpop.permute.xlu0 %2458 }
 0x324   : > { %v1892_v30 = vmul.f32 %v5834_v11, %v1886_v26  ;;  %2927 = vrot.lane.b32.xlu1 %v5808_v34, %s3896_s27  ;;  %2933 = vrot.lane.b32.xlu2 %v2901_v2, %s3897_s14  ;;  %6670 = vst [vmem:[#allocation25_spill] sm:$0xff] %v5855_v27  ;;  %v2072_v26 = vsel %vm6524_vm5, %v2068_v1, %v6673_v9  ;;  %v6674_v27 = vld [vmem:[#allocation47_spill] sm:$0xff] }
 0x325   : > { %v5860_v6 = vpop.permute.xlu1 %2470  ;;  %v2065_v39 = vsel %vm805_vm3, %v6675_v43, %v6674_v27  ;;  %v1901_v1 = vmax.f32 %v1897_v12, %v1899_v28  ;;  %v6678_v43 = vld [vmem:[#allocation42_spill] sm:$0xff]  ;;  %v6679_v27 = vld [vmem:[#allocation49_spill] sm:$0xff]  ;;  %v5893_v12 = vld [vmem:[%s6457_s1 + $0x8] sm:$0x1] }
 0x326   : > { %6672 = vst [vmem:[#allocation36_spill] sm:$0xff] %v5860_v6  ;;  %v1896_v25 = vadd.f32 %v5846_v8, %v1892_v30  ;;  %v2076_v6 = vsel %vm820_vm6, %v2072_v26, %v6676_v40  ;;  %v2069_v9 = vsel %vm6523_vm4, %v2065_v39, %v6677_v31  ;;  %v6681_v28 = vld [vmem:[#allocation55_spill] sm:$0xff] }
 0x327   : > { %v5905_v39 = vld [vmem:[%s6457_s1] sm:$0xff] }
 0x328   : > { %v1900_v34 = vmax.f32 %v1896_v25, 0.0 }
 0x329   : > { %2939 = vrot.lane.b32.xlu0 %v2904_v61, %s3898_s19 }
 0x32a   : > { %v1902_v62 = vmax.f32 %v1898_v57, %v1900_v34  ;;  %v2080_v34 = vsel %vm825_vm7, %v2076_v6, %v6678_v43  ;;  %v2743_v57 = vpop.permute.xlu2 %2742  ;;  %v6682_v6 = vld [vmem:[#allocation34_spill] sm:$0xff]  ;;  %v6686_v43 = vld [vmem:[#allocation40_spill] sm:$0xff] }
 0x32b   : > { %v5874_v15 = vpop.permute.xlu0 %2494  ;;  %v2066_v25 = vsel %vm805_vm3, %v6682_v6, %v6681_v28 }
 0x32c   : > { %3070 = vrot.lane.b32.xlu1 %v2901_v2, %s6553_s30  ;;  %3076 = vrot.lane.b32.xlu2 %v2904_v61, %s6547_s26  ;;  %v2073_v2 = vsel %vm6524_vm5, %v2069_v9, %v6679_v27  ;;  %v6680_v61 = vld [vmem:[#allocation43_spill] sm:$0xff]  ;;  %v2070_v9 = vsel %vm6523_vm4, %v2066_v25, %v5452_v52  ;;  %v6687_v27 = vld [vmem:[#allocation45_spill] sm:$0xff]  ;;  %v2790_v25 = vsel %vm820_vm6, %v6634_v37, %v2743_v57  ;;  %v6693_v57 = vld [vmem:[#allocation44_spill] sm:$0xff] }
 0x32d   : > { %1917 = vmatpush.msra.mxu3 %v1902_v62  ;;  %1937 = vmatpush.msrb.mxu1 %v1902_v62  ;;  %v5878_v30 = vpop.permute.xlu1 %2506  ;;  %v2084_v32 = vsel %vm830_vm8, %v2080_v34, %v6680_v61  ;;  %v2077_v26 = vsel %vm820_vm6, %v2073_v2, %v6683_v48  ;;  %v6684_v62 = vld [vmem:[#allocation27_spill] sm:$0xff]  ;;  %v6688_v61 = vld [vmem:[#allocation48_spill] sm:$0xff] }
 0x32e   : > { %v2088_v40 = vsel %vm835_vm9, %v2084_v32, %v6684_v62  ;;  %v2081_v34 = vsel %vm825_vm7, %v2077_v26, %v6686_v43  ;;  %v2074_v28 = vsel %vm6524_vm5, %v2070_v9, %v6688_v61  ;;  %v6689_v32 = vld [vmem:[#allocation52_spill] sm:$0xff]  ;;  %v6690_v62 = vld [vmem:[#allocation54_spill] sm:$0xff] }
 0x32f   : > { %1918 = vmatpush.msra.mxu3 %v1901_v1  ;;  %1938 = vmatpush.msrb.mxu1 %v1901_v1  ;;  %v2092_v2 = vsel %vm840_vm10, %v2088_v40, %v6687_v27  ;;  %v2085_v48 = vsel %vm830_vm8, %v2081_v34, %v6689_v32  ;;  %v2078_v26 = vsel %vm820_vm6, %v2074_v28, %v5472_v53  ;;  %v6692_v40 = vld [vmem:[#allocation53_spill] sm:$0xff] }
 0x330   : > { %3684 = vmatmul.msk.f32.vlgmr.msra.gmra.mxu3 %vm904_vm14, %v4946_v18  ;;  %3685 = vmatmul.msk.f32.vlgmr.msrb.gmra.mxu1 %vm904_vm14, %v4941_v60  ;;  %v2089_v9 = vsel %vm835_vm9, %v2085_v48, %v6692_v40  ;;  %v6694_v48 = vld [vmem:[#allocation51_spill] sm:$0xff] }
 0x331   : > { %3686 = vmatpush.msk.msrb.mxu3 %vm525_vm0, %v5893_v12  ;;  %v2093_v32 = vsel %vm840_vm10, %v2089_v9, %v6693_v57 }
 0x332   : > { %v2761_v6 = vpop.permute.xlu2 %2760 }
 0x333   : > { %2123 = vmatpush.msrb.mxu3 %v5905_v39  ;;  %v5910_v31 = vpop.permute.xlu0 %2530 }
 0x334   : > { %6685 = vst [vmem:[#allocation39_spill] sm:$0xff] %v5910_v31  ;;  %v6691_v31 = vld [vmem:[#allocation33_spill] sm:$0xff] }
 0x335   : > { %v5914_v1 = vpop.permute.xlu1 %2542  ;;  %v2067_v52 = vsel %vm805_vm3, %v6691_v31, %v6690_v62  ;;  %v2082_v31 = vsel %vm825_vm7, %v2078_v26, %v5474_v24 }
 0x336   : > { %v2071_v27 = vsel %vm6523_vm4, %v2067_v52, %v5525_v3  ;;  %v2086_v3 = vsel %vm830_vm8, %v2082_v31, %v6694_v48  ;;  %vm2805_vm4 = vcmask 228352  }
 0x337   : > { %v2075_v28 = vsel %vm6524_vm5, %v2071_v27, %v5531_v42  ;;  %v2090_v52 = vsel %vm835_vm9, %v2086_v3, %v5491_v56  ;;  %vm2808_vm5 = vcmask 261120  }
 0x338   : > { %3687 = vmatmul.msk.f32.vlgmr.msrb.gmra.mxu3 %vm845_vm11, %v2092_v2  ;;  %v2079_v24 = vsel %vm820_vm6, %v2075_v28, %v5458_v38  ;;  %v2094_v9 = vsel %vm840_vm10, %v2090_v52, %v5495_v20 }
 0x339   : > { %v2083_v42 = vsel %vm825_vm7, %v2079_v24, %v5556_v13 }
 0x33a   : > { %v2779_v62 = vpop.permute.xlu2 %2778  ;;  %v2087_v38 = vsel %vm830_vm8, %v2083_v42, %v5560_v14 }
 0x33b   : > { %v2749_v43 = vpop.permute.xlu0 %2748 }
 0x33c   : > { %v2792_v34 = vsel %vm840_vm10, %v2790_v25, %v2749_v43 }
 0x33d   : > { %v2755_v2 = vpop.permute.xlu1 %2754 }
 0x33e   : > { %v2795_v61 = vsel %vm6525_vm15, %v2792_v34, %v2755_v2  ;;  %v2091_v34 = vsel %vm835_vm9, %v2087_v38, %v5480_v4 }
 0x33f   : > { %v2797_v53 = vsel %vm904_vm14, %v2795_v61, %v2761_v6  ;;  %v2095_v31 = vsel %vm840_vm10, %v2091_v34, %v5584_v46 }
 0x340   : > { %3688 = vmatmul.msk.f32.gmra.mxu3 %vm845_vm11, %v2093_v32 }
 0x342   : > { %v2751_v56 = vpop.permute.xlu2 %2750 }
 0x343   : > { %v2767_v25 = vpop.permute.xlu0 %2766 }
 0x344   : > { %v2800_v6 = vsel %vm2799_vm12, %v2797_v53, %v2767_v25 }
 0x345   : > { %v2773_v26 = vpop.permute.xlu1 %2772 }
 0x346   : > { %v2803_v40 = vsel %vm2802_vm13, %v2800_v6, %v2773_v26 }
 0x347   : > { %v2806_v43 = vsel %vm2805_vm4, %v2803_v40, %v2779_v62 }
 0x348   : > { %3689 = vmatmul.msk.f32.gmra.mxu3 %vm845_vm11, %v2094_v9 }
 0x34a   : > { %v2769_v53 = vpop.permute.xlu2 %2768 }
 0x34b   : > { %v2785_v27 = vpop.permute.xlu0 %2784 }
 0x34c   : > { %v5965_v13 = vsel %vm2808_vm5, %v2806_v43, %v2785_v27 }
 0x34d   : > { %v2745_v2 = vpop.permute.xlu1 %2744 }
 0x34e   : > { %v2791_v20 = vsel %vm820_vm6, %v5707_v51, %v2745_v2 }
 0x34f   : > { %v2793_v61 = vsel %vm840_vm10, %v2791_v20, %v2751_v56 }
 0x350   : > { %3690 = vmatmul.msk.f32.gmra.mxu3 %vm845_vm11, %v2095_v31 }
 0x353   : > { %v2757_v14 = vpop.permute.xlu0 %2756 }
 0x354   : > { %v2796_v57 = vsel %vm6525_vm15, %v2793_v61, %v2757_v14 }
 0x355   : > { %v2763_v32 = vpop.permute.xlu1 %2762 }
 0x356   : > { %v2798_v4 = vsel %vm904_vm14, %v2796_v57, %v2763_v32 }
 0x357   : > { %v2801_v28 = vsel %vm2799_vm12, %v2798_v4, %v2769_v53 }
 0x35e   : > { %v2787_v48 = vpop.permute.xlu2 %2786 }
 0x366   : > { %v2926_v52 = vpop.permute.xlu2 %2925 }
 0x36e   : > { %v2944_v9 = vpop.permute.xlu2 %2943 }
 0x373   : > { %v2775_v3 = vpop.permute.xlu0 %2774 }
 0x374   : > { %v2804_v51 = vsel %vm2802_vm13, %v2801_v28, %v2775_v3 }
 0x376   : > { %v2781_v62 = vpop.permute.xlu1 %2780  ;;  %v2916_v31 = vpop.permute.xlu2 %2915 }
 0x377   : > { %v2807_v46 = vsel %vm2805_vm4, %v2804_v51, %v2781_v62  ;;  %v2962_v14 = vsel %vm820_vm6, %v5781_v47, %v2916_v31 }
 0x378   : > { %v5979_v24 = vsel %vm2808_vm5, %v2807_v46, %v2787_v48 }
 0x37b   : > { %v2914_v25 = vpop.permute.xlu0 %2913 }
 0x37c   : > { %v2961_v6 = vsel %vm820_vm6, %v5734_v44, %v2914_v25 }
 0x37e   : > { %v2920_v26 = vpop.permute.xlu1 %2919  ;;  %v2934_v4 = vpop.permute.xlu2 %2933 }
 0x37f   : > { %v2963_v42 = vsel %vm840_vm10, %v2961_v6, %v2920_v26 }
 0x380   : > { %v2965_v40 = vsel %vm6525_vm15, %v2963_v42, %v2926_v52 }
 0x383   : > { %v2932_v43 = vpop.permute.xlu0 %2931 }
 0x384   : > { %v2967_v38 = vsel %vm904_vm14, %v2965_v40, %v2932_v43 }
 0x386   : > { %v2938_v56 = vpop.permute.xlu1 %2937 }
 0x387   : > { %v2969_v27 = vsel %vm2799_vm12, %v2967_v38, %v2938_v56 }
 0x388   : > { %v2971_v34 = vsel %vm2802_vm13, %v2969_v27, %v2944_v9 }
 0x38b   : > { %v2950_v2 = vpop.permute.xlu0 %2949 }
 0x38c   : > { %v2973_v20 = vsel %vm2805_vm4, %v2971_v34, %v2950_v2  ;;  %v6695_v2 = vld [vmem:[#allocation38_spill] sm:$0xff] }
 0x38e   : > { %v2956_v61 = vpop.permute.xlu1 %2955 }
 0x38f   : > { %v5990_v44 = vsel %vm2808_vm5, %v2973_v20, %v2956_v61  ;;  %v2312_v20 = vsel %vm805_vm3, %v6695_v2, %v5591_v58  ;;  %v6704_v2 = vld [vmem:[#allocation18_spill] sm:$0xff] }
 0x393   : > { %v2922_v57 = vpop.permute.xlu0 %2921 }
 0x394   : > { %v2964_v32 = vsel %vm840_vm10, %v2962_v14, %v2922_v57 }
 0x396   : > { %v2928_v53 = vpop.permute.xlu1 %2927 }
 0x397   : > { %v2966_v28 = vsel %vm6525_vm15, %v2964_v32, %v2928_v53  ;;  %vm6696_vm15 = vcmask 15360  }
 0x398   : > { %v5997_v48 = vsel %vm904_vm14, %v2966_v28, %v2934_v4  ;;  %v2316_v14 = vsel %vm6696_vm15, %v2312_v20, %v5503_v33  ;;  %v6705_v20 = vld [vmem:[#allocation17_spill] sm:$0xff] }
 0x3ad   : > { %v1940_v3 = vpop.f32.mrf.mxu1 }
 0x3b3   : > { %v1920_v51 = vpop.f32.mrf.mxu3 }
 0x3b4   : > { %v1943_v62 = vmax.f32 %v1920_v51, %v1940_v3 }
 0x3b6   : > { %v2688_v46 = vrot.slane %v1943_v62, 7 }
 0x3b8   : > { %v6000_v52 = vsel %vm525_vm0, 0.0, %v2688_v46  ;;  %v2712_v25 = vsel %vm525_vm0, %v2688_v46, 0.0  ;;  %v6698_v46 = vld [vmem:[#allocation37_spill] sm:$0xff] }
 0x3b9   : > { %v2908_v47 = vrot.slane %v2712_v25, 1  ;;  %3082 = vrot.lane.b32.xlu0 %v6000_v52, %s3896_s27  ;;  %2945 = vrot.lane.b32.xlu1 %v6000_v52, %s3899_s20  ;;  %v2907_v6 = vrot.slane %v6000_v52, 1  ;;  %v2911_v40 = vrot.slane %v2712_v25, 2  ;;  %v2910_v9 = vrot.slane %v6000_v52, 2 }
 0x3ba   : > { %v2313_v33 = vsel %vm805_vm3, %v6698_v46, %v5649_v55  ;;  %v6699_v55 = vld [vmem:[#allocation16_spill] sm:$0xff] }
 0x3bb   : > { %v2125_v26 = vpop.f32.mrf.mxu3  ;;  %v2909_v42 = vsel %vm661_vm1, %v2907_v6, %v2908_v47  ;;  %v2912_v43 = vsel %vm6526_vm2, %v2910_v9, %v2911_v40  ;;  %vm6697_vm2 = vcmask 23552  }
 0x3bc   : > { %2951 = vrot.lane.b32.xlu2 %v2909_v42, %s6529_s29  ;;  %v2137_v31 = vmul.f32 %v5834_v11, %v2125_v26  ;;  %v2320_v3 = vsel %vm6697_vm2, %v2316_v14, %v5615_v63  ;;  %v2317_v26 = vsel %vm6696_vm15, %v2313_v33, %v5651_v19 }
 0x3bd   : > { %v2324_v25 = vsel %vm820_vm6, %v2320_v3, %v5617_v21  ;;  %v2321_v40 = vsel %vm6697_vm2, %v2317_v26, %v5602_v41  ;;  %v6104_v3 = vpop.permute.xlu1 %3070 }
 0x3be   : > { %v2141_v4 = vadd.f32 %v5846_v8, %v2137_v31  ;;  %v2328_v63 = vsel %vm825_vm7, %v2324_v25, %v5542_v59  ;;  %v2314_v59 = vsel %vm805_vm3, %v6699_v55, %v5644_v36  ;;  %v2325_v19 = vsel %vm820_vm6, %v2321_v40, %v5660_v22  ;;  %v6706_v31 = vld [vmem:[#allocation32_spill] sm:$0xff] }
 0x3bf   : > { %v2332_v21 = vsel %vm830_vm8, %v2328_v63, %v5635_v5  ;;  %v2318_v9 = vsel %vm6696_vm15, %v2314_v59, %v5682_v29  ;;  %v2329_v5 = vsel %vm825_vm7, %v2325_v19, %v5662_v23  ;;  %v6711_v63 = vld [vmem:[#allocation13_spill] sm:$0xff] }
 0x3c0   : > { %v2145_v47 = vmax.f32 %v2141_v4, 0.0  ;;  %v2336_v41 = vsel %vm835_vm9, %v2332_v21, %v5637_v16  ;;  %v2322_v36 = vsel %vm6697_vm2, %v2318_v9, %v5684_v10  ;;  %v2333_v22 = vsel %vm830_vm8, %v2329_v5, %v5626_v54  ;;  %v6701_v54 = vld [vmem:[#allocation23_spill] sm:$0xff] }
 0x3c1   : > { %3094 = vrot.lane.b32.xlu1 %v2912_v43, %s3898_s19  ;;  %2957 = vrot.lane.b32.xlu0 %v2912_v43, %s6527_s17  ;;  %v2326_v29 = vsel %vm820_vm6, %v2322_v36, %v5654_v49  ;;  %v2337_v23 = vsel %vm835_vm9, %v2333_v22, %v5672_v50  ;;  %v6712_v21 = vld [vmem:[#allocation15_spill] sm:$0xff] }
 0x3c2   : > { %v2330_v10 = vsel %vm825_vm7, %v2326_v29, %v5702_v45 }
 0x3c3   : > { %v2128_v38 = vpop.f32.mrf.mxu3 }
 0x3c4   : > { %3088 = vrot.lane.b32.xlu2 %v2909_v42, %s3897_s14  ;;  %v2138_v27 = vmul.f32 %v5834_v11, %v2128_v38  ;;  %v6700_v38 = vld [vmem:[#allocation29_spill] sm:$0xff] }
 0x3c5   : > { %v2315_v16 = vsel %vm805_vm3, %v6700_v38, %v5730_v17  ;;  %v6702_v17 = vld [vmem:[#allocation20_spill] sm:$0xff] }
 0x3c6   : > { %v2142_v57 = vadd.f32 %v5846_v8, %v2138_v27  ;;  %v2334_v49 = vsel %vm830_vm8, %v2330_v10, %v6702_v17 }
 0x3c8   : > { %v2146_v58 = vmax.f32 %v2142_v57, 0.0  ;;  %v6708_v57 = vld [vmem:[#allocation14_spill] sm:$0xff] }
 0x3c9   : > { %3072 = vrot.lane.b32.xlu0 %v2909_v42, %s6553_s30 }
 0x3cb   : > { %v2131_v56 = vpop.f32.mrf.mxu3 }
 0x3cc   : > { %3078 = vrot.lane.b32.xlu2 %v2912_v43, %s6547_s26  ;;  %v2139_v34 = vmul.f32 %v5834_v11, %v2131_v56  ;;  %v2340_v43 = vsel %vm840_vm10, %v2336_v41, %v5571_v0  ;;  %v2319_v0 = vsel %vm6696_vm15, %v2315_v16, %v5678_v7  ;;  %v2341_v56 = vsel %vm840_vm10, %v2337_v23, %v5674_v35 }
 0x3cd   : > { %v2323_v27 = vsel %vm6697_vm2, %v2319_v0, %v6701_v54  ;;  %v2338_v7 = vsel %vm835_vm9, %v2334_v49, %v6704_v2  ;;  %vm6713_vm15 = vcmask 1045504   ;;  %vm6718_vm2 = vcmask 15360  }
 0x3ce   : > { %v2143_v32 = vadd.f32 %v5846_v8, %v2139_v34  ;;  %v6703_v34 = vld [vmem:[#allocation10_spill] sm:$0xff]  ;;  %v2342_v35 = vsel %vm840_vm10, %v2338_v7, %v6706_v31 }
 0x3cf   : > { %v2327_v50 = vsel %vm820_vm6, %v2323_v27, %v6703_v34 }
 0x3d0   : > { %v2147_v51 = vmax.f32 %v2143_v32, 0.0  ;;  %v2331_v45 = vsel %vm825_vm7, %v2327_v50, %v6705_v20 }
 0x3d2   : > { %v2149_v42 = vmax.f32 %v2145_v47, %v2147_v51 }
 0x3d3   : > { %v2134_v61 = vpop.f32.mrf.mxu3 }
 0x3d4   : > { %v2140_v53 = vmul.f32 %v5834_v11, %v2134_v61  ;;  %v6707_v61 = vld [vmem:[#allocation12_spill] sm:$0xff] }
 0x3d5   : > { %v2335_v14 = vsel %vm830_vm8, %v2331_v45, %v6707_v61 }
 0x3d6   : > { %v2144_v28 = vadd.f32 %v5846_v8, %v2140_v53  ;;  %v2339_v32 = vsel %vm835_vm9, %v2335_v14, %v6708_v57  ;;  %v6709_v53 = vld [vmem:[#allocation22_spill] sm:$0xff]  ;;  %v6714_v57 = vld [vmem:[#allocation9_spill] sm:$0xff] }
 0x3d7   : > { %v2343_v4 = vsel %vm840_vm10, %v2339_v32, %v6709_v53  ;;  %v6715_v32 = vld [vmem:[#allocation25_spill] sm:$0xff]  ;;  %v6716_v53 = vld [vmem:[#allocation46_spill] sm:$0xff] }
 0x3d8   : > { %v2148_v62 = vmax.f32 %v2144_v28, 0.0  ;;  %v2940_v28 = vpop.permute.xlu0 %2939 }
 0x3d9   : > { %v2970_v51 = vsel %vm2799_vm12, %v5997_v48, %v2940_v28  ;;  %v6717_v28 = vld [vmem:[#allocation36_spill] sm:$0xff] }
 0x3da   : > { %v2150_v6 = vmax.f32 %v2146_v58, %v2148_v62  ;;  %v6106_v58 = vpop.permute.xlu2 %3076 }
 0x3dc   : > { %2165 = vmatpush.msra.mxu1 %v2150_v6  ;;  %2185 = vmatpush.msra.mxu3 %v2150_v6 }
 0x3de   : > { %2166 = vmatpush.msra.mxu1 %v2149_v42  ;;  %2186 = vmatpush.msra.mxu3 %v2149_v42  ;;  %v6710_v42 = vld [vmem:[#allocation30_spill] sm:$0xff] }
 0x3df   : > { %3691 = vmatmul.msk.f32.vlgmr.msra.gmra.mxu1 %vm904_vm14, %v4946_v18  ;;  %3692 = vmatmul.msk.f32.vlgmr.msra.gmra.mxu3 %vm904_vm14, %v4941_v60  ;;  %v2573_v40 = vsel %vm835_vm9, %v6711_v63, %v6710_v42  ;;  %v6723_v42 = vld [vmem:[#allocation31_spill] sm:$0xff] }
 0x3e0   : > { %3693 = vmatpush.msk.msrb.mxu1 %vm525_vm0, %v5893_v12  ;;  %v2577_v55 = vsel %vm840_vm10, %v2573_v40, %v6712_v21  ;;  %v6724_v40 = vld [vmem:[#allocation39_spill] sm:$0xff] }
 0x3e2   : > { %2371 = vmatpush.msrb.mxu1 %v5905_v39 }
 0x3e7   : > { %3694 = vmatmul.msk.f32.vlgmr.msrb.gmra.mxu1 %vm845_vm11, %v2340_v43 }
 0x3ef   : > { %3695 = vmatmul.msk.f32.gmra.mxu1 %vm845_vm11, %v2341_v56 }
 0x3f7   : > { %3696 = vmatmul.msk.f32.gmra.mxu1 %vm845_vm11, %v2342_v35 }
 0x3ff   : > { %3697 = vmatmul.msk.f32.gmra.mxu1 %vm845_vm11, %v2343_v4  ;;  %v2551_v4 = vsel %vm805_vm3, %v6716_v53, %v6715_v32  ;;  %vm2818_vm3 = vcmask 1043456  }
 0x416   : > { %v2952_v33 = vpop.permute.xlu2 %2951 }
 0x42b   : > { %v6110_v62 = vpop.permute.xlu0 %3082  ;;  %v2946_v46 = vpop.permute.xlu1 %2945 }
 0x42c   : > { %v2972_v25 = vsel %vm2802_vm13, %v2970_v51, %v2946_v46  ;;  %v2555_v51 = vsel %vm6718_vm2, %v2551_v4, %v6717_v28  ;;  %v6719_v46 = vld [vmem:[#allocation26_spill] sm:$0xff] }
 0x42d   : > { %v2974_v47 = vsel %vm2805_vm4, %v2972_v25, %v2952_v33  ;;  %v6721_v25 = vld [vmem:[#allocation11_spill] sm:$0xff] }
 0x433   : > { %v2958_v6 = vpop.permute.xlu0 %2957 }
 0x434   : > { %v6115_v26 = vsel %vm2808_vm5, %v2974_v47, %v2958_v6  ;;  %v6722_v47 = vld [vmem:[#allocation56_spill] sm:$0xff] }
 0x435   : > { %v2578_v6 = vsel %vm840_vm10, %v6722_v47, %v6721_v25 }
 0x45c   : > { %v2168_v48 = vpop.f32.mrf.mxu1 }
 0x462   : > { %v2188_v59 = vpop.f32.mrf.mxu3 }
 0x463   : > { %v2191_v19 = vmax.f32 %v2168_v48, %v2188_v59  ;;  %v6201_v48 = vld [vmem:[%s6460_s4 + $0x8] sm:$0xff]  ;;  %v6208_v59 = vld [vmem:[%s6460_s4] sm:$0xff] }
 0x464   : > { %v2373_v41 = vpop.f32.mrf.mxu1 }
 0x465   : > { %v2689_v9 = vrot.slane %v2191_v19, 7  ;;  %v2385_v27 = vmul.f32 %v5834_v11, %v2373_v41  ;;  %v3095_v19 = vpop.permute.xlu1 %3094  ;;  %v6211_v41 = vpop.permute.xlu0 %3072 }
 0x467   : > { %v6123_v5 = vsel %vm525_vm0, 0.0, %v2689_v9  ;;  %v2713_v43 = vsel %vm525_vm0, %v2689_v9, 0.0  ;;  %v2389_v2 = vadd.f32 %v5846_v8, %v2385_v27  ;;  %v3089_v9 = vpop.permute.xlu2 %3088 }
 0x468   : > { %v3057_v36 = vrot.slane %v2713_v43, 1  ;;  %3084 = vrot.lane.b32.xlu1 %v6123_v5, %s3896_s27  ;;  %3100 = vrot.lane.b32.xlu0 %v6123_v5, %s3899_s20  ;;  %v3056_v22 = vrot.slane %v6123_v5, 1  ;;  %v3060_v16 = vrot.slane %v2713_v43, 2  ;;  %v3059_v29 = vrot.slane %v6123_v5, 2 }
 0x469   : > { %v2393_v35 = vmax.f32 %v2389_v2, 0.0 }
 0x46a   : > { %v3058_v38 = vsel %vm661_vm1, %v3056_v22, %v3057_v36  ;;  %v3061_v0 = vsel %vm6713_vm15, %v3059_v29, %v3060_v16  ;;  %vm6720_vm15 = vcmask 23552   ;;  %v6725_v22 = vld [vmem:[#allocation41_spill] sm:$0xff] }
 0x46b   : > { %3106 = vrot.lane.b32.xlu2 %v3058_v38, %s6529_s29  ;;  %v2559_v33 = vsel %vm6720_vm15, %v2555_v51, %v6719_v46  ;;  %s6728_s29 = smov 28  }
 0x46c   : > { %v2376_v23 = vpop.f32.mrf.mxu1 }
 0x46d   : > { %v2386_v56 = vmul.f32 %v5834_v11, %v2376_v23 }
 0x46f   : > { %v2390_v49 = vadd.f32 %v5846_v8, %v2386_v56  ;;  %v6218_v16 = vpop.permute.xlu2 %3078 }
 0x470   : > { %3225 = vrot.lane.b32.xlu0 %v3061_v0, %s6547_s26  ;;  %3219 = vrot.lane.b32.xlu1 %v3058_v38, %s6553_s30 }
 0x471   : > { %v2394_v20 = vmax.f32 %v2390_v49, 0.0 }
 0x473   : > { %3096 = vrot.lane.b32.xlu2 %v3061_v0, %s3898_s19 }
 0x474   : > { %v2379_v10 = vpop.f32.mrf.mxu1 }
 0x475   : > { %v2387_v54 = vmul.f32 %v5834_v11, %v2379_v10 }
 0x477   : > { %v2391_v34 = vadd.f32 %v5846_v8, %v2387_v54 }
 0x478   : > { %3090 = vrot.lane.b32.xlu0 %v3058_v38, %s3897_s14  ;;  %3112 = vrot.lane.b32.xlu1 %v3061_v0, %s6527_s17  ;;  %v3118_v38 = vsel %vm820_vm6, %v6725_v22, %v6104_v3  ;;  %s6729_s17 = smov 32  }
 0x479   : > { %v2395_v45 = vmax.f32 %v2391_v34, 0.0  ;;  %v3120_v29 = vsel %vm840_vm10, %v3118_v38, %v6106_v58 }
 0x47b   : > { %v2397_v14 = vmax.f32 %v2393_v35, %v2395_v45 }
 0x47c   : > { %v2382_v17 = vpop.f32.mrf.mxu1 }
 0x47d   : > { %v2388_v50 = vmul.f32 %v5834_v11, %v2382_v17 }
 0x47f   : > { %v2392_v7 = vadd.f32 %v5846_v8, %v2388_v50 }
 0x481   : > { %v2396_v31 = vmax.f32 %v2392_v7, 0.0 }
 0x483   : > { %v2398_v61 = vmax.f32 %v2394_v20, %v2396_v31 }
 0x485   : > { %2413 = vmatpush.msra.mxu0 %v2398_v61  ;;  %2433 = vmatpush.msra.mxu2 %v2398_v61 }
 0x487   : > { %2414 = vmatpush.msra.mxu0 %v2397_v14  ;;  %2434 = vmatpush.msra.mxu2 %v2397_v14 }
 0x488   : > { %3698 = vmatmul.msk.f32.vlgmr.msra.gmra.mxu0 %vm904_vm14, %v4946_v18  ;;  %3699 = vmatmul.msk.f32.vlgmr.msra.gmra.mxu2 %vm904_vm14, %v4941_v60 }
 0x489   : > { %3700 = vmatpush.msk.msrb.mxu0 %vm525_vm0, %v5893_v12  ;;  %v2563_v12 = vsel %vm820_vm6, %v2559_v33, %v5874_v15  ;;  %v6183_v15 = vld [vmem:[%s6460_s4 + $0x20] sm:$0xf] }
 0x48b   : > { %2607 = vmatpush.msrb.mxu0 %v5905_v39  ;;  %v2567_v39 = vsel %vm825_vm7, %v2563_v12, %v5878_v30  ;;  %v6190_v30 = vld [vmem:[%s6460_s4 + $0x18] sm:$0xff]  ;;  %vm6726_vm7 = vcmask 97280  }
 0x48c   : > { %v2571_v63 = vsel %vm830_vm8, %v2567_v39, %v6723_v42  ;;  %v3122_v23 = vsel %vm6726_vm7, %v3120_v29, %v6110_v62  ;;  %vm2811_vm8 = vcmask 293888   ;;  %v3119_v29 = vsel %vm820_vm6, %v6000_v52, %v6211_v41  ;;  %vm6731_vm2 = vmmov %vm6726_vm7 }
 0x48d   : > { %v2575_v21 = vsel %vm835_vm9, %v2571_v63, %v6724_v40  ;;  %3717 = vmatpush.msk.msra.mxu0 %vm2818_vm3, %v6183_v15  ;;  %v3124_v27 = vsel %vm904_vm14, %v3122_v23, %v3089_v9  ;;  %vm6727_vm9 = vcmask 1045504  }
 0x48e   : > { %v3126_v3 = vsel %vm2799_vm12, %v3124_v27, %v3095_v19  ;;  %vm6732_vm15 = vmmov %vm6727_vm9 }
 0x48f   : > { %3152 = vmatpush.msra.mxu0 %v6190_v30 }
 0x490   : > { %3701 = vmatmul.msk.f32.vlgmr.msrb.gmra.mxu0 %vm845_vm11, %v6714_v57 }
 0x498   : > { %3702 = vmatmul.msk.f32.gmra.mxu0 %vm845_vm11, %v2577_v55  ;;  %v2579_v55 = vsel %vm840_vm10, %v2575_v21, %v5914_v1  ;;  %v6195_v1 = vld [vmem:[%s6460_s4 + $0x10] sm:$0xff] }
 0x499   : > { %3153 = vmatpush.msra.mxu0 %v6195_v1 }
 0x49b   : > { %3154 = vmatpush.msra.mxu0 %v6201_v48 }
 0x49d   : > { %3155 = vmatpush.msra.mxu0 %v6208_v59 }
 0x4a0   : > { %3703 = vmatmul.msk.f32.gmra.mxu0 %vm845_vm11, %v2578_v6 }
 0x4a8   : > { %3704 = vmatmul.msk.f32.gmra.mxu0 %vm845_vm11, %v2579_v55  ;;  %vm6730_vm11 = vmmov %vm6726_vm7 }
 0x4c5   : > { %v3107_v49 = vpop.permute.xlu2 %3106 }
 0x4da   : > { %v6213_v43 = vpop.permute.xlu1 %3084  ;;  %v3101_v36 = vpop.permute.xlu0 %3100 }
 0x4db   : > { %v3128_v17 = vsel %vm2802_vm13, %v3126_v3, %v3101_v36 }
 0x4dc   : > { %v3130_v34 = vsel %vm2805_vm4, %v3128_v17, %v3107_v49 }
 0x4e2   : > { %v3226_v0 = vpop.permute.xlu0 %3225  ;;  %v3220_v10 = vpop.permute.xlu1 %3219 }
 0x4e3   : > { %v3267_v56 = vsel %vm820_vm6, %v6123_v5, %v3220_v10 }
 0x4e4   : > { %v6227_v54 = vsel %vm840_vm10, %v3267_v56, %v3226_v0 }
 0x4ea   : > { %v3113_v58 = vpop.permute.xlu1 %3112  ;;  %v3091_v22 = vpop.permute.xlu0 %3090 }
 0x4eb   : > { %v3132_v62 = vsel %vm2808_vm5, %v3130_v34, %v3113_v58 }
 0x4ec   : > { %3718 = vmatmul.msk.f32.vlgmr.msra.gmra.mxu0 %vm2811_vm8, %v3132_v62 }
 0x505   : > { %v2416_v50 = vpop.f32.mrf.mxu0 }
 0x50b   : > { %v2436_v5 = vpop.f32.mrf.mxu2 }
 0x50c   : > { %v2439_v2 = vmax.f32 %v2416_v50, %v2436_v5 }
 0x50d   : > { %v2609_v7 = vpop.f32.mrf.mxu0 }
 0x50e   : > { %v2690_v20 = vrot.slane %v2439_v2, 7  ;;  %v2621_v33 = vmul.f32 %v5834_v11, %v2609_v7 }
 0x510   : > { %v6236_v45 = vsel %vm525_vm0, 0.0, %v2690_v20  ;;  %v2714_v31 = vsel %vm525_vm0, %v2690_v20, 0.0  ;;  %v2625_v6 = vadd.f32 %v5846_v8, %v2621_v33  ;;  %v6733_v33 = vld [vmem:[#allocation19_spill] sm:$0xff] }
 0x511   : > { %v3068_v35 = vrot.slane %v2714_v31, 2  ;;  %3102 = vrot.lane.b32.xlu1 %v6236_v45, %s3899_s20  ;;  %3231 = vrot.lane.b32.xlu2 %v6236_v45, %s3896_s27  ;;  %v3067_v61 = vrot.slane %v6236_v45, 2  ;;  %v3065_v57 = vrot.slane %v2714_v31, 1  ;;  %v3064_v32 = vrot.slane %v6236_v45, 1 }
 0x512   : > { %v2629_v55 = vmax.f32 %v2625_v6, 0.0 }
 0x513   : > { %v3069_v14 = vsel %vm6727_vm9, %v3067_v61, %v3068_v35  ;;  %v3066_v4 = vsel %vm661_vm1, %v3064_v32, %v3065_v57 }
 0x514   : > { %3243 = vrot.lane.b32.xlu0 %v3069_v14, %s3898_s19 }
 0x515   : > { %v2612_v53 = vpop.f32.mrf.mxu0 }
 0x516   : > { %v2622_v51 = vmul.f32 %v5834_v11, %v2612_v53  ;;  %v6312_v53 = vld [vmem:[%s6462_s6] ss:$0 sm:$0xff] }
 0x518   : > { %v2626_v39 = vadd.f32 %v5846_v8, %v2622_v51 }
 0x519   : > { %3221 = vrot.lane.b32.xlu2 %v3066_v4, %s6553_s30  ;;  %3237 = vrot.lane.b32.xlu1 %v3066_v4, %s3897_s14  ;;  %s3905_s30 = smov 88  }
 0x51a   : > { %v2630_v63 = vmax.f32 %v2626_v39, 0.0 }
 0x51c   : > { %3108 = vrot.lane.b32.xlu0 %v3066_v4, %s6728_s29 }
 0x51d   : > { %v2615_v28 = vpop.f32.mrf.mxu0 }
 0x51e   : > { %v2623_v46 = vmul.f32 %v5834_v11, %v2615_v28 }
 0x520   : > { %v2627_v25 = vadd.f32 %v5846_v8, %v2623_v46 }
 0x521   : > { %3227 = vrot.lane.b32.xlu1 %v3069_v14, %s6547_s26  ;;  %3114 = vrot.lane.b32.xlu2 %v3069_v14, %s6729_s17  ;;  %v6303_v14 = vld [vmem:[%s6461_s5] ss:$0 sm:$0xff] }
 0x522   : > { %v2631_v40 = vmax.f32 %v2627_v25, 0.0 }
 0x524   : > { %v2633_v9 = vmax.f32 %v2629_v55, %v2631_v40 }
 0x525   : > { %v2618_v12 = vpop.f32.mrf.mxu0 }
 0x526   : > { %v2624_v47 = vmul.f32 %v5834_v11, %v2618_v12  ;;  %v3097_v11 = vpop.permute.xlu2 %3096 }
 0x528   : > { %v2628_v42 = vadd.f32 %v5846_v8, %v2624_v47  ;;  %v6734_v47 = vld [vmem:[#allocation21_spill] sm:$0xff] }
 0x52a   : > { %v2632_v21 = vmax.f32 %v2628_v42, 0.0 }
 0x52c   : > { %v2634_v19 = vmax.f32 %v2630_v63, %v2632_v21 }
 0x52e   : > { %2649 = vmatpush.msrb.mxu2 %v2634_v19  ;;  %2669 = vmatpush.msrb.mxu3 %v2634_v19 }
 0x530   : > { %2650 = vmatpush.msrb.mxu2 %v2633_v9  ;;  %2670 = vmatpush.msrb.mxu3 %v2633_v9 }
 0x531   : > { %3705 = vmatmul.msk.f32.vlgmr.msrb.gmra.mxu2 %vm904_vm14, %v4946_v18  ;;  %3706 = vmatmul.msk.f32.vlgmr.msrb.gmra.mxu3 %vm904_vm14, %v4941_v60 }
 0x532   : > { %3707 = vmatpush.msk.msra.mxu2 %vm2818_vm3, %v6183_v15 }
 0x534   : > { %2834 = vmatpush.msra.mxu2 %v6190_v30 }
 0x536   : > { %2835 = vmatpush.msra.mxu2 %v6195_v1 }
 0x538   : > { %2836 = vmatpush.msra.mxu2 %v6201_v48 }
 0x53a   : > { %2837 = vmatpush.msra.mxu2 %v6208_v59 }
 0x53b   : > { %3708 = vmatmul.msk.f32.vlgmr.msra.gmra.mxu2 %vm2811_vm8, %v5965_v13  ;;  %v3121_v13 = vsel %vm840_vm10, %v3119_v29, %v6218_v16 }
 0x543   : > { %3709 = vmatmul.msk.f32.gmra.mxu2 %vm2811_vm8, %v5979_v24  ;;  %v3123_v24 = vsel %vm6731_vm2, %v3121_v13, %v6213_v43 }
 0x544   : > { %v3125_v10 = vsel %vm904_vm14, %v3123_v24, %v3091_v22 }
 0x545   : > { %v3127_v27 = vsel %vm2799_vm12, %v3125_v10, %v3097_v11 }
 0x569   : > { %v3157_v29 = vpop.f32.mrf.mxu0 }
 0x56a   : > { %v3163_v10 = vmul.f32 %v6303_v14, %v3157_v29 }
 0x56b   : > { %v3232_v8 = vpop.permute.xlu2 %3231 }
 0x56c   : > { %v3271_v36 = vsel %vm6730_vm11, %v6227_v54, %v3232_v8 }
 0x573   : > { %v6280_v23 = vpop.permute.xlu2 %3221 }
 0x57b   : > { %v3115_v17 = vpop.permute.xlu2 %3114 }
 0x583   : > { %v3103_v38 = vpop.permute.xlu1 %3102 }
 0x584   : > { %v3129_v52 = vsel %vm2802_vm13, %v3127_v27, %v3103_v38 }
 0x586   : > { %v3244_v0 = vpop.permute.xlu0 %3243 }
 0x58b   : > { %v3238_v56 = vpop.permute.xlu1 %3237 }
 0x58c   : > { %v3273_v54 = vsel %vm904_vm14, %v3271_v36, %v3238_v56 }
 0x58d   : > { %v3275_v3 = vsel %vm2799_vm12, %v3273_v54, %v3244_v0 }
 0x58e   : > { %v3109_v41 = vpop.permute.xlu0 %3108 }
 0x58f   : > { %v3131_v49 = vsel %vm2805_vm4, %v3129_v52, %v3109_v41  ;;  %v3165_v52 = vadd.f32 %v6312_v53, %v3163_v10 }
 0x590   : > { %v3133_v16 = vsel %vm2808_vm5, %v3131_v49, %v3115_v17 }
 0x591   : > { %3719 = vmatmul.msk.f32.gmra.mxu0 %vm2811_vm8, %v3133_v16 }
 0x5b4   : > { %v2652_v43 = vpop.f32.mrf.mxu2  ;;  %v2672_v58 = vpop.f32.mrf.mxu3 }
 0x5b5   : > { %v2675_v34 = vmax.f32 %v2652_v43, %v2672_v58  ;;  %v3167_v43 = vmax.f32 %v3165_v52, 0.0 }
 0x5b7   : > { %v2691_v62 = vrot.slane %v2675_v34, 7 }
 0x5b9   : > { %v2707_v50 = vsel %vm525_vm0, 0.0, %v2691_v62  ;;  %v2715_v5 = vsel %vm525_vm0, %v2691_v62, 0.0  ;;  %vm6735_vm0 = vmmov %vm6731_vm2 }
 0x5ba   : > { %v3213_v2 = vrot.slane %v2707_v50, 1  ;;  %v3214_v7 = vrot.slane %v2715_v5, 1  ;;  %3233 = vrot.lane.b32.xlu0 %v2707_v50, %s3896_s27  ;;  %3249 = vrot.lane.b32.xlu2 %v2707_v50, %s3899_s20  ;;  %v3216_v31 = vrot.slane %v2707_v50, 2  ;;  %v3217_v35 = vrot.slane %v2715_v5, 2  ;;  %s3907_s27 = smov 68  }
 0x5bc   : > { %v3215_v20 = vsel %vm661_vm1, %v3213_v2, %v3214_v7  ;;  %v3218_v57 = vsel %vm6732_vm15, %v3216_v31, %v3217_v35  ;;  %vm3540_vm1 = vcmask 1041408  }
 0x5bd   : > { %3255 = vrot.lane.b32.xlu1 %v3215_v20, %s6728_s29 }
 0x5be   : > { %v2839_v61 = vpop.f32.mrf.mxu2 }
 0x5bf   : > { %v2845_v32 = vmul.f32 %v6303_v14, %v2839_v61 }
 0x5c1   : > { %v2847_v28 = vadd.f32 %v6312_v53, %v2845_v32 }
 0x5c2   : > { %3261 = vrot.lane.b32.xlu0 %v3218_v57, %s6729_s17  ;;  %3239 = vrot.lane.b32.xlu2 %v3215_v20, %s3897_s14  ;;  %s3909_s14 = smov 48  }
 0x5c3   : > { %v2849_v12 = vmax.f32 %v2847_v28, 0.0 }
 0x5c5   : > { %3245 = vrot.lane.b32.xlu1 %v3218_v57, %s3898_s19  ;;  %v3368_v57 = vld [vmem:[%s6463_s7] sm:$0xff]  ;;  %s3910_s19 = smov 38  }
 0x5c6   : > { %v2842_v4 = vpop.f32.mrf.mxu2  ;;  %3391 = vmatpush.msrb.mxu0 %v3368_v57 }
 0x5c7   : > { %v2846_v51 = vmul.f32 %v6303_v14, %v2842_v4 }
 0x5c9   : > { %v2848_v46 = vadd.f32 %v6312_v53, %v2846_v51 }
 0x5ca   : > { %3251 = vrot.lane.b32.xlu0 %v6634_v37, %s3899_s20  ;;  %3263 = vrot.lane.b32.xlu2 %v6733_v33, %s6729_s17  ;;  %v3228_v37 = vpop.permute.xlu1 %3227  ;;  %s3904_s17 = smov 98   ;;  %s3911_s20 = smov 18  }
 0x5cb   : > { %v2850_v39 = vmax.f32 %v2848_v46, 0.0 }
 0x5cd   : > { %v2851_v25 = vmax.f32 %v2849_v12, %v2850_v39  ;;  %3257 = vrot.lane.b32.xlu1 %v6734_v47, %s6728_s29 }
 0x5cf   : > { %2869 = vmatpush.msra.mxu3 %v2851_v25  ;;  %2891 = vmatpush.msra.mxu1 %v2851_v25 }
 0x5d0   : > { %3711 = vmatmul.msk.f32.vlgmr.msra.gmra.mxu1 %vm840_vm10, %v4941_v60  ;;  %3710 = vmatmul.msk.f32.vlgmr.msra.gmra.mxu3 %vm840_vm10, %v4946_v18 }
 0x5d1   : > { %3712 = vmatpush.msk.msrb.mxu3 %vm2818_vm3, %v6183_v15 }
 0x5d3   : > { %2995 = vmatpush.msrb.mxu3 %v6190_v30 }
 0x5d5   : > { %2996 = vmatpush.msrb.mxu3 %v6195_v1 }
 0x5d7   : > { %2997 = vmatpush.msrb.mxu3 %v6201_v48 }
 0x5d9   : > { %2998 = vmatpush.msrb.mxu3 %v6208_v59 }
 0x5da   : > { %3713 = vmatmul.msk.f32.vlgmr.msrb.gmra.mxu3 %vm2811_vm8, %v5990_v44 }
 0x5db   : > { %3722 = vmatpush.msk.msra.mxu3 %vm2818_vm3, %v6183_v15 }
 0x5dd   : > { %3301 = vmatpush.msra.mxu3 %v6190_v30 }
 0x5df   : > { %3302 = vmatpush.msra.mxu3 %v6195_v1 }
 0x5e1   : > { %3303 = vmatpush.msra.mxu3 %v6201_v48 }
 0x5e2   : > { %3714 = vmatmul.msk.f32.gmra.mxu3 %vm2811_vm8, %v6115_v26  ;;  %v3268_v26 = vsel %vm820_vm6, %v6236_v45, %v6280_v23 }
 0x5e3   : > { %3304 = vmatpush.msra.mxu3 %v6208_v59  ;;  %v3270_v48 = vsel %vm840_vm10, %v3268_v26, %v3228_v37 }
 0x60e   : > { %v3160_v0 = vpop.f32.mrf.mxu0 }
 0x60f   : > { %v3164_v13 = vmul.f32 %v6303_v14, %v3160_v0 }
 0x611   : > { %v3166_v56 = vadd.f32 %v6312_v53, %v3164_v13 }
 0x613   : > { %v3168_v17 = vmax.f32 %v3166_v56, 0.0 }
 0x614   : > { %v3250_v6 = vpop.permute.xlu2 %3249 }
 0x615   : > { %v3277_v44 = vsel %vm2802_vm13, %v3275_v3, %v3250_v6  ;;  %v3169_v34 = vmax.f32 %v3167_v43, %v3168_v17 }
 0x61c   : > { %v3240_v21 = vpop.permute.xlu2 %3239 }
 0x624   : > { %v3264_v11 = vpop.permute.xlu2 %3263 }
 0x62c   : > { %v3234_v42 = vpop.permute.xlu0 %3233 }
 0x62d   : > { %v3272_v59 = vsel %vm6735_vm0, %v3270_v48, %v3234_v42 }
 0x62e   : > { %v3274_v19 = vsel %vm904_vm14, %v3272_v59, %v3240_v21 }
 0x62f   : > { %v3256_v63 = vpop.permute.xlu1 %3255 }
 0x630   : > { %v3279_v40 = vsel %vm2805_vm4, %v3277_v44, %v3256_v63 }
 0x634   : > { %v3262_v15 = vpop.permute.xlu0 %3261 }
 0x635   : > { %v3281_v30 = vsel %vm2808_vm5, %v3279_v40, %v3262_v15 }
 0x636   : > { %3723 = vmatmul.msk.f32.vlgmr.msra.gmra.mxu3 %vm2811_vm8, %v3281_v30 }
 0x637   : > { %v3246_v1 = vpop.permute.xlu1 %3245 }
 0x638   : > { %v3276_v9 = vsel %vm2799_vm12, %v3274_v19, %v3246_v1 }
 0x63c   : > { %v3252_v55 = vpop.permute.xlu0 %3251 }
 0x63d   : > { %v3278_v8 = vsel %vm2802_vm13, %v3276_v9, %v3252_v55 }
 0x63f   : > { %v3258_v36 = vpop.permute.xlu1 %3257 }
 0x640   : > { %v3280_v22 = vsel %vm2805_vm4, %v3278_v8, %v3258_v36  ;;  %vm3536_vm4 = vcmask 80896  }
 0x641   : > { %v3282_v38 = vsel %vm2808_vm5, %v3280_v22, %v3264_v11  ;;  %vm3564_vm5 = vcmask 8192  }
 0x642   : > { %3724 = vmatmul.msk.f32.gmra.mxu3 %vm2811_vm8, %v3282_v38  ;;  %v3421_v38 = vld [vmem:[%s6464_s8] sm:$0x1] }
 0x64d   : > { %v2893_v32 = vpop.f32.mrf.mxu1 }
 0x653   : > { %v2871_v45 = vpop.f32.mrf.mxu3 }
 0x654   : > { %v2896_v51 = vmax.f32 %v2871_v45, %v2893_v32 }
 0x65d   : > { %v3000_v23 = vpop.f32.mrf.mxu3 }
 0x65e   : > { %v3006_v24 = vmul.f32 %v6303_v14, %v3000_v23 }
 0x660   : > { %v3008_v27 = vadd.f32 %v6312_v53, %v3006_v24 }
 0x662   : > { %v3010_v49 = vmax.f32 %v3008_v27, 0.0 }
 0x665   : > { %v3003_v54 = vpop.f32.mrf.mxu3 }
 0x666   : > { %v3007_v3 = vmul.f32 %v6303_v14, %v3003_v54  ;;  %v3534_v54 = vld [vmem:[%s6465_s9 + $0x8] sm:$0x3] }
 0x668   : > { %v3009_v41 = vadd.f32 %v6312_v53, %v3007_v3  ;;  %v3533_v3 = vld [vmem:[%s6465_s9] sm:$0xff] }
 0x66a   : > { %v3011_v16 = vmax.f32 %v3009_v41, 0.0 }
 0x66c   : > { %v3012_v58 = vmax.f32 %v3010_v49, %v3011_v16 }
 0x66e   : > { %3028 = vmatpush.msrb.mxu1 %v3012_v58  ;;  %3048 = vmatpush.msrb.mxu2 %v3012_v58 }
 0x66f   : > { %3716 = vmatmul.msk.f32.vlgmr.msrb.gmra.mxu2 %vm840_vm10, %v4941_v60  ;;  %3715 = vmatmul.msk.f32.vlgmr.msrb.gmra.mxu1 %vm840_vm10, %v4946_v18 }
 0x670   : > { %3185 = vmatpush.msra.mxu1 %v3169_v34  ;;  %3205 = vmatpush.msra.mxu2 %v3169_v34 }
 0x677   : > { %3721 = vmatmul.msk.f32.vlgmr.msra.gmra.mxu2 %vm840_vm10, %v4941_v60  ;;  %3720 = vmatmul.msk.f32.vlgmr.msra.gmra.mxu1 %vm840_vm10, %v4946_v18 }
 0x6b9   : > { %v3306_v62 = vpop.f32.mrf.mxu3 }
 0x6ba   : > { %v3312_v50 = vmul.f32 %v6303_v14, %v3306_v62 }
 0x6bc   : > { %v3314_v2 = vadd.f32 %v6312_v53, %v3312_v50 }
 0x6be   : > { %v3316_v31 = vmax.f32 %v3314_v2, 0.0 }
 0x6c5   : > { %v3309_v5 = vpop.f32.mrf.mxu3 }
 0x6c6   : > { %v3313_v7 = vmul.f32 %v6303_v14, %v3309_v5  ;;  %v3369_v14 = vld [vmem:[%s6463_s7 + $0x8] sm:$0xff] }
 0x6c8   : > { %v3315_v20 = vadd.f32 %v6312_v53, %v3313_v7 }
 0x6ca   : > { %v3317_v35 = vmax.f32 %v3315_v20, 0.0 }
 0x6cc   : > { %v3318_v61 = vmax.f32 %v3316_v31, %v3317_v35 }
 0x6ce   : > { %3334 = vmatpush.msrb.mxu1 %v3318_v61  ;;  %3354 = vmatpush.msrb.mxu2 %v3318_v61 }
 0x6cf   : > { %3726 = vmatmul.msk.f32.vlgmr.msrb.gmra.mxu2 %vm840_vm10, %v4941_v60  ;;  %3725 = vmatmul.msk.f32.vlgmr.msrb.gmra.mxu1 %vm840_vm10, %v4946_v18 }
 0x6d0   : > { %3414 = vmatpush.msra.mxu1 %v3369_v14  ;;  %3731 = vmatpush.msk.msra.mxu2 %vm3540_vm1, %v3534_v54 }
 0x6d2   : > { %3559 = vmatpush.msra.mxu2 %v3533_v3 }
 0x6ec   : > { %v3030_v53 = vpop.f32.mrf.mxu1 }
 0x6f2   : > { %v3050_v4 = vpop.f32.mrf.mxu2 }
 0x6f3   : > { %v3053_v28 = vmax.f32 %v3030_v53, %v3050_v4 }
 0x6f4   : > { %v3187_v18 = vpop.f32.mrf.mxu1 }
 0x6f5   : > { %v3361_v46 = vrot.slane %v3053_v28, 4 }
 0x6f7   : > { %v3366_v60 = vsel %vm2818_vm3, %v2896_v51, %v3361_v46 }
 0x6f8   : > { %3727 = vmatmul.msk.f32.vlgmr.msrb.gmra.mxu0 %vm840_vm10, %v3366_v60  ;;  %3729 = vmatmul.msk.f32.vlgmr.msra.gmra.mxu1 %vm840_vm10, %v3366_v60 }
 0x6fa   : > { %v3207_v33 = vpop.f32.mrf.mxu2 }
 0x6fb   : > { %v3210_v47 = vmax.f32 %v3187_v18, %v3207_v33  ;;  %v3535_v18 = vld [vmem:[%s6466_s10] sm:$0x1] }
 0x74c   : > { %v3336_v12 = vpop.f32.mrf.mxu1 }
 0x752   : > { %v3356_v39 = vpop.f32.mrf.mxu2 }
 0x753   : > { %v3359_v25 = vmax.f32 %v3336_v12, %v3356_v39 }
 0x755   : > { %v3364_v37 = vrot.slane %v3359_v25, 4 }
 0x757   : > { %v3367_v6 = vsel %vm2818_vm3, %v3210_v47, %v3364_v37 }
 0x758   : > { %3728 = vmatmul.msk.f32.gmra.mxu0 %vm840_vm10, %v3367_v6  ;;  %3730 = vmatmul.msk.f32.gmra.mxu1 %vm840_vm10, %v3367_v6 }
 0x775   : > { %v6395_v42 = vpop.f32.mrf.mxu0  ;;  %v3416_v63 = vpop.f32.mrf.mxu1 }
 0x776   : > { %3424 = vst [vmem:[#allocation1] sm:$0xff] %v6395_v42  ;;  %v3422_v23 = vadd.f32 %v3421_v38, %v6395_v42 }
 0x77d   : > { %v3426_v44 = vld [vmem:[#allocation1 + $0x1] ss:$9 sm:$0xff] }
 0x77e   : > { %3431 = vst [vmem:[#allocation1] sm:$0xff] %v6395_v42  ;;  %3427 = vrot.lane.b32.xlu0 %v3426_v44, %s3902_s16  ;;  %s3913_s16 = smov 116  }
 0x785   : > { %v3433_v40 = vld [vmem:[#allocation1 + $0x2] ss:$9 sm:$0xff] }
 0x786   : > { %3438 = vst [vmem:[#allocation1] sm:$0xff] %v6395_v42  ;;  %3434 = vrot.lane.b32.xlu1 %v3433_v40, %s3903_s18 }
 0x78d   : > { %v3440_v15 = vld [vmem:[#allocation1 + $0x3] ss:$9 sm:$0xff] }
 0x78e   : > { %3445 = vst [vmem:[#allocation1] sm:$0xff] %v6395_v42  ;;  %3441 = vrot.lane.b32.xlu2 %v3440_v15, %s3904_s17 }
 0x795   : > { %v3447_v30 = vld [vmem:[#allocation1 + $0x4] ss:$9 sm:$0xff] }
 0x796   : > { %3452 = vst [vmem:[#allocation1] sm:$0xff] %v6395_v42  ;;  %3448 = vrot.lane.b32.xlu0 %v3447_v30, %s3905_s30 }
 0x79d   : > { %v3454_v21 = vld [vmem:[#allocation1 + $0x5] ss:$9 sm:$0xff] }
 0x79e   : > { %3459 = vst [vmem:[#allocation1] sm:$0xff] %v6395_v42  ;;  %3455 = vrot.lane.b32.xlu1 %v3454_v21, %s3906_s0 }
 0x7a5   : > { %v3461_v1 = vld [vmem:[#allocation1 + $0x6] ss:$9 sm:$0xff] }
 0x7a6   : > { %3466 = vst [vmem:[#allocation1] sm:$0xff] %v6395_v42  ;;  %3462 = vrot.lane.b32.xlu2 %v3461_v1, %s3907_s27 }
 0x7ad   : > { %v3468_v26 = vld [vmem:[#allocation1 + $0x7] ss:$9 sm:$0xff] }
 0x7ae   : > { %3469 = vrot.lane.b32.xlu0 %v3468_v26, %s3908_s28 }
 0x7d5   : > { %v3396_v48 = vpop.f32.mrf.mxu0  ;;  %v3418_v9 = vpop.f32.mrf.mxu1 }
 0x7d6   : > { %3478 = vst [vmem:[#allocation1] sm:$0xff] %v3396_v48  ;;  %3474 = vrot.lane.b32.xlu1 %v3396_v48, %s3909_s14 }
 0x7dd   : > { %v3480_v59 = vld [vmem:[#allocation1 + $0x1] ss:$9 sm:$0xff] }
 0x7de   : > { %3485 = vst [vmem:[#allocation1] sm:$0xff] %v3396_v48  ;;  %3481 = vrot.lane.b32.xlu2 %v3480_v59, %s3910_s19  ;;  %s424_s19 = scalar_lea.vmem %s6467_s11, %s4033_s15 }
 0x7df   : > { %v3531_v51 = vld [vmem:[%s424_s19] sm:$0x1]  ;;  %s3843_s19 = scalar_lea.hbm %s6468_s12, 2 }
 0x7e5   : > { %v3487_v55 = vld [vmem:[#allocation1 + $0x2] ss:$9 sm:$0xff] }
 0x7e6   : > { %3488 = vrot.lane.b32.xlu0 %v3487_v55, %s6728_s29  ;;  %3492 = vst [vmem:[#allocation1] sm:$0xff] %v3396_v48  ;;  %s3914_s29 = smov 106  }
 0x7e8   : > { %v3442_v24 = vpop.permute.xlu2 %3441 }
 0x7ed   : > { %v3494_v19 = vld [vmem:[#allocation1 + $0x3] ss:$9 sm:$0xff] }
 0x7ee   : > { %3495 = vrot.lane.b32.xlu2 %v3494_v19, %s3911_s20  ;;  %3500 = vst [vmem:[#allocation1] sm:$0xff] %v3396_v48  ;;  %s415_s20 = sand.u32 1, %s3877_s22  }
 0x7ef   : > { %3501 = vst [vmem:[#allocation1 + $0x9] sm:$0xff] %v3418_v9  ;;  %s3567_s0 = scalar_lea.sflag [#allocation3], %s415_s20 }
 0x7f0   : > { %v3428_v29 = vpop.permute.xlu0 %3427 }
 0x7f1   : > { %v3430_v0 = vadd.f32 %v3428_v29, %v3422_v23 }
 0x7f6   : > { %v3503_v11 = vld [vmem:[#allocation1 + $0x4] ss:$9 sm:$0xff] }
 0x7f7   : > { %3504 = vrot.lane.b32.xlu1 %v3503_v11, %s6547_s26  ;;  %3510 = vst [vmem:[#allocation1] sm:$0xff] %v3418_v9  ;;  %s416_s26 = scalar_lea.vmem [#allocation2], %s415_s20 }
 0x7f8   : > { %v3435_v45 = vpop.permute.xlu1 %3434  ;;  %s3577_s15 = sshll.u32 %s416_s26, 4  ;;  %s3578_s15 = int_to_ptr.vmem [resolvable:$true] %s3577_s15 }
 0x7f9   : > { %v3437_v13 = vadd.f32 %v3435_v45, %v3430_v0 }
 0x7fb   : > { %v3444_v27 = vadd.f32 %v3442_v24, %v3437_v13 }
 0x7fe   : > { %v3512_v8 = vld [vmem:[#allocation1 + $0x5] ss:$9 sm:$0xff] }
 0x7ff   : > { %3513 = vrot.lane.b32.xlu0 %v3512_v8, %s3912_s23  ;;  %3517 = vst [vmem:[#allocation1] sm:$0xff] %v3418_v9 }
 0x800   : > { %v3463_v17 = vpop.permute.xlu2 %3462 }
 0x806   : > { %v3519_v36 = vld [vmem:[#allocation1 + $0x6] ss:$9 sm:$0xff] }
 0x807   : > { %3520 = vrot.lane.b32.xlu1 %v3519_v36, %s3913_s16  ;;  %3524 = vst [vmem:[#allocation1] sm:$0xff] %v3418_v9 }
 0x808   : > { %v3449_v56 = vpop.permute.xlu0 %3448 }
 0x809   : > { %v3451_v52 = vadd.f32 %v3449_v56, %v3444_v27 }
 0x80e   : > { %v3526_v22 = vld [vmem:[#allocation1 + $0x7] ss:$9 sm:$0xff] }
 0x80f   : > { %3527 = vrot.lane.b32.xlu2 %v3526_v22, %s3914_s29  ;;  %s3575_s29 = scalar_lea.hbm %s6468_s12, %s4001_s25 }
 0x810   : > { %v3456_v10 = vpop.permute.xlu1 %3455  ;;  %s3579_s30 = sshll.u32 %s3575_s29, 4  ;;  %s3580_s30 = int_to_ptr.hbm [resolvable:$true] %s3579_s30 }
 0x811   : > { %v3458_v41 = vadd.f32 %v3456_v10, %v3451_v52  ;;  %s3837_s27 = sshra.s32 %s3580_s30, 4  ;;  %s3838_s27 = int_to_ptr.hbm [resolvable:$true] %s3837_s27 }
 0x812   : > { %s3839_s28 = scalar_lea.hbm %s3838_s27, 1  ;;  %p3844_p0 = scmp.lt.s32.totalorder %s3838_s27, %s6468_s12 }
 0x813   : > { %v3465_v43 = vadd.f32 %v3463_v17, %v3458_v41  ;;  %p3840_p11 = scmp.ne.s32.totalorder %s3838_s27, %s3839_s28  ;;  %p3845_p1 = scmp.lt.s32.totalorder %s3843_s19, %s3839_s28 }
 0x815   : > { %p3841_p12 = pnand %p3840_p11, %p4018_p5  ;;  %p3846_p2 = por %p3845_p1, %p3844_p0 }
 0x817   : > { %p3842_p13 = pneg %p3841_p12 }
 0x819   : > { %p3847_p3 = pnand %p3846_p2, %p3842_p13 }
 0x820   : > { %v3470_v16 = vpop.permute.xlu0 %3469 }
 0x821   : > { %v3472_v58 = vadd.f32 %v3470_v16, %v3465_v43 }
 0x838   : > { %v3482_v62 = vpop.permute.xlu2 %3481 }
 0x848   : > { %v3475_v49 = vpop.permute.xlu1 %3474  ;;  %v3496_v31 = vpop.permute.xlu2 %3495 }
 0x849   : > { %v3477_v34 = vadd.f32 %v3475_v49, %v3472_v58 }
 0x84b   : > { %v3484_v2 = vadd.f32 %v3482_v62, %v3477_v34 }
 0x858   : > { %v3489_v5 = vpop.permute.xlu0 %3488 }
 0x859   : > { %v3491_v20 = vadd.f32 %v3489_v5, %v3484_v2 }
 0x85b   : > { %v3498_v61 = vadd.f32 %v3496_v31, %v3491_v20 }
 0x869   : > { %v3505_v50 = vpop.permute.xlu1 %3504  ;;  %v3528_v28 = vpop.permute.xlu2 %3527 }
 0x86a   : > { %v3506_v7 = vrot.slane %v3505_v50, 1 }
 0x86c   : > { %v3507_v35 = vsel %vm840_vm10, %v3505_v50, %v3506_v7 }
 0x86d   : > { %v3509_v14 = vadd.f32 %v3507_v35, %v3498_v61 }
 0x871   : > { %v3514_v57 = vpop.permute.xlu0 %3513 }
 0x872   : > { %v3516_v32 = vadd.f32 %v3514_v57, %v3509_v14 }
 0x879   : > { %v3521_v53 = vpop.permute.xlu1 %3520 }
 0x87a   : > { %v3523_v4 = vadd.f32 %v3521_v53, %v3516_v32 }
 0x87c   : > { %v3530_v46 = vadd.f32 %v3528_v28, %v3523_v4 }
 0x87e   : > { %v3532_v60 = vmul.f32 %v3531_v51, %v3530_v46 }
 0x880   : > { %3732 = vmatmul.msk.f32.vlgmr.msra.gmra.mxu2 %vm3536_vm4, %v3532_v60 }
 0x903   : > { %v3561_v33 = vpop.f32.mrf.mxu2 }
 0x904   : > { %v3562_v12 = vadd.f32 %v3561_v33, %v3535_v18 }
 0x906   : > { %3565 = vst.msk [vmem:[%s416_s26] sm:$0x1] %vm3564_vm5, %v3562_v12 }
 0x907   : > { %3850 = shalt.err (!%p3847_p3)
}
 0x908   : > { %3736 = dma.vmem_to_hbm [thread:$0]  (%p4018_p5), %s3578_s15, 16, %s3580_s30, %s3567_s0  }
 0x909 PF: > { %p3742_p4 = scmp.ge.s32.totalorder %s3885_s24, 2  ;;  %s3591_s29 = sand.u32 1, %s3873_s21  }
 0x90a   : > { %s3592_s18 = scalar_lea.sflag [#allocation3], %s3591_s29 }
 0x90b   : > { %p3739_p7 = pnand %p3742_p4, %p4022_p6 }
 0x90d   : > { %p3740_p8 = pneg %p3739_p7 }
 0x90f   : > { %3868 = dma.done.wait (%p3740_p8), %s3592_s18, 16  }
 0x910   : > { %3870 = vsyncadd (%p3740_p8), %s3592_s18, 4294967280  ;;  %s6737_s24 = sld [smem:[#allocation6_spill]]  ;;  %s6740_s21 = smov %s3877_s22 }
 0x911   : > { %s6738_s17 = sld [smem:[#allocation5_spill]] }
 0x912   : > { %s6739_s23 = sld [smem:[#allocation7_spill]] }
 0x916   : > { %p22_p9 = scmp.ge.s32.totalorder %s6737_s24, 4  }
 0x917   : > { %s6741_s22 = smov %s6738_s17 }
 0x918   :  { %24 = sbr.rel (!%p22_p9) target bundleno = 5 (0x5), region = 120 }
 0x91d   :  { %3597 = vsyncpa [#allocation3], 1 }
 0x91e   :  { %3599 = vsyncpa [#allocation3 + $0x1], 1 }

</bundles_post_ra>
